<compile_context>
chip_gen: v7x
topology: tpu7x:2x2x1
jax: 0.10.0
libtpu: 0.0.40
codegen_flags: <defaults>
</compile_context>

<pallas_src>
import functools
from dataclasses import dataclass

import jax
import jax.numpy as jnp
from jax import lax
from jax.experimental import pallas as pl
from jax.experimental.pallas import tpu as pltpu


# Tile caps. M is tiny at YOWO shapes, so a single M tile covers it; K/N tiles
# are large so the weight streams once and per-grid-step overhead is negligible.
TM_MAX = 512
TN_MAX = 512
VMEM_LIMIT = 48 * 1024 * 1024   # safe on v7x (64 MiB physical); ample elsewhere


def _round_up(x, m):
    return (x + m - 1) // m * m


def _pick_tk(K):
    """Largest K tile whose zero-padding overhead stays below ~12.5%."""
    kp128 = _round_up(K, 128)
    for cand in (2048, 1024, 512, 256, 128):
        if _round_up(K, cand) <= kp128 + kp128 // 8:
            return cand
    return 128


def _pick_tn(N):
    """Large N tile, but keep >=2 blocks on the parallel N axis when possible so
    the v7x megacore has work for both TensorCores (harmless on v5e/v6e)."""
    np128 = _round_up(N, 128)
    if np128 > TN_MAX:
        return TN_MAX
    if np128 >= 256 and (np128 // 2) % 128 == 0:
        return np128 // 2
    return np128


# ----------------------------------------------------------------------------
# Pallas kernels
# ----------------------------------------------------------------------------
def _mm_shift_act_kernel(x_ref, w_ref, shift_ref, o_ref, acc_ref, *, relu):
    """bf16 matmul with f32 accumulation in a VMEM scratch block; the epilogue
    adds the folded per-channel shift (eval-mode BN / bias), applies optional
    ReLU and casts to the output dtype (bf16 intermediates, f32 head)."""
    k = pl.program_id(2)

    @pl.when(k == 0)
    def _():
        acc_ref[...] = jnp.zeros_like(acc_ref)

    acc_ref[...] += jnp.dot(x_ref[...], w_ref[...],
                            preferred_element_type=jnp.float32)

    @pl.when(k == pl.num_programs(2) - 1)
    def _():
        y = acc_ref[...] + shift_ref[...]
        if relu:
            y = jnp.maximum(y, 0.0)
        o_ref[...] = y.astype(o_ref.dtype)


def _cam_kernel(x_ref, gamma_ref, o_ref):
    """CAM_Module channel attention, one batch element per grid step, on a
    channels-last [HWp, C] tile.  Both dots run in bf16 on the MXU with f32
    accumulation.  softmax(rowmax(E)-E) == exp(rowmin(E)-E)/sum exactly, so a
    single cross-lane reduction suffices; the divide runs on the EUP."""
    y = x_ref[0]                                     # (HWp, C); rows >= HW are 0
    yb = y.astype(jnp.bfloat16)
    # energy[c, c'] = sum_hw x[c, hw] * x[c', hw]  (contract the HW/sublane axis)
    energy = lax.dot_general(yb, yb, (((0,), (0,)), ((), ())),
                             preferred_element_type=jnp.float32)       # (C, C)
    e = jnp.exp(jnp.min(energy, axis=-1, keepdims=True) - energy)
    attn = e * pl.reciprocal(jnp.sum(e, axis=-1, keepdims=True), approx=True)
    # out_rows[hw, c] = sum_c' attn[c, c'] * x[c', hw]
    out = lax.dot_general(yb, attn.astype(jnp.bfloat16),
                          (((1,), (1,)), ((), ())),
                          preferred_element_type=jnp.float32)          # (HWp, C)
    o_ref[0] = (gamma_ref[0] * out + y.astype(jnp.float32)).astype(o_ref.dtype)


# ----------------------------------------------------------------------------
# Prepped-weight container (ints are static pytree aux data -> usable for grids)
# ----------------------------------------------------------------------------
@jax.tree_util.register_pytree_node_class
@dataclass
class PreppedLinear:
    w: jax.Array        # [Kp, Np] bf16, BN-scale folded, padded
    shift: jax.Array    # [1, Np] f32
    K: int
    N: int
    tk: int
    tn: int

    def tree_flatten(self):
        return (self.w, self.shift), (self.K, self.N, self.tk, self.tn)

    @classmethod
    def tree_unflatten(cls, aux, children):
        w, shift = children
        return cls(w, shift, *aux)


def prep_weight(w_KN, scale=None, shift=None):
    """One-time weight prep: fold per-output-channel BN scale, pad to tile
    multiples, cast to bf16 for the MXU (f32 accumulation keeps accuracy)."""
    w_KN = jnp.asarray(w_KN, jnp.float32)
    K, N = w_KN.shape
    if scale is not None:
        w_KN = w_KN * jnp.asarray(scale, jnp.float32)[None, :]
    tk, tn = _pick_tk(K), _pick_tn(N)
    Kp, Np = _round_up(K, tk), _round_up(N, tn)
    wp = jnp.pad(w_KN.astype(jnp.bfloat16), ((0, Kp - K), (0, Np - N)))
    sh = jnp.zeros((N,), jnp.float32) if shift is None else jnp.asarray(shift, jnp.float32)
    sp = jnp.pad(sh.reshape(1, N), ((0, 0), (0, Np - N)))
    return PreppedLinear(wp, sp, K, N, tk, tn)


# ----------------------------------------------------------------------------
# Pallas call wrappers
# ----------------------------------------------------------------------------
def matmul_prepped(x, wd: PreppedLinear, *, relu, out_dtype=jnp.bfloat16):
    """x: [M, K] -> relu?(x @ W + shift), shape [M, N], dtype out_dtype."""
    M, K = x.shape
    assert K == wd.K, (K, wd.K)
    Kp, Np = wd.w.shape
    tk, tn = wd.tk, wd.tn
    tm = min(TM_MAX, _round_up(M, 16))     # >=16: bf16 packs two rows / sublane
    Mp = _round_up(M, tm)

    xb = x if x.dtype == jnp.bfloat16 else x.astype(jnp.bfloat16)
    if (Mp, Kp) != (M, K):
        xb = jnp.pad(xb, ((0, Mp - M), (0, Kp - K)))

    out = pl.pallas_call(
        functools.partial(_mm_shift_act_kernel, relu=relu),
        out_shape=jax.ShapeDtypeStruct((Mp, Np), out_dtype),
        grid_spec=pltpu.PrefetchScalarGridSpec(
            num_scalar_prefetch=0,
            grid=(Mp // tm, Np // tn, Kp // tk),
            in_specs=[
                pl.BlockSpec((tm, tk), lambda i, j, k: (i, k)),
                pl.BlockSpec((tk, tn), lambda i, j, k: (k, j)),
                pl.BlockSpec((1, tn), lambda i, j, k: (0, j)),
            ],
            out_specs=pl.BlockSpec((tm, tn), lambda i, j, k: (i, j)),
            scratch_shapes=[pltpu.VMEM((tm, tn), jnp.float32)],
        ),
        compiler_params=pltpu.CompilerParams(
            dimension_semantics=("parallel", "parallel", "arbitrary"),
            vmem_limit_bytes=VMEM_LIMIT),
    )(xb, wd.w, wd.shift)
    return out[:M, :wd.N]


def cam_attention_rows(x, gamma):
    """x: [B, HW, C] (channels-last rows), gamma: (1,) f32.
    Returns gamma * (channel-attention @ x) + x with the same shape/dtype."""
    B, HW, C = x.shape
    HWp = _round_up(HW, 8)
    xp = x if HWp == HW else jnp.pad(x, ((0, 0), (0, HWp - HW), (0, 0)))
    out = pl.pallas_call(
        _cam_kernel,
        out_shape=jax.ShapeDtypeStruct((B, HWp, C), x.dtype),
        grid_spec=pltpu.PrefetchScalarGridSpec(
            num_scalar_prefetch=0,
            grid=(B,),
            in_specs=[
                pl.BlockSpec((1, HWp, C), lambda b: (b, 0, 0)),
                pl.BlockSpec(memory_space=pltpu.MemorySpace.SMEM),
            ],
            out_specs=pl.BlockSpec((1, HWp, C), lambda b: (b, 0, 0)),
        ),
        compiler_params=pltpu.CompilerParams(
            dimension_semantics=("parallel",),
            vmem_limit_bytes=VMEM_LIMIT),
    )(xp, gamma.astype(jnp.float32))
    return out if HWp == HW else out[:, :HW, :]


# ----------------------------------------------------------------------------
# Glue (channels-last end to end inside CFAM; no NCHW<->rows relayout per layer)
# ----------------------------------------------------------------------------
def _im2col3x3_cl(x):
    """Channels-last 3x3 im2col: pure shifted slices + stack (tap-major,
    channel-minor columns matched by the pre-transposed weights) - no relayout
    transposes.
    TODO(synk): fold into the matmul kernel as a 9-tap shifted accumulation to
    avoid the 9x activation materialization entirely."""
    B, H, W, C = x.shape
    xp = jnp.pad(x, ((0, 0), (1, 1), (1, 1), (0, 0)))
    taps = [xp[:, dy:dy + H, dx:dx + W, :] for dy in range(3) for dx in range(3)]
    patches = jnp.stack(taps, axis=3)              # [B, H, W, 9, C]
    return patches.reshape(B * H * W, 9 * C)


def conv3x3_cl(x_bhwc, wd):
    B, H, W, _ = x_bhwc.shape
    rows = matmul_prepped(_im2col3x3_cl(x_bhwc), wd, relu=True)
    return rows.reshape(B, H, W, -1)


# ----------------------------------------------------------------------------
# Parameters (raw PyTorch layout) + one-time prep
# ----------------------------------------------------------------------------
def init_params(key, num_ch_2d, num_ch_3d, cfam_ch, num_classes, cin):
    ks = jax.random.split(key, 8)

    def w(k, shape, fan_in):
        return jax.random.normal(k, shape, jnp.float32) / jnp.sqrt(float(fan_in))

    eps = 1e-5
    # PyTorch BN defaults: weight=1, bias=0, running_mean=0, running_var=1 (eval)
    bn_scale = jnp.full((cfam_ch,), 1.0 / jnp.sqrt(1.0 + eps), jnp.float32)
    bn_shift = jnp.zeros((cfam_ch,), jnp.float32)
    num_ch = num_ch_2d + num_ch_3d
    return dict(
        # backbone stubs (1x1 channel projections)
        w_2d=w(ks[0], (num_ch_2d, cin), cin),
        w_3d=w(ks[1], (num_ch_3d, cin), cin),
        # CFAMBlock
        cfam_w1=w(ks[2], (cfam_ch, num_ch, 3, 3), num_ch * 9),
        cfam_bn1_scale=bn_scale, cfam_bn1_shift=bn_shift,
        cfam_w2=w(ks[3], (cfam_ch, cfam_ch, 3, 3), cfam_ch * 9),
        cfam_bn2_scale=bn_scale, cfam_bn2_shift=bn_shift,
        # CAM gamma: nn.Parameter(torch.zeros(1)) in the original.
        cam_gamma=jnp.zeros((1,), jnp.float32),
        cfam_w3=w(ks[4], (cfam_ch, cfam_ch, 3, 3), cfam_ch * 9),
        cfam_bn3_scale=bn_scale, cfam_bn3_shift=bn_shift,
        cfam_wout=w(ks[5], (cfam_ch, cfam_ch), cfam_ch),
        cfam_bout=jnp.zeros((cfam_ch,), jnp.float32),
        # conv_final: 1x1, 5*(NUM_CLASSES+4+1) outputs, bias=False
        w_final=w(ks[6], (5 * (num_classes + 4 + 1), cfam_ch), cfam_ch),
    )


def prepare_params(p):
    """Fold BN scales into weights, reorder conv weights to the (tap-major,
    channel-minor) [K, N] layout used by the channels-last im2col, pad/cast to
    bf16 once, and fuse cfam conv_out (1x1+bias) with conv_final (1x1, no bias).
    Exact: no nonlinearity between them and Dropout2d is identity in eval."""
    def conv3x3_prep(w, scale, shift):
        cout = w.shape[0]
        # [Cout, Cin, 3, 3] -> [3(dy), 3(dx), Cin, Cout] -> [9*Cin, Cout]
        w_kn = jnp.transpose(w, (2, 3, 1, 0)).reshape(-1, cout)
        return prep_weight(w_kn, scale, shift)

    w_fused = p["cfam_wout"].T @ p["w_final"].T        # [cfam_ch, 5*(NC+5)]
    b_fused = p["w_final"] @ p["cfam_bout"]            # [5*(NC+5)]
    return dict(
        p2d=prep_weight(p["w_2d"].T),
        p3d=prep_weight(p["w_3d"].T),
        cfam1=conv3x3_prep(p["cfam_w1"], p["cfam_bn1_scale"], p["cfam_bn1_shift"]),
        cfam2=conv3x3_prep(p["cfam_w2"], p["cfam_bn2_scale"], p["cfam_bn2_shift"]),
        cfam3=conv3x3_prep(p["cfam_w3"], p["cfam_bn3_scale"], p["cfam_bn3_shift"]),
        head=prep_weight(w_fused, shift=b_fused),
        cam_gamma=p["cam_gamma"],
    )


# ----------------------------------------------------------------------------
# Forward
# ----------------------------------------------------------------------------
def yowo_forward(params, inp, *, feat_hw):
    """inp: [B, Cin, T, H, W] float32 (PyTorch NCDHW)."""
    B, Cin, T, H, W = inp.shape
    S = feat_hw
    k = H // S
    M = B * S * S

    # ---- backbone_2d on the last frame ----
    # TODO(synk): real Darknet-19 2D backbone ('cfg/yolo.cfg', 425-ch out) is an
    # external module; stubbed with avg-pooling + Pallas 1x1-conv projection.
    x2 = inp[:, :, -1, :, :].reshape(B, Cin, S, k, S, k).mean(axis=(3, 5))
    x2 = jnp.transpose(x2, (0, 2, 3, 1)).reshape(M, Cin)       # channels-last rows
    r2 = matmul_prepped(x2, params["p2d"], relu=True)          # [M, C2d] bf16

    # ---- backbone_3d on the full clip ----
    # TODO(synk): real ResNeXt-101 3D backbone (2048-ch out) is an external
    # module; stubbed with temporal/spatial pooling + Pallas 1x1-conv projection.
    x3 = inp.mean(axis=2).reshape(B, Cin, S, k, S, k).mean(axis=(3, 5))
    x3 = jnp.transpose(x3, (0, 2, 3, 1)).reshape(M, Cin)
    r3 = matmul_prepped(x3, params["p3d"], relu=True)          # [M, C3d] bf16

    # ---- YOWO.forward glue: squeeze(dim=2) + cat((x_3d, x_2d), dim=1) ----
    rows = jnp.concatenate((r3, r2), axis=-1)                  # channel concat
    x = rows.reshape(B, S, S, -1)                              # [B, S, S, C3d+C2d]

    # ---- CFAMBlock (conv-bn-relu x2, CAM attention, conv-bn-relu, dropout+1x1) ----
    x = conv3x3_cl(x, params["cfam1"])
    x = conv3x3_cl(x, params["cfam2"])
    Bc, Hs, Ws, C = x.shape
    x = cam_attention_rows(x.reshape(Bc, Hs * Ws, C),
                           params["cam_gamma"]).reshape(Bc, Hs, Ws, C)
    x = conv3x3_cl(x, params["cfam3"])
    # Dropout2d(0.1) is identity in eval; conv_out + conv_final fused, f32 out.
    out_rows = matmul_prepped(x.reshape(Bc * Hs * Ws, C), params["head"],
                              relu=False, out_dtype=jnp.float32)
    # back to PyTorch NCHW at the module boundary
    out = out_rows.reshape(Bc, Hs, Ws, -1).transpose(0, 3, 1, 2)
    return out


# ----------------------------------------------------------------------------
if __name__ == "__main__":
    NUM_CLASSES = 4
    # Scaled-down stand-ins for the real channel counts (425 / 2048 / 1024).
    NUM_CH_2D, NUM_CH_3D, CFAM_CH = 64, 192, 128
    B, CIN, T, H, W = 2, 3, 4, 32, 32
    S = 8   # backbone feature-map size

    key = jax.random.PRNGKey(0)
    kp, kx = jax.random.split(key)
    raw_params = init_params(kp, NUM_CH_2D, NUM_CH_3D, CFAM_CH, NUM_CLASSES, CIN)
    params = prepare_params(raw_params)   # one-time fold / reorder / pad / bf16 / fuse
    x = jax.random.normal(kx, (B, CIN, T, H, W), jnp.float32)

    fwd = jax.jit(functools.partial(yowo_forward, feat_hw=S))
    out = jax.block_until_ready(fwd(params, x))
    assert out.shape == (B, 5 * (NUM_CLASSES + 4 + 1), S, S), out.shape
    assert out.dtype == jnp.float32
    print("KERNEL_OK")
</pallas_src>

<mosaic_0001>
module attributes {stable_mosaic.version = 11 : i64} {
  func.func @_mm_shift_act_kernel(%arg0: i32, %arg1: i32, %arg2: i32, %arg3: memref<128x128xbf16, #tpu.memory_space<vmem>>, %arg4: memref<128x128xbf16, #tpu.memory_space<vmem>>, %arg5: memref<1x128xf32, #tpu.memory_space<vmem>>, %arg6: memref<128x128xbf16, #tpu.memory_space<vmem>>, %arg7: memref<128x128xf32, #tpu.memory_space<vmem>>) attributes {dimension_semantics = [#tpu.dimension_semantics<parallel>, #tpu.dimension_semantics<parallel>, #tpu.dimension_semantics<arbitrary>], iteration_bounds = array<i64: 1, 2, 1>, scalar_prefetch = 0 : i64, scratch_operands = 1 : i64, tpu.core_type = #tpu.core_type<tc>, window_params = [{transform_indices = @transform_0, window_bounds = array<i64: 128, 128>}, {transform_indices = @transform_1, window_bounds = array<i64: 128, 128>}, {transform_indices = @transform_2, window_bounds = array<i64: 1, 128>}, {transform_indices = @transform_3, window_bounds = array<i64: 128, 128>}]} {
    %c0_i32 = arith.constant 0 : i32
    %0 = arith.cmpi eq, %arg2, %c0_i32 : i32
    %1 = arith.extui %0 : i1 to i32
    %c0_i32_0 = arith.constant 0 : i32
    %2 = arith.cmpi ne, %1, %c0_i32_0 : i32
    scf.if %2 {
      %cst_10 = arith.constant 0.000000e+00 : f32
      %12 = vector.broadcast %cst_10 : f32 to vector<128x128xf32>
      %c0_11 = arith.constant 0 : index
      %c0_12 = arith.constant 0 : index
      %13 = vector.load %arg7[%c0_11, %c0_12] : memref<128x128xf32, #tpu.memory_space<vmem>>, vector<128x128xf32>
      tpu.vector_store %arg7[%c0_11, %c0_12], %12 {strides = array<i32>} : memref<128x128xf32, #tpu.memory_space<vmem>>, vector<128x128xf32>,
    } else {
    }
    %c0 = arith.constant 0 : index
    %c0_1 = arith.constant 0 : index
    %3 = vector.load %arg7[%c0, %c0_1] : memref<128x128xf32, #tpu.memory_space<vmem>>, vector<128x128xf32>
    %c0_2 = arith.constant 0 : index
    %c0_3 = arith.constant 0 : index
    %4 = vector.load %arg3[%c0_2, %c0_3] : memref<128x128xbf16, #tpu.memory_space<vmem>>, vector<128x128xbf16>
    %c0_4 = arith.constant 0 : index
    %c0_5 = arith.constant 0 : index
    %5 = vector.load %arg4[%c0_4, %c0_5] : memref<128x128xbf16, #tpu.memory_space<vmem>>, vector<128x128xbf16>
    %cst = arith.constant dense<0.000000e+00> : vector<128x128xf32>
    %6 = tpu.matmul %4, %5, %cst {dimension_numbers = #tpu.dot_dimension_numbers<[1], [0], [0], [1], [0, 0, 1, 1], [], []>} : vector<128x128xbf16>, vector<128x128xbf16>, vector<128x128xf32> -> vector<128x128xf32>
    %7 = arith.addf %3, %6 : vector<128x128xf32>
    %c0_6 = arith.constant 0 : index
    %c0_7 = arith.constant 0 : index
    %8 = vector.load %arg7[%c0_6, %c0_7] : memref<128x128xf32, #tpu.memory_space<vmem>>, vector<128x128xf32>
    tpu.vector_store %arg7[%c0_6, %c0_7], %7 {strides = array<i32>} : memref<128x128xf32, #tpu.memory_space<vmem>>, vector<128x128xf32>,
    %c0_i32_8 = arith.constant 0 : i32
    %9 = arith.cmpi eq, %arg2, %c0_i32_8 : i32
    %10 = arith.extui %9 : i1 to i32
    %c0_i32_9 = arith.constant 0 : i32
    %11 = arith.cmpi ne, %10, %c0_i32_9 : i32
    scf.if %11 {
      %c0_10 = arith.constant 0 : index
      %c0_11 = arith.constant 0 : index
      %12 = vector.load %arg7[%c0_10, %c0_11] : memref<128x128xf32, #tpu.memory_space<vmem>>, vector<128x128xf32>
      %c0_12 = arith.constant 0 : index
      %c0_13 = arith.constant 0 : index
      %13 = vector.load %arg5[%c0_12, %c0_13] : memref<1x128xf32, #tpu.memory_space<vmem>>, vector<1x128xf32>
      %14 = vector.broadcast %13 : vector<1x128xf32> to vector<128x128xf32>
      %15 = arith.addf %12, %14 : vector<128x128xf32>
      %cst_14 = arith.constant 0.000000e+00 : f32
      %16 = vector.broadcast %cst_14 : f32 to vector<128x128xf32>
      %17 = arith.maximumf %15, %16 : vector<128x128xf32>
      %18 = arith.truncf %17 : vector<128x128xf32> to vector<128x128xbf16>
      %c0_15 = arith.constant 0 : index
      %c0_16 = arith.constant 0 : index
      %19 = vector.load %arg6[%c0_15, %c0_16] : memref<128x128xbf16, #tpu.memory_space<vmem>>, vector<128x128xbf16>
      tpu.vector_store %arg6[%c0_15, %c0_16], %18 {strides = array<i32>} : memref<128x128xbf16, #tpu.memory_space<vmem>>, vector<128x128xbf16>,
    } else {
    }
    return
  }
  func.func @transform_0(%arg0: i32, %arg1: i32, %arg2: i32) -> (i32, i32) {
    %c0_i32 = arith.constant 0 : i32
    return %arg0, %arg2 : i32, i32
  }
  func.func @transform_1(%arg0: i32, %arg1: i32, %arg2: i32) -> (i32, i32) {
    %c0_i32 = arith.constant 0 : i32
    return %arg2, %arg1 : i32, i32
  }
  func.func @transform_2(%arg0: i32, %arg1: i32, %arg2: i32) -> (i32, i32) {
    %c0_i32 = arith.constant 0 : i32
    %c0_i32_0 = arith.constant 0 : i32
    return %c0_i32, %arg1 : i32, i32
  }
  func.func @transform_3(%arg0: i32, %arg1: i32, %arg2: i32) -> (i32, i32) {
    %c0_i32 = arith.constant 0 : i32
    return %arg0, %arg1 : i32, i32
  }
}

module attributes {stable_mosaic.version = 11 : i64} {
  func.func @_mm_shift_act_kernel(%arg0: i32, %arg1: i32, %arg2: i32, %arg3: memref<128x128xbf16, #tpu.memory_space<vmem>>, %arg4: memref<128x128xbf16, #tpu.memory_space<vmem>>, %arg5: memref<1x128xf32, #tpu.memory_space<vmem>>, %arg6: memref<128x128xbf16, #tpu.memory_space<vmem>>, %arg7: memref<128x128xf32, #tpu.memory_space<vmem>>) attributes {dimension_semantics = [#tpu.dimension_semantics<parallel>, #tpu.dimension_semantics<parallel>, #tpu.dimension_semantics<arbitrary>], iteration_bounds = array<i64: 1, 1, 1>, scalar_prefetch = 0 : i64, scratch_operands = 1 : i64, tpu.core_type = #tpu.core_type<tc>, window_params = [{transform_indices = @transform_0, window_bounds = array<i64: 128, 128>}, {transform_indices = @transform_1, window_bounds = array<i64: 128, 128>}, {transform_indices = @transform_2, window_bounds = array<i64: 1, 128>}, {transform_indices = @transform_3, window_bounds = array<i64: 128, 128>}]} {
    %c0_i32 = arith.constant 0 : i32
    %0 = arith.cmpi eq, %arg2, %c0_i32 : i32
    %1 = arith.extui %0 : i1 to i32
    %c0_i32_0 = arith.constant 0 : i32
    %2 = arith.cmpi ne, %1, %c0_i32_0 : i32
    scf.if %2 {
      %cst_10 = arith.constant 0.000000e+00 : f32
      %12 = vector.broadcast %cst_10 : f32 to vector<128x128xf32>
      %c0_11 = arith.constant 0 : index
      %c0_12 = arith.constant 0 : index
      %13 = vector.load %arg7[%c0_11, %c0_12] : memref<128x128xf32, #tpu.memory_space<vmem>>, vector<128x128xf32>
      tpu.vector_store %arg7[%c0_11, %c0_12], %12 {strides = array<i32>} : memref<128x128xf32, #tpu.memory_space<vmem>>, vector<128x128xf32>,
    } else {
    }
    %c0 = arith.constant 0 : index
    %c0_1 = arith.constant 0 : index
    %3 = vector.load %arg7[%c0, %c0_1] : memref<128x128xf32, #tpu.memory_space<vmem>>, vector<128x128xf32>
    %c0_2 = arith.constant 0 : index
    %c0_3 = arith.constant 0 : index
    %4 = vector.load %arg3[%c0_2, %c0_3] : memref<128x128xbf16, #tpu.memory_space<vmem>>, vector<128x128xbf16>
    %c0_4 = arith.constant 0 : index
    %c0_5 = arith.constant 0 : index
    %5 = vector.load %arg4[%c0_4, %c0_5] : memref<128x128xbf16, #tpu.memory_space<vmem>>, vector<128x128xbf16>
    %cst = arith.constant dense<0.000000e+00> : vector<128x128xf32>
    %6 = tpu.matmul %4, %5, %cst {dimension_numbers = #tpu.dot_dimension_numbers<[1], [0], [0], [1], [0, 0, 1, 1], [], []>} : vector<128x128xbf16>, vector<128x128xbf16>, vector<128x128xf32> -> vector<128x128xf32>
    %7 = arith.addf %3, %6 : vector<128x128xf32>
    %c0_6 = arith.constant 0 : index
    %c0_7 = arith.constant 0 : index
    %8 = vector.load %arg7[%c0_6, %c0_7] : memref<128x128xf32, #tpu.memory_space<vmem>>, vector<128x128xf32>
    tpu.vector_store %arg7[%c0_6, %c0_7], %7 {strides = array<i32>} : memref<128x128xf32, #tpu.memory_space<vmem>>, vector<128x128xf32>,
    %c0_i32_8 = arith.constant 0 : i32
    %9 = arith.cmpi eq, %arg2, %c0_i32_8 : i32
    %10 = arith.extui %9 : i1 to i32
    %c0_i32_9 = arith.constant 0 : i32
    %11 = arith.cmpi ne, %10, %c0_i32_9 : i32
    scf.if %11 {
      %c0_10 = arith.constant 0 : index
      %c0_11 = arith.constant 0 : index
      %12 = vector.load %arg7[%c0_10, %c0_11] : memref<128x128xf32, #tpu.memory_space<vmem>>, vector<128x128xf32>
      %c0_12 = arith.constant 0 : index
      %c0_13 = arith.constant 0 : index
      %13 = vector.load %arg5[%c0_12, %c0_13] : memref<1x128xf32, #tpu.memory_space<vmem>>, vector<1x128xf32>
      %14 = vector.broadcast %13 : vector<1x128xf32> to vector<128x128xf32>
      %15 = arith.addf %12, %14 : vector<128x128xf32>
      %cst_14 = arith.constant 0.000000e+00 : f32
      %16 = vector.broadcast %cst_14 : f32 to vector<128x128xf32>
      %17 = arith.maximumf %15, %16 : vector<128x128xf32>
      %18 = arith.truncf %17 : vector<128x128xf32> to vector<128x128xbf16>
      %c0_15 = arith.constant 0 : index
      %c0_16 = arith.constant 0 : index
      %19 = vector.load %arg6[%c0_15, %c0_16] : memref<128x128xbf16, #tpu.memory_space<vmem>>, vector<128x128xbf16>
      tpu.vector_store %arg6[%c0_15, %c0_16], %18 {strides = array<i32>} : memref<128x128xbf16, #tpu.memory_space<vmem>>, vector<128x128xbf16>,
    } else {
    }
    return
  }
  func.func @transform_0(%arg0: i32, %arg1: i32, %arg2: i32) -> (i32, i32) {
    %c0_i32 = arith.constant 0 : i32
    return %arg0, %arg2 : i32, i32
  }
  func.func @transform_1(%arg0: i32, %arg1: i32, %arg2: i32) -> (i32, i32) {
    %c0_i32 = arith.constant 0 : i32
    return %arg2, %arg1 : i32, i32
  }
  func.func @transform_2(%arg0: i32, %arg1: i32, %arg2: i32) -> (i32, i32) {
    %c0_i32 = arith.constant 0 : i32
    %c0_i32_0 = arith.constant 0 : i32
    return %c0_i32, %arg1 : i32, i32
  }
  func.func @transform_3(%arg0: i32, %arg1: i32, %arg2: i32) -> (i32, i32) {
    %c0_i32 = arith.constant 0 : i32
    return %arg0, %arg1 : i32, i32
  }
}

module attributes {stable_mosaic.version = 11 : i64} {
  func.func @_mm_shift_act_kernel(%arg0: i32, %arg1: i32, %arg2: i32, %arg3: memref<128x512xbf16, #tpu.memory_space<vmem>>, %arg4: memref<512x128xbf16, #tpu.memory_space<vmem>>, %arg5: memref<1x128xf32, #tpu.memory_space<vmem>>, %arg6: memref<128x128xbf16, #tpu.memory_space<vmem>>, %arg7: memref<128x128xf32, #tpu.memory_space<vmem>>) attributes {dimension_semantics = [#tpu.dimension_semantics<parallel>, #tpu.dimension_semantics<parallel>, #tpu.dimension_semantics<arbitrary>], iteration_bounds = array<i64: 1, 1, 5>, scalar_prefetch = 0 : i64, scratch_operands = 1 : i64, tpu.core_type = #tpu.core_type<tc>, window_params = [{transform_indices = @transform_0, window_bounds = array<i64: 128, 512>}, {transform_indices = @transform_1, window_bounds = array<i64: 512, 128>}, {transform_indices = @transform_2, window_bounds = array<i64: 1, 128>}, {transform_indices = @transform_3, window_bounds = array<i64: 128, 128>}]} {
    %c0_i32 = arith.constant 0 : i32
    %0 = arith.cmpi eq, %arg2, %c0_i32 : i32
    %1 = arith.extui %0 : i1 to i32
    %c0_i32_0 = arith.constant 0 : i32
    %2 = arith.cmpi ne, %1, %c0_i32_0 : i32
    scf.if %2 {
      %cst_9 = arith.constant 0.000000e+00 : f32
      %12 = vector.broadcast %cst_9 : f32 to vector<128x128xf32>
      %c0_10 = arith.constant 0 : index
      %c0_11 = arith.constant 0 : index
      %13 = vector.load %arg7[%c0_10, %c0_11] : memref<128x128xf32, #tpu.memory_space<vmem>>, vector<128x128xf32>
      tpu.vector_store %arg7[%c0_10, %c0_11], %12 {strides = array<i32>} : memref<128x128xf32, #tpu.memory_space<vmem>>, vector<128x128xf32>,
    } else {
    }
    %c0 = arith.constant 0 : index
    %c0_1 = arith.constant 0 : index
    %3 = vector.load %arg7[%c0, %c0_1] : memref<128x128xf32, #tpu.memory_space<vmem>>, vector<128x128xf32>
    %c0_2 = arith.constant 0 : index
    %c0_3 = arith.constant 0 : index
    %4 = vector.load %arg3[%c0_2, %c0_3] : memref<128x512xbf16, #tpu.memory_space<vmem>>, vector<128x512xbf16>
    %c0_4 = arith.constant 0 : index
    %c0_5 = arith.constant 0 : index
    %5 = vector.load %arg4[%c0_4, %c0_5] : memref<512x128xbf16, #tpu.memory_space<vmem>>, vector<512x128xbf16>
    %cst = arith.constant dense<0.000000e+00> : vector<128x128xf32>
    %6 = tpu.matmul %4, %5, %cst {dimension_numbers = #tpu.dot_dimension_numbers<[1], [0], [0], [1], [0, 0, 1, 1], [], []>} : vector<128x512xbf16>, vector<512x128xbf16>, vector<128x128xf32> -> vector<128x128xf32>
    %7 = arith.addf %3, %6 : vector<128x128xf32>
    %c0_6 = arith.constant 0 : index
    %c0_7 = arith.constant 0 : index
    %8 = vector.load %arg7[%c0_6, %c0_7] : memref<128x128xf32, #tpu.memory_space<vmem>>, vector<128x128xf32>
    tpu.vector_store %arg7[%c0_6, %c0_7], %7 {strides = array<i32>} : memref<128x128xf32, #tpu.memory_space<vmem>>, vector<128x128xf32>,
    %c4_i32 = arith.constant 4 : i32
    %9 = arith.cmpi eq, %arg2, %c4_i32 : i32
    %10 = arith.extui %9 : i1 to i32
    %c0_i32_8 = arith.constant 0 : i32
    %11 = arith.cmpi ne, %10, %c0_i32_8 : i32
    scf.if %11 {
      %c0_9 = arith.constant 0 : index
      %c0_10 = arith.constant 0 : index
      %12 = vector.load %arg7[%c0_9, %c0_10] : memref<128x128xf32, #tpu.memory_space<vmem>>, vector<128x128xf32>
      %c0_11 = arith.constant 0 : index
      %c0_12 = arith.constant 0 : index
      %13 = vector.load %arg5[%c0_11, %c0_12] : memref<1x128xf32, #tpu.memory_space<vmem>>, vector<1x128xf32>
      %14 = vector.broadcast %13 : vector<1x128xf32> to vector<128x128xf32>
      %15 = arith.addf %12, %14 : vector<128x128xf32>
      %cst_13 = arith.constant 0.000000e+00 : f32
      %16 = vector.broadcast %cst_13 : f32 to vector<128x128xf32>
      %17 = arith.maximumf %15, %16 : vector<128x128xf32>
      %18 = arith.truncf %17 : vector<128x128xf32> to vector<128x128xbf16>
      %c0_14 = arith.constant 0 : index
      %c0_15 = arith.constant 0 : index
      %19 = vector.load %arg6[%c0_14, %c0_15] : memref<128x128xbf16, #tpu.memory_space<vmem>>, vector<128x128xbf16>
      tpu.vector_store %arg6[%c0_14, %c0_15], %18 {strides = array<i32>} : memref<128x128xbf16, #tpu.memory_space<vmem>>, vector<128x128xbf16>,
    } else {
    }
    return
  }
  func.func @transform_0(%arg0: i32, %arg1: i32, %arg2: i32) -> (i32, i32) {
    %c0_i32 = arith.constant 0 : i32
    return %arg0, %arg2 : i32, i32
  }
  func.func @transform_1(%arg0: i32, %arg1: i32, %arg2: i32) -> (i32, i32) {
    %c0_i32 = arith.constant 0 : i32
    return %arg2, %arg1 : i32, i32
  }
  func.func @transform_2(%arg0: i32, %arg1: i32, %arg2: i32) -> (i32, i32) {
    %c0_i32 = arith.constant 0 : i32
    %c0_i32_0 = arith.constant 0 : i32
    return %c0_i32, %arg1 : i32, i32
  }
  func.func @transform_3(%arg0: i32, %arg1: i32, %arg2: i32) -> (i32, i32) {
    %c0_i32 = arith.constant 0 : i32
    return %arg0, %arg1 : i32, i32
  }
}

module attributes {stable_mosaic.version = 11 : i64} {
  func.func @_mm_shift_act_kernel(%arg0: i32, %arg1: i32, %arg2: i32, %arg3: memref<128x256xbf16, #tpu.memory_space<vmem>>, %arg4: memref<256x128xbf16, #tpu.memory_space<vmem>>, %arg5: memref<1x128xf32, #tpu.memory_space<vmem>>, %arg6: memref<128x128xbf16, #tpu.memory_space<vmem>>, %arg7: memref<128x128xf32, #tpu.memory_space<vmem>>) attributes {dimension_semantics = [#tpu.dimension_semantics<parallel>, #tpu.dimension_semantics<parallel>, #tpu.dimension_semantics<arbitrary>], iteration_bounds = array<i64: 1, 1, 5>, scalar_prefetch = 0 : i64, scratch_operands = 1 : i64, tpu.core_type = #tpu.core_type<tc>, window_params = [{transform_indices = @transform_0, window_bounds = array<i64: 128, 256>}, {transform_indices = @transform_1, window_bounds = array<i64: 256, 128>}, {transform_indices = @transform_2, window_bounds = array<i64: 1, 128>}, {transform_indices = @transform_3, window_bounds = array<i64: 128, 128>}]} {
    %c0_i32 = arith.constant 0 : i32
    %0 = arith.cmpi eq, %arg2, %c0_i32 : i32
    %1 = arith.extui %0 : i1 to i32
    %c0_i32_0 = arith.constant 0 : i32
    %2 = arith.cmpi ne, %1, %c0_i32_0 : i32
    scf.if %2 {
      %cst_9 = arith.constant 0.000000e+00 : f32
      %12 = vector.broadcast %cst_9 : f32 to vector<128x128xf32>
      %c0_10 = arith.constant 0 : index
      %c0_11 = arith.constant 0 : index
      %13 = vector.load %arg7[%c0_10, %c0_11] : memref<128x128xf32, #tpu.memory_space<vmem>>, vector<128x128xf32>
      tpu.vector_store %arg7[%c0_10, %c0_11], %12 {strides = array<i32>} : memref<128x128xf32, #tpu.memory_space<vmem>>, vector<128x128xf32>,
    } else {
    }
    %c0 = arith.constant 0 : index
    %c0_1 = arith.constant 0 : index
    %3 = vector.load %arg7[%c0, %c0_1] : memref<128x128xf32, #tpu.memory_space<vmem>>, vector<128x128xf32>
    %c0_2 = arith.constant 0 : index
    %c0_3 = arith.constant 0 : index
    %4 = vector.load %arg3[%c0_2, %c0_3] : memref<128x256xbf16, #tpu.memory_space<vmem>>, vector<128x256xbf16>
    %c0_4 = arith.constant 0 : index
    %c0_5 = arith.constant 0 : index
    %5 = vector.load %arg4[%c0_4, %c0_5] : memref<256x128xbf16, #tpu.memory_space<vmem>>, vector<256x128xbf16>
    %cst = arith.constant dense<0.000000e+00> : vector<128x128xf32>
    %6 = tpu.matmul %4, %5, %cst {dimension_numbers = #tpu.dot_dimension_numbers<[1], [0], [0], [1], [0, 0, 1, 1], [], []>} : vector<128x256xbf16>, vector<256x128xbf16>, vector<128x128xf32> -> vector<128x128xf32>
    %7 = arith.addf %3, %6 : vector<128x128xf32>
    %c0_6 = arith.constant 0 : index
    %c0_7 = arith.constant 0 : index
    %8 = vector.load %arg7[%c0_6, %c0_7] : memref<128x128xf32, #tpu.memory_space<vmem>>, vector<128x128xf32>
    tpu.vector_store %arg7[%c0_6, %c0_7], %7 {strides = array<i32>} : memref<128x128xf32, #tpu.memory_space<vmem>>, vector<128x128xf32>,
    %c4_i32 = arith.constant 4 : i32
    %9 = arith.cmpi eq, %arg2, %c4_i32 : i32
    %10 = arith.extui %9 : i1 to i32
    %c0_i32_8 = arith.constant 0 : i32
    %11 = arith.cmpi ne, %10, %c0_i32_8 : i32
    scf.if %11 {
      %c0_9 = arith.constant 0 : index
      %c0_10 = arith.constant 0 : index
      %12 = vector.load %arg7[%c0_9, %c0_10] : memref<128x128xf32, #tpu.memory_space<vmem>>, vector<128x128xf32>
      %c0_11 = arith.constant 0 : index
      %c0_12 = arith.constant 0 : index
      %13 = vector.load %arg5[%c0_11, %c0_12] : memref<1x128xf32, #tpu.memory_space<vmem>>, vector<1x128xf32>
      %14 = vector.broadcast %13 : vector<1x128xf32> to vector<128x128xf32>
      %15 = arith.addf %12, %14 : vector<128x128xf32>
      %cst_13 = arith.constant 0.000000e+00 : f32
      %16 = vector.broadcast %cst_13 : f32 to vector<128x128xf32>
      %17 = arith.maximumf %15, %16 : vector<128x128xf32>
      %18 = arith.truncf %17 : vector<128x128xf32> to vector<128x128xbf16>
      %c0_14 = arith.constant 0 : index
      %c0_15 = arith.constant 0 : index
      %19 = vector.load %arg6[%c0_14, %c0_15] : memref<128x128xbf16, #tpu.memory_space<vmem>>, vector<128x128xbf16>
      tpu.vector_store %arg6[%c0_14, %c0_15], %18 {strides = array<i32>} : memref<128x128xbf16, #tpu.memory_space<vmem>>, vector<128x128xbf16>,
    } else {
    }
    return
  }
  func.func @transform_0(%arg0: i32, %arg1: i32, %arg2: i32) -> (i32, i32) {
    %c0_i32 = arith.constant 0 : i32
    return %arg0, %arg2 : i32, i32
  }
  func.func @transform_1(%arg0: i32, %arg1: i32, %arg2: i32) -> (i32, i32) {
    %c0_i32 = arith.constant 0 : i32
    return %arg2, %arg1 : i32, i32
  }
  func.func @transform_2(%arg0: i32, %arg1: i32, %arg2: i32) -> (i32, i32) {
    %c0_i32 = arith.constant 0 : i32
    %c0_i32_0 = arith.constant 0 : i32
    return %c0_i32, %arg1 : i32, i32
  }
  func.func @transform_3(%arg0: i32, %arg1: i32, %arg2: i32) -> (i32, i32) {
    %c0_i32 = arith.constant 0 : i32
    return %arg0, %arg1 : i32, i32
  }
}

module attributes {stable_mosaic.version = 11 : i64} {
  func.func @_cam_kernel(%arg0: i32, %arg1: memref<1x64x128xbf16, #tpu.memory_space<vmem>>, %arg2: memref<1xf32, #tpu.memory_space<smem>>, %arg3: memref<1x64x128xbf16, #tpu.memory_space<vmem>>) attributes {dimension_semantics = [#tpu.dimension_semantics<parallel>], iteration_bounds = array<i64: 2>, scalar_prefetch = 0 : i64, scratch_operands = 0 : i64, tpu.core_type = #tpu.core_type<tc>, window_params = [{transform_indices = @transform_0, window_bounds = array<i64: 1, 64, 128>}, {transform_indices = @transform_1, window_bounds = array<i64: 1>}, {transform_indices = @transform_2, window_bounds = array<i64: 1, 64, 128>}]} {
    %c0 = arith.constant 0 : index
    %c0_0 = arith.constant 0 : index
    %c0_1 = arith.constant 0 : index
    %0 = vector.load %arg1[%c0, %c0_0, %c0_1] : memref<1x64x128xbf16, #tpu.memory_space<vmem>>, vector<1x64x128xbf16>
    %1 = vector.shape_cast %0 : vector<1x64x128xbf16> to vector<64x128xbf16>
    %cst = arith.constant dense<0.000000e+00> : vector<128x128xf32>
    %2 = tpu.matmul %1, %1, %cst {dimension_numbers = #tpu.dot_dimension_numbers<[0], [0], [1], [1], [0, 1, 1, 1], [], []>} : vector<64x128xbf16>, vector<64x128xbf16>, vector<128x128xf32> -> vector<128x128xf32>
    %cst_2 = arith.constant dense<0x7F800000> : vector<128xf32>
    %3 = vector.multi_reduction <minimumf>, %2, %cst_2 [1] : vector<128x128xf32> to vector<128xf32>
    %4 = vector.shape_cast %3 : vector<128xf32> to vector<128x1xf32>
    %5 = vector.broadcast %4 : vector<128x1xf32> to vector<128x128xf32>
    %6 = arith.subf %5, %2 : vector<128x128xf32>
    %7 = math.exp %6 : vector<128x128xf32>
    %cst_3 = arith.constant dense<0.000000e+00> : vector<128xf32>
    %8 = vector.multi_reduction <add>, %7, %cst_3 [1] : vector<128x128xf32> to vector<128xf32>
    %9 = vector.shape_cast %8 : vector<128xf32> to vector<128x1xf32>
    %10 = tpu.reciprocal %9 {approx = true} : vector<128x1xf32> -> vector<128x1xf32>
    %11 = vector.broadcast %10 : vector<128x1xf32> to vector<128x128xf32>
    %12 = arith.mulf %7, %11 : vector<128x128xf32>
    %13 = arith.truncf %12 : vector<128x128xf32> to vector<128x128xbf16>
    %cst_4 = arith.constant dense<0.000000e+00> : vector<64x128xf32>
    %14 = tpu.matmul %1, %13, %cst_4 {dimension_numbers = #tpu.dot_dimension_numbers<[1], [1], [0], [0], [0, 0, 1, 0], [], []>} : vector<64x128xbf16>, vector<128x128xbf16>, vector<64x128xf32> -> vector<64x128xf32>
    %c0_5 = arith.constant 0 : index
    %15 = memref.load %arg2[%c0_5] : memref<1xf32, #tpu.memory_space<smem>>
    %16 = vector.broadcast %15 : f32 to vector<64x128xf32>
    %17 = arith.mulf %16, %14 : vector<64x128xf32>
    %18 = arith.extf %1 : vector<64x128xbf16> to vector<64x128xf32>
    %19 = arith.addf %17, %18 : vector<64x128xf32>
    %20 = arith.truncf %19 : vector<64x128xf32> to vector<64x128xbf16>
    %c0_6 = arith.constant 0 : index
    %c0_7 = arith.constant 0 : index
    %c0_8 = arith.constant 0 : index
    %21 = vector.load %arg3[%c0_6, %c0_7, %c0_8] : memref<1x64x128xbf16, #tpu.memory_space<vmem>>, vector<1x64x128xbf16>
    %22 = vector.shape_cast %21 : vector<1x64x128xbf16> to vector<64x128xbf16>
    %23 = vector.shape_cast %20 : vector<64x128xbf16> to vector<1x64x128xbf16>
    tpu.vector_store %arg3[%c0_6, %c0_7, %c0_8], %23 {strides = array<i32>} : memref<1x64x128xbf16, #tpu.memory_space<vmem>>, vector<1x64x128xbf16>,
    return
  }
  func.func @transform_0(%arg0: i32) -> (i32, i32, i32) {
    %c0_i32 = arith.constant 0 : i32
    %c0_i32_0 = arith.constant 0 : i32
    %c0_i32_1 = arith.constant 0 : i32
    return %arg0, %c0_i32, %c0_i32_0 : i32, i32, i32
  }
  func.func @transform_1(%arg0: i32) -> i32 {
    %c0_i32 = arith.constant 0 : i32
    %c0_i32_0 = arith.constant 0 : i32
    return %c0_i32 : i32
  }
  func.func @transform_2(%arg0: i32) -> (i32, i32, i32) {
    %c0_i32 = arith.constant 0 : i32
    %c0_i32_0 = arith.constant 0 : i32
    %c0_i32_1 = arith.constant 0 : i32
    return %arg0, %c0_i32, %c0_i32_0 : i32, i32, i32
  }
}

module attributes {stable_mosaic.version = 11 : i64} {
  func.func @_mm_shift_act_kernel(%arg0: i32, %arg1: i32, %arg2: i32, %arg3: memref<128x128xbf16, #tpu.memory_space<vmem>>, %arg4: memref<128x128xbf16, #tpu.memory_space<vmem>>, %arg5: memref<1x128xf32, #tpu.memory_space<vmem>>, %arg6: memref<128x128xf32, #tpu.memory_space<vmem>>, %arg7: memref<128x128xf32, #tpu.memory_space<vmem>>) attributes {dimension_semantics = [#tpu.dimension_semantics<parallel>, #tpu.dimension_semantics<parallel>, #tpu.dimension_semantics<arbitrary>], iteration_bounds = array<i64: 1, 1, 1>, scalar_prefetch = 0 : i64, scratch_operands = 1 : i64, tpu.core_type = #tpu.core_type<tc>, window_params = [{transform_indices = @transform_0, window_bounds = array<i64: 128, 128>}, {transform_indices = @transform_1, window_bounds = array<i64: 128, 128>}, {transform_indices = @transform_2, window_bounds = array<i64: 1, 128>}, {transform_indices = @transform_3, window_bounds = array<i64: 128, 128>}]} {
    %c0_i32 = arith.constant 0 : i32
    %0 = arith.cmpi eq, %arg2, %c0_i32 : i32
    %1 = arith.extui %0 : i1 to i32
    %c0_i32_0 = arith.constant 0 : i32
    %2 = arith.cmpi ne, %1, %c0_i32_0 : i32
    scf.if %2 {
      %cst_10 = arith.constant 0.000000e+00 : f32
      %12 = vector.broadcast %cst_10 : f32 to vector<128x128xf32>
      %c0_11 = arith.constant 0 : index
      %c0_12 = arith.constant 0 : index
      %13 = vector.load %arg7[%c0_11, %c0_12] : memref<128x128xf32, #tpu.memory_space<vmem>>, vector<128x128xf32>
      tpu.vector_store %arg7[%c0_11, %c0_12], %12 {strides = array<i32>} : memref<128x128xf32, #tpu.memory_space<vmem>>, vector<128x128xf32>,
    } else {
    }
    %c0 = arith.constant 0 : index
    %c0_1 = arith.constant 0 : index
    %3 = vector.load %arg7[%c0, %c0_1] : memref<128x128xf32, #tpu.memory_space<vmem>>, vector<128x128xf32>
    %c0_2 = arith.constant 0 : index
    %c0_3 = arith.constant 0 : index
    %4 = vector.load %arg3[%c0_2, %c0_3] : memref<128x128xbf16, #tpu.memory_space<vmem>>, vector<128x128xbf16>
    %c0_4 = arith.constant 0 : index
    %c0_5 = arith.constant 0 : index
    %5 = vector.load %arg4[%c0_4, %c0_5] : memref<128x128xbf16, #tpu.memory_space<vmem>>, vector<128x128xbf16>
    %cst = arith.constant dense<0.000000e+00> : vector<128x128xf32>
    %6 = tpu.matmul %4, %5, %cst {dimension_numbers = #tpu.dot_dimension_numbers<[1], [0], [0], [1], [0, 0, 1, 1], [], []>} : vector<128x128xbf16>, vector<128x128xbf16>, vector<128x128xf32> -> vector<128x128xf32>
    %7 = arith.addf %3, %6 : vector<128x128xf32>
    %c0_6 = arith.constant 0 : index
    %c0_7 = arith.constant 0 : index
    %8 = vector.load %arg7[%c0_6, %c0_7] : memref<128x128xf32, #tpu.memory_space<vmem>>, vector<128x128xf32>
    tpu.vector_store %arg7[%c0_6, %c0_7], %7 {strides = array<i32>} : memref<128x128xf32, #tpu.memory_space<vmem>>, vector<128x128xf32>,
    %c0_i32_8 = arith.constant 0 : i32
    %9 = arith.cmpi eq, %arg2, %c0_i32_8 : i32
    %10 = arith.extui %9 : i1 to i32
    %c0_i32_9 = arith.constant 0 : i32
    %11 = arith.cmpi ne, %10, %c0_i32_9 : i32
    scf.if %11 {
      %c0_10 = arith.constant 0 : index
      %c0_11 = arith.constant 0 : index
      %12 = vector.load %arg7[%c0_10, %c0_11] : memref<128x128xf32, #tpu.memory_space<vmem>>, vector<128x128xf32>
      %c0_12 = arith.constant 0 : index
      %c0_13 = arith.constant 0 : index
      %13 = vector.load %arg5[%c0_12, %c0_13] : memref<1x128xf32, #tpu.memory_space<vmem>>, vector<1x128xf32>
      %14 = vector.broadcast %13 : vector<1x128xf32> to vector<128x128xf32>
      %15 = arith.addf %12, %14 : vector<128x128xf32>
      %c0_14 = arith.constant 0 : index
      %c0_15 = arith.constant 0 : index
      %16 = vector.load %arg6[%c0_14, %c0_15] : memref<128x128xf32, #tpu.memory_space<vmem>>, vector<128x128xf32>
      tpu.vector_store %arg6[%c0_14, %c0_15], %15 {strides = array<i32>} : memref<128x128xf32, #tpu.memory_space<vmem>>, vector<128x128xf32>,
    } else {
    }
    return
  }
  func.func @transform_0(%arg0: i32, %arg1: i32, %arg2: i32) -> (i32, i32) {
    %c0_i32 = arith.constant 0 : i32
    return %arg0, %arg2 : i32, i32
  }
  func.func @transform_1(%arg0: i32, %arg1: i32, %arg2: i32) -> (i32, i32) {
    %c0_i32 = arith.constant 0 : i32
    return %arg2, %arg1 : i32, i32
  }
  func.func @transform_2(%arg0: i32, %arg1: i32, %arg2: i32) -> (i32, i32) {
    %c0_i32 = arith.constant 0 : i32
    %c0_i32_0 = arith.constant 0 : i32
    return %c0_i32, %arg1 : i32, i32
  }
  func.func @transform_3(%arg0: i32, %arg1: i32, %arg2: i32) -> (i32, i32) {
    %c0_i32 = arith.constant 0 : i32
    return %arg0, %arg1 : i32, i32
  }
}

</mosaic_0001>

<bundles_post_ra>
// kernel: squeeze.1
= control target key start
LH: loop header
LB: loop body
LE: loop exit
PB: predicated region body
PF: predicated region fallthrough
CT: control target
= control target key end

     0   :  { %s2245_s10 = smov 124   ;;  %s2247_s27 = smov 116   ;;  %vm3_vm0 = vcmask 31744   ;;  %s4398_s0 = inlined_call_operand.vmem [shape: f32[2,3,1,32,32], index: 0, kind: input, shape index: {}]   ;;  %s4399_s1 = inlined_call_operand.vmem [shape: f32[2,3,8,4,8,4], index: 1, kind: output, shape index: {}]  }
   0x1   :  { %v2265_v0 = vld [vmem:[%s4398_s0 + $0x10] sm:$0xff]   ;;  %v2270_v1 = vld [vmem:[%s4398_s0] sm:$0xff]   ;;  %v2279_v2 = vld [vmem:[%s4398_s0 + $0x18] sm:$0xff]   ;;  %s2248_s6 = smov 112   ;;  %s2249_s5 = smov 108  }
   0x2   :  { %186 = vrot.lane.b32.xlu1 %v2265_v0, %s2245_s10  ;;  %168 = vrot.lane.b32.xlu0 %v2270_v1, %s2245_s10  ;;  %v2284_v3 = vld [vmem:[%s4398_s0 + $0x8] sm:$0xff]   ;;  %v2298_v5 = vld [vmem:[%s4398_s0 + $0x20] sm:$0xff]   ;;  %s2250_s30 = smov 104   ;;  %s2251_s12 = smov 100  }
   0x3   :  { %v2293_v4 = vld [vmem:[%s4398_s0 + $0x28] sm:$0xff]   ;;  %v2307_v6 = vld [vmem:[%s4398_s0 + $0x38] sm:$0xff]   ;;  %v2312_v7 = vld [vmem:[%s4398_s0 + $0x30] sm:$0xff]  }
   0x4   :  { %v2321_v8 = vld [vmem:[%s4398_s0 + $0x48] sm:$0xff]   ;;  %v2326_v9 = vld [vmem:[%s4398_s0 + $0x40] sm:$0xff]   ;;  %v2335_v10 = vld [vmem:[%s4398_s0 + $0x58] sm:$0xff]  }
   0x5   :  { %v2340_v11 = vld [vmem:[%s4398_s0 + $0x50] sm:$0xff]   ;;  %v2349_v12 = vld [vmem:[%s4398_s0 + $0x68] sm:$0xff]   ;;  %v2354_v13 = vld [vmem:[%s4398_s0 + $0x60] sm:$0xff]  }
   0x6   :  { %195 = vrot.lane.b32.xlu1 %v2279_v2, %s2245_s10  ;;  %177 = vrot.lane.b32.xlu0 %v2284_v3, %s2245_s10  ;;  %v2363_v14 = vld [vmem:[%s4398_s0 + $0x78] sm:$0xff]   ;;  %v2368_v15 = vld [vmem:[%s4398_s0 + $0x70] sm:$0xff]  }
   0x7   :  { %v2377_v16 = vld [vmem:[%s4398_s0 + $0x88] sm:$0xff]   ;;  %v2382_v17 = vld [vmem:[%s4398_s0 + $0x80] sm:$0xff]   ;;  %v2391_v18 = vld [vmem:[%s4398_s0 + $0x98] sm:$0xff]  }
   0x8   :  { %v2396_v19 = vld [vmem:[%s4398_s0 + $0x90] sm:$0xff]   ;;  %v2405_v20 = vld [vmem:[%s4398_s0 + $0xa8] sm:$0xff]   ;;  %v2410_v21 = vld [vmem:[%s4398_s0 + $0xa0] sm:$0xff]  }
   0x9   :  { %v2419_v22 = vld [vmem:[%s4398_s0 + $0xb8] sm:$0xff]   ;;  %v2424_v23 = vld [vmem:[%s4398_s0 + $0xb0] sm:$0xff]   ;;  %v2713_v48 = vld [vmem:[%s4398_s0 + $0x8] sm:$0xff]  }
   0xa   :  { %213 = vrot.lane.b32.xlu1 %v2293_v4, %s2245_s10  ;;  %204 = vrot.lane.b32.xlu0 %v2298_v5, %s2245_s10  ;;  %v2718_v49 = vld [vmem:[%s4398_s0] sm:$0xff]   ;;  %1673 = vst.msk [vmem:[%s4399_s1 + $0x40] ss:$8 sm:$0xf] %vm3_vm0, %v2713_v48  }
   0xb   :  { %4 = vst.msk [vmem:[%s4399_s1] ss:$8 sm:$0xf] %vm3_vm0, %v2718_v49   ;;  %5 = vst.msk [vmem:[%s4399_s1] ss:$8 sm:$0xf0] %vm3_vm0, %v2718_v49  }
   0xc   :  { %1674 = vst.msk [vmem:[%s4399_s1 + $0x40] ss:$8 sm:$0xf0] %vm3_vm0, %v2713_v48   ;;  %v2763_v52 = vld [vmem:[%s4398_s0 + $0x18] sm:$0xff]   ;;  %v2768_v53 = vld [vmem:[%s4398_s0 + $0x10] sm:$0xff]   ;;  %v2813_v56 = vld [vmem:[%s4398_s0 + $0x28] sm:$0xff]  }
   0xd   :  { %1676 = vst.msk [vmem:[%s4399_s1 + $0x80] ss:$8 sm:$0xf] %vm3_vm0, %v2768_v53   ;;  %1677 = vst.msk [vmem:[%s4399_s1 + $0x80] ss:$8 sm:$0xf0] %vm3_vm0, %v2768_v53  }
   0xe   :  { %231 = vrot.lane.b32.xlu1 %v2307_v6, %s2245_s10  ;;  %222 = vrot.lane.b32.xlu0 %v2312_v7, %s2245_s10  ;;  %1679 = vst.msk [vmem:[%s4399_s1 + $0xc0] ss:$8 sm:$0xf] %vm3_vm0, %v2763_v52   ;;  %1680 = vst.msk [vmem:[%s4399_s1 + $0xc0] ss:$8 sm:$0xf0] %vm3_vm0, %v2763_v52  }
   0xf   :  { %v2818_v57 = vld [vmem:[%s4398_s0 + $0x20] sm:$0xff]   ;;  %1685 = vst.msk [vmem:[%s4399_s1 + $0x140] ss:$8 sm:$0xf] %vm3_vm0, %v2813_v56   ;;  %v2863_v60 = vld [vmem:[%s4398_s0 + $0x38] sm:$0xff]   ;;  %v2868_v61 = vld [vmem:[%s4398_s0 + $0x30] sm:$0xff]  }
  0x10   :  { %1682 = vst.msk [vmem:[%s4399_s1 + $0x100] ss:$8 sm:$0xf] %vm3_vm0, %v2818_v57   ;;  %1683 = vst.msk [vmem:[%s4399_s1 + $0x100] ss:$8 sm:$0xf0] %vm3_vm0, %v2818_v57  }
  0x11   :  { %1686 = vst.msk [vmem:[%s4399_s1 + $0x140] ss:$8 sm:$0xf0] %vm3_vm0, %v2813_v56   ;;  %1688 = vst.msk [vmem:[%s4399_s1 + $0x180] ss:$8 sm:$0xf] %vm3_vm0, %v2868_v61  }
  0x12   :  { %249 = vrot.lane.b32.xlu1 %v2321_v8, %s2245_s10  ;;  %240 = vrot.lane.b32.xlu0 %v2326_v9, %s2245_s10  ;;  %1689 = vst.msk [vmem:[%s4399_s1 + $0x180] ss:$8 sm:$0xf0] %vm3_vm0, %v2868_v61   ;;  %1691 = vst.msk [vmem:[%s4399_s1 + $0x1c0] ss:$8 sm:$0xf] %vm3_vm0, %v2863_v60  }
  0x13   :  { %1692 = vst.msk [vmem:[%s4399_s1 + $0x1c0] ss:$8 sm:$0xf0] %vm3_vm0, %v2863_v60  }
  0x16   :  { %267 = vrot.lane.b32.xlu1 %v2335_v10, %s2245_s10  ;;  %258 = vrot.lane.b32.xlu0 %v2340_v11, %s2245_s10 }
  0x1a   :  { %285 = vrot.lane.b32.xlu1 %v2349_v12, %s2245_s10  ;;  %276 = vrot.lane.b32.xlu0 %v2354_v13, %s2245_s10 }
  0x1e   :  { %303 = vrot.lane.b32.xlu1 %v2363_v14, %s2245_s10  ;;  %294 = vrot.lane.b32.xlu0 %v2368_v15, %s2245_s10 }
  0x22   :  { %321 = vrot.lane.b32.xlu1 %v2377_v16, %s2245_s10  ;;  %312 = vrot.lane.b32.xlu0 %v2382_v17, %s2245_s10 }
  0x26   :  { %339 = vrot.lane.b32.xlu1 %v2391_v18, %s2245_s10  ;;  %330 = vrot.lane.b32.xlu0 %v2396_v19, %s2245_s10 }
  0x2a   :  { %357 = vrot.lane.b32.xlu1 %v2405_v20, %s2245_s10  ;;  %348 = vrot.lane.b32.xlu0 %v2410_v21, %s2245_s10 }
  0x2e   :  { %375 = vrot.lane.b32.xlu1 %v2419_v22, %s2245_s10  ;;  %366 = vrot.lane.b32.xlu0 %v2424_v23, %s2245_s10  ;;  %s2246_s10 = smov 120  }
  0x32   :  { %392 = vrot.lane.b32.xlu1 %v2284_v3, %s2246_s10  ;;  %383 = vrot.lane.b32.xlu0 %v2270_v1, %s2246_s10 }
  0x36   :  { %410 = vrot.lane.b32.xlu1 %v2279_v2, %s2246_s10  ;;  %401 = vrot.lane.b32.xlu0 %v2265_v0, %s2246_s10 }
  0x3a   :  { %428 = vrot.lane.b32.xlu1 %v2293_v4, %s2246_s10  ;;  %419 = vrot.lane.b32.xlu0 %v2298_v5, %s2246_s10 }
  0x3e   :  { %446 = vrot.lane.b32.xlu1 %v2307_v6, %s2246_s10  ;;  %437 = vrot.lane.b32.xlu0 %v2312_v7, %s2246_s10 }
  0x42   :  { %464 = vrot.lane.b32.xlu1 %v2321_v8, %s2246_s10  ;;  %455 = vrot.lane.b32.xlu0 %v2326_v9, %s2246_s10 }
  0x46   :  { %482 = vrot.lane.b32.xlu1 %v2335_v10, %s2246_s10  ;;  %473 = vrot.lane.b32.xlu0 %v2340_v11, %s2246_s10 }
  0x4a   :  { %500 = vrot.lane.b32.xlu1 %v2349_v12, %s2246_s10  ;;  %491 = vrot.lane.b32.xlu0 %v2354_v13, %s2246_s10 }
  0x4e   :  { %518 = vrot.lane.b32.xlu1 %v2363_v14, %s2246_s10  ;;  %509 = vrot.lane.b32.xlu0 %v2368_v15, %s2246_s10 }
  0x52   :  { %536 = vrot.lane.b32.xlu1 %v2377_v16, %s2246_s10  ;;  %527 = vrot.lane.b32.xlu0 %v2382_v17, %s2246_s10 }
  0x56   :  { %554 = vrot.lane.b32.xlu1 %v2391_v18, %s2246_s10  ;;  %545 = vrot.lane.b32.xlu0 %v2396_v19, %s2246_s10 }
  0x5a   :  { %572 = vrot.lane.b32.xlu1 %v2405_v20, %s2246_s10  ;;  %563 = vrot.lane.b32.xlu0 %v2410_v21, %s2246_s10 }
  0x5e   :  { %590 = vrot.lane.b32.xlu1 %v2419_v22, %s2246_s10  ;;  %581 = vrot.lane.b32.xlu0 %v2424_v23, %s2246_s10 }
  0x62   :  { %607 = vrot.lane.b32.xlu1 %v2284_v3, %s2247_s27  ;;  %598 = vrot.lane.b32.xlu0 %v2270_v1, %s2247_s27 }
  0x66   :  { %625 = vrot.lane.b32.xlu1 %v2279_v2, %s2247_s27  ;;  %616 = vrot.lane.b32.xlu0 %v2265_v0, %s2247_s27 }
  0x6a   :  { %643 = vrot.lane.b32.xlu1 %v2293_v4, %s2247_s27  ;;  %634 = vrot.lane.b32.xlu0 %v2298_v5, %s2247_s27 }
  0x6e   :  { %661 = vrot.lane.b32.xlu1 %v2307_v6, %s2247_s27  ;;  %652 = vrot.lane.b32.xlu0 %v2312_v7, %s2247_s27 }
  0x72   :  { %679 = vrot.lane.b32.xlu1 %v2321_v8, %s2247_s27  ;;  %670 = vrot.lane.b32.xlu0 %v2326_v9, %s2247_s27 }
  0x74   :  { %v187_v24 = vpop.permute.xlu1 %186   ;;  %v169_v25 = vpop.permute.xlu0 %168  }
  0x75   :  { %1747 = vst.msk [vmem:[%s4399_s1 + $0x81] ss:$8 sm:$0xf] %vm3_vm0, %v187_v24   ;;  %1748 = vst.msk [vmem:[%s4399_s1 + $0x81] ss:$8 sm:$0xf0] %vm3_vm0, %v187_v24  }
  0x76   :  { %1741 = vst.msk [vmem:[%s4399_s1 + $0x1] ss:$8 sm:$0xf] %vm3_vm0, %v169_v25   ;;  %1742 = vst.msk [vmem:[%s4399_s1 + $0x1] ss:$8 sm:$0xf0] %vm3_vm0, %v169_v25   ;;  %697 = vrot.lane.b32.xlu1 %v2335_v10, %s2247_s27  ;;  %688 = vrot.lane.b32.xlu0 %v2340_v11, %s2247_s27 }
  0x77   :  { %v2913_v24 = vld [vmem:[%s4398_s0 + $0x48] sm:$0xff]   ;;  %v2918_v25 = vld [vmem:[%s4398_s0 + $0x40] sm:$0xff]  }
  0x78   :  { %v196_v26 = vpop.permute.xlu1 %195   ;;  %v178_v27 = vpop.permute.xlu0 %177   ;;  %1694 = vst.msk [vmem:[%s4399_s1 + $0x200] ss:$8 sm:$0xf] %vm3_vm0, %v2918_v25   ;;  %1695 = vst.msk [vmem:[%s4399_s1 + $0x200] ss:$8 sm:$0xf0] %vm3_vm0, %v2918_v25  }
  0x79   :  { %1750 = vst.msk [vmem:[%s4399_s1 + $0xc1] ss:$8 sm:$0xf] %vm3_vm0, %v196_v26   ;;  %1751 = vst.msk [vmem:[%s4399_s1 + $0xc1] ss:$8 sm:$0xf0] %vm3_vm0, %v196_v26  }
  0x7a   :  { %1744 = vst.msk [vmem:[%s4399_s1 + $0x41] ss:$8 sm:$0xf] %vm3_vm0, %v178_v27   ;;  %1745 = vst.msk [vmem:[%s4399_s1 + $0x41] ss:$8 sm:$0xf0] %vm3_vm0, %v178_v27   ;;  %715 = vrot.lane.b32.xlu1 %v2349_v12, %s2247_s27  ;;  %706 = vrot.lane.b32.xlu0 %v2354_v13, %s2247_s27 }
  0x7b   :  { %1697 = vst.msk [vmem:[%s4399_s1 + $0x240] ss:$8 sm:$0xf] %vm3_vm0, %v2913_v24   ;;  %1698 = vst.msk [vmem:[%s4399_s1 + $0x240] ss:$8 sm:$0xf0] %vm3_vm0, %v2913_v24  }
  0x7c   :  { %v214_v28 = vpop.permute.xlu1 %213   ;;  %v205_v29 = vpop.permute.xlu0 %204  }
  0x7d   :  { %1756 = vst.msk [vmem:[%s4399_s1 + $0x141] ss:$8 sm:$0xf] %vm3_vm0, %v214_v28   ;;  %1757 = vst.msk [vmem:[%s4399_s1 + $0x141] ss:$8 sm:$0xf0] %vm3_vm0, %v214_v28  }
  0x7e   :  { %1753 = vst.msk [vmem:[%s4399_s1 + $0x101] ss:$8 sm:$0xf] %vm3_vm0, %v205_v29   ;;  %1754 = vst.msk [vmem:[%s4399_s1 + $0x101] ss:$8 sm:$0xf0] %vm3_vm0, %v205_v29   ;;  %733 = vrot.lane.b32.xlu1 %v2363_v14, %s2247_s27  ;;  %724 = vrot.lane.b32.xlu0 %v2368_v15, %s2247_s27 }
  0x7f   :  { %v2963_v28 = vld [vmem:[%s4398_s0 + $0x58] sm:$0xff]   ;;  %v2968_v29 = vld [vmem:[%s4398_s0 + $0x50] sm:$0xff]  }
  0x80   :  { %v232_v30 = vpop.permute.xlu1 %231   ;;  %v223_v31 = vpop.permute.xlu0 %222   ;;  %1700 = vst.msk [vmem:[%s4399_s1 + $0x280] ss:$8 sm:$0xf] %vm3_vm0, %v2968_v29   ;;  %1701 = vst.msk [vmem:[%s4399_s1 + $0x280] ss:$8 sm:$0xf0] %vm3_vm0, %v2968_v29  }
  0x81   :  { %1762 = vst.msk [vmem:[%s4399_s1 + $0x1c1] ss:$8 sm:$0xf] %vm3_vm0, %v232_v30   ;;  %1763 = vst.msk [vmem:[%s4399_s1 + $0x1c1] ss:$8 sm:$0xf0] %vm3_vm0, %v232_v30  }
  0x82   :  { %1759 = vst.msk [vmem:[%s4399_s1 + $0x181] ss:$8 sm:$0xf] %vm3_vm0, %v223_v31   ;;  %1760 = vst.msk [vmem:[%s4399_s1 + $0x181] ss:$8 sm:$0xf0] %vm3_vm0, %v223_v31   ;;  %751 = vrot.lane.b32.xlu1 %v2377_v16, %s2247_s27  ;;  %742 = vrot.lane.b32.xlu0 %v2382_v17, %s2247_s27 }
  0x83   :  { %1703 = vst.msk [vmem:[%s4399_s1 + $0x2c0] ss:$8 sm:$0xf] %vm3_vm0, %v2963_v28   ;;  %1704 = vst.msk [vmem:[%s4399_s1 + $0x2c0] ss:$8 sm:$0xf0] %vm3_vm0, %v2963_v28  }
  0x84   :  { %v250_v32 = vpop.permute.xlu1 %249   ;;  %v241_v33 = vpop.permute.xlu0 %240  }
  0x85   :  { %1768 = vst.msk [vmem:[%s4399_s1 + $0x241] ss:$8 sm:$0xf] %vm3_vm0, %v250_v32   ;;  %1769 = vst.msk [vmem:[%s4399_s1 + $0x241] ss:$8 sm:$0xf0] %vm3_vm0, %v250_v32  }
  0x86   :  { %1765 = vst.msk [vmem:[%s4399_s1 + $0x201] ss:$8 sm:$0xf] %vm3_vm0, %v241_v33   ;;  %1766 = vst.msk [vmem:[%s4399_s1 + $0x201] ss:$8 sm:$0xf0] %vm3_vm0, %v241_v33   ;;  %769 = vrot.lane.b32.xlu1 %v2391_v18, %s2247_s27  ;;  %760 = vrot.lane.b32.xlu0 %v2396_v19, %s2247_s27 }
  0x87   :  { %v3013_v32 = vld [vmem:[%s4398_s0 + $0x68] sm:$0xff]   ;;  %v3018_v33 = vld [vmem:[%s4398_s0 + $0x60] sm:$0xff]  }
  0x88   :  { %v268_v34 = vpop.permute.xlu1 %267   ;;  %v259_v35 = vpop.permute.xlu0 %258   ;;  %1706 = vst.msk [vmem:[%s4399_s1 + $0x300] ss:$8 sm:$0xf] %vm3_vm0, %v3018_v33   ;;  %1707 = vst.msk [vmem:[%s4399_s1 + $0x300] ss:$8 sm:$0xf0] %vm3_vm0, %v3018_v33  }
  0x89   :  { %1774 = vst.msk [vmem:[%s4399_s1 + $0x2c1] ss:$8 sm:$0xf] %vm3_vm0, %v268_v34   ;;  %1775 = vst.msk [vmem:[%s4399_s1 + $0x2c1] ss:$8 sm:$0xf0] %vm3_vm0, %v268_v34  }
  0x8a   :  { %1771 = vst.msk [vmem:[%s4399_s1 + $0x281] ss:$8 sm:$0xf] %vm3_vm0, %v259_v35   ;;  %1772 = vst.msk [vmem:[%s4399_s1 + $0x281] ss:$8 sm:$0xf0] %vm3_vm0, %v259_v35   ;;  %787 = vrot.lane.b32.xlu1 %v2405_v20, %s2247_s27  ;;  %778 = vrot.lane.b32.xlu0 %v2410_v21, %s2247_s27 }
  0x8b   :  { %1709 = vst.msk [vmem:[%s4399_s1 + $0x340] ss:$8 sm:$0xf] %vm3_vm0, %v3013_v32   ;;  %1710 = vst.msk [vmem:[%s4399_s1 + $0x340] ss:$8 sm:$0xf0] %vm3_vm0, %v3013_v32  }
  0x8c   :  { %v286_v36 = vpop.permute.xlu1 %285   ;;  %v277_v37 = vpop.permute.xlu0 %276  }
  0x8d   :  { %1780 = vst.msk [vmem:[%s4399_s1 + $0x341] ss:$8 sm:$0xf] %vm3_vm0, %v286_v36   ;;  %1781 = vst.msk [vmem:[%s4399_s1 + $0x341] ss:$8 sm:$0xf0] %vm3_vm0, %v286_v36  }
  0x8e   :  { %1777 = vst.msk [vmem:[%s4399_s1 + $0x301] ss:$8 sm:$0xf] %vm3_vm0, %v277_v37   ;;  %1778 = vst.msk [vmem:[%s4399_s1 + $0x301] ss:$8 sm:$0xf0] %vm3_vm0, %v277_v37   ;;  %805 = vrot.lane.b32.xlu1 %v2419_v22, %s2247_s27  ;;  %796 = vrot.lane.b32.xlu0 %v2424_v23, %s2247_s27 }
  0x8f   :  { %v3063_v36 = vld [vmem:[%s4398_s0 + $0x78] sm:$0xff]   ;;  %v3068_v37 = vld [vmem:[%s4398_s0 + $0x70] sm:$0xff]  }
  0x90   :  { %v304_v38 = vpop.permute.xlu1 %303   ;;  %v295_v39 = vpop.permute.xlu0 %294   ;;  %1712 = vst.msk [vmem:[%s4399_s1 + $0x380] ss:$8 sm:$0xf] %vm3_vm0, %v3068_v37   ;;  %1713 = vst.msk [vmem:[%s4399_s1 + $0x380] ss:$8 sm:$0xf0] %vm3_vm0, %v3068_v37  }
  0x91   :  { %1786 = vst.msk [vmem:[%s4399_s1 + $0x3c1] ss:$8 sm:$0xf] %vm3_vm0, %v304_v38   ;;  %1787 = vst.msk [vmem:[%s4399_s1 + $0x3c1] ss:$8 sm:$0xf0] %vm3_vm0, %v304_v38  }
  0x92   :  { %1783 = vst.msk [vmem:[%s4399_s1 + $0x381] ss:$8 sm:$0xf] %vm3_vm0, %v295_v39   ;;  %1784 = vst.msk [vmem:[%s4399_s1 + $0x381] ss:$8 sm:$0xf0] %vm3_vm0, %v295_v39   ;;  %822 = vrot.lane.b32.xlu1 %v2284_v3, %s2248_s6  ;;  %813 = vrot.lane.b32.xlu0 %v2270_v1, %s2248_s6 }
  0x93   :  { %1715 = vst.msk [vmem:[%s4399_s1 + $0x3c0] ss:$8 sm:$0xf] %vm3_vm0, %v3063_v36   ;;  %1716 = vst.msk [vmem:[%s4399_s1 + $0x3c0] ss:$8 sm:$0xf0] %vm3_vm0, %v3063_v36  }
  0x94   :  { %v322_v40 = vpop.permute.xlu1 %321   ;;  %v313_v41 = vpop.permute.xlu0 %312  }
  0x95   :  { %1792 = vst.msk [vmem:[%s4399_s1 + $0x441] ss:$8 sm:$0xf] %vm3_vm0, %v322_v40   ;;  %1793 = vst.msk [vmem:[%s4399_s1 + $0x441] ss:$8 sm:$0xf0] %vm3_vm0, %v322_v40  }
  0x96   :  { %1789 = vst.msk [vmem:[%s4399_s1 + $0x401] ss:$8 sm:$0xf] %vm3_vm0, %v313_v41   ;;  %1790 = vst.msk [vmem:[%s4399_s1 + $0x401] ss:$8 sm:$0xf0] %vm3_vm0, %v313_v41   ;;  %840 = vrot.lane.b32.xlu1 %v2279_v2, %s2248_s6  ;;  %831 = vrot.lane.b32.xlu0 %v2265_v0, %s2248_s6 }
  0x97   :  { %v3113_v40 = vld [vmem:[%s4398_s0 + $0x88] sm:$0xff]   ;;  %v3118_v41 = vld [vmem:[%s4398_s0 + $0x80] sm:$0xff]  }
  0x98   :  { %v340_v42 = vpop.permute.xlu1 %339   ;;  %v331_v43 = vpop.permute.xlu0 %330   ;;  %1718 = vst.msk [vmem:[%s4399_s1 + $0x400] ss:$8 sm:$0xf] %vm3_vm0, %v3118_v41   ;;  %1719 = vst.msk [vmem:[%s4399_s1 + $0x400] ss:$8 sm:$0xf0] %vm3_vm0, %v3118_v41  }
  0x99   :  { %1798 = vst.msk [vmem:[%s4399_s1 + $0x4c1] ss:$8 sm:$0xf] %vm3_vm0, %v340_v42   ;;  %1799 = vst.msk [vmem:[%s4399_s1 + $0x4c1] ss:$8 sm:$0xf0] %vm3_vm0, %v340_v42  }
  0x9a   :  { %1795 = vst.msk [vmem:[%s4399_s1 + $0x481] ss:$8 sm:$0xf] %vm3_vm0, %v331_v43   ;;  %1796 = vst.msk [vmem:[%s4399_s1 + $0x481] ss:$8 sm:$0xf0] %vm3_vm0, %v331_v43   ;;  %858 = vrot.lane.b32.xlu1 %v2293_v4, %s2248_s6  ;;  %849 = vrot.lane.b32.xlu0 %v2298_v5, %s2248_s6 }
  0x9b   :  { %1721 = vst.msk [vmem:[%s4399_s1 + $0x440] ss:$8 sm:$0xf] %vm3_vm0, %v3113_v40   ;;  %1722 = vst.msk [vmem:[%s4399_s1 + $0x440] ss:$8 sm:$0xf0] %vm3_vm0, %v3113_v40  }
  0x9c   :  { %v358_v44 = vpop.permute.xlu1 %357   ;;  %v349_v45 = vpop.permute.xlu0 %348  }
  0x9d   :  { %1804 = vst.msk [vmem:[%s4399_s1 + $0x541] ss:$8 sm:$0xf] %vm3_vm0, %v358_v44   ;;  %1805 = vst.msk [vmem:[%s4399_s1 + $0x541] ss:$8 sm:$0xf0] %vm3_vm0, %v358_v44  }
  0x9e   :  { %1801 = vst.msk [vmem:[%s4399_s1 + $0x501] ss:$8 sm:$0xf] %vm3_vm0, %v349_v45   ;;  %1802 = vst.msk [vmem:[%s4399_s1 + $0x501] ss:$8 sm:$0xf0] %vm3_vm0, %v349_v45   ;;  %876 = vrot.lane.b32.xlu1 %v2307_v6, %s2248_s6  ;;  %867 = vrot.lane.b32.xlu0 %v2312_v7, %s2248_s6 }
  0x9f   :  { %v3163_v44 = vld [vmem:[%s4398_s0 + $0x98] sm:$0xff]   ;;  %v3168_v45 = vld [vmem:[%s4398_s0 + $0x90] sm:$0xff]  }
  0xa0   :  { %v376_v46 = vpop.permute.xlu1 %375   ;;  %v367_v47 = vpop.permute.xlu0 %366   ;;  %1724 = vst.msk [vmem:[%s4399_s1 + $0x480] ss:$8 sm:$0xf] %vm3_vm0, %v3168_v45   ;;  %1725 = vst.msk [vmem:[%s4399_s1 + $0x480] ss:$8 sm:$0xf0] %vm3_vm0, %v3168_v45  }
  0xa1   :  { %1810 = vst.msk [vmem:[%s4399_s1 + $0x5c1] ss:$8 sm:$0xf] %vm3_vm0, %v376_v46   ;;  %1811 = vst.msk [vmem:[%s4399_s1 + $0x5c1] ss:$8 sm:$0xf0] %vm3_vm0, %v376_v46  }
  0xa2   :  { %1807 = vst.msk [vmem:[%s4399_s1 + $0x581] ss:$8 sm:$0xf] %vm3_vm0, %v367_v47   ;;  %1808 = vst.msk [vmem:[%s4399_s1 + $0x581] ss:$8 sm:$0xf0] %vm3_vm0, %v367_v47   ;;  %894 = vrot.lane.b32.xlu1 %v2321_v8, %s2248_s6  ;;  %885 = vrot.lane.b32.xlu0 %v2326_v9, %s2248_s6 }
  0xa3   :  { %1727 = vst.msk [vmem:[%s4399_s1 + $0x4c0] ss:$8 sm:$0xf] %vm3_vm0, %v3163_v44   ;;  %1728 = vst.msk [vmem:[%s4399_s1 + $0x4c0] ss:$8 sm:$0xf0] %vm3_vm0, %v3163_v44  }
  0xa4   :  { %v393_v50 = vpop.permute.xlu1 %392   ;;  %v384_v51 = vpop.permute.xlu0 %383  }
  0xa5   :  { %1815 = vst.msk [vmem:[%s4399_s1 + $0x42] ss:$8 sm:$0xf] %vm3_vm0, %v393_v50   ;;  %1816 = vst.msk [vmem:[%s4399_s1 + $0x42] ss:$8 sm:$0xf0] %vm3_vm0, %v393_v50  }
  0xa6   :  { %1812 = vst.msk [vmem:[%s4399_s1 + $0x2] ss:$8 sm:$0xf] %vm3_vm0, %v384_v51   ;;  %1813 = vst.msk [vmem:[%s4399_s1 + $0x2] ss:$8 sm:$0xf0] %vm3_vm0, %v384_v51   ;;  %912 = vrot.lane.b32.xlu1 %v2335_v10, %s2248_s6  ;;  %903 = vrot.lane.b32.xlu0 %v2340_v11, %s2248_s6 }
  0xa7   :  { %v3213_v50 = vld [vmem:[%s4398_s0 + $0xa8] sm:$0xff]   ;;  %v3218_v51 = vld [vmem:[%s4398_s0 + $0xa0] sm:$0xff]  }
  0xa8   :  { %v411_v54 = vpop.permute.xlu1 %410   ;;  %v402_v55 = vpop.permute.xlu0 %401   ;;  %1730 = vst.msk [vmem:[%s4399_s1 + $0x500] ss:$8 sm:$0xf] %vm3_vm0, %v3218_v51   ;;  %1731 = vst.msk [vmem:[%s4399_s1 + $0x500] ss:$8 sm:$0xf0] %vm3_vm0, %v3218_v51  }
  0xa9   :  { %1821 = vst.msk [vmem:[%s4399_s1 + $0xc2] ss:$8 sm:$0xf] %vm3_vm0, %v411_v54   ;;  %1822 = vst.msk [vmem:[%s4399_s1 + $0xc2] ss:$8 sm:$0xf0] %vm3_vm0, %v411_v54  }
  0xaa   :  { %1818 = vst.msk [vmem:[%s4399_s1 + $0x82] ss:$8 sm:$0xf] %vm3_vm0, %v402_v55   ;;  %1819 = vst.msk [vmem:[%s4399_s1 + $0x82] ss:$8 sm:$0xf0] %vm3_vm0, %v402_v55   ;;  %930 = vrot.lane.b32.xlu1 %v2349_v12, %s2248_s6  ;;  %921 = vrot.lane.b32.xlu0 %v2354_v13, %s2248_s6 }
  0xab   :  { %1733 = vst.msk [vmem:[%s4399_s1 + $0x540] ss:$8 sm:$0xf] %vm3_vm0, %v3213_v50   ;;  %1734 = vst.msk [vmem:[%s4399_s1 + $0x540] ss:$8 sm:$0xf0] %vm3_vm0, %v3213_v50  }
  0xac   :  { %v429_v58 = vpop.permute.xlu1 %428   ;;  %v420_v59 = vpop.permute.xlu0 %419  }
  0xad   :  { %1827 = vst.msk [vmem:[%s4399_s1 + $0x142] ss:$8 sm:$0xf] %vm3_vm0, %v429_v58   ;;  %1828 = vst.msk [vmem:[%s4399_s1 + $0x142] ss:$8 sm:$0xf0] %vm3_vm0, %v429_v58  }
  0xae   :  { %1824 = vst.msk [vmem:[%s4399_s1 + $0x102] ss:$8 sm:$0xf] %vm3_vm0, %v420_v59   ;;  %1825 = vst.msk [vmem:[%s4399_s1 + $0x102] ss:$8 sm:$0xf0] %vm3_vm0, %v420_v59   ;;  %948 = vrot.lane.b32.xlu1 %v2363_v14, %s2248_s6  ;;  %939 = vrot.lane.b32.xlu0 %v2368_v15, %s2248_s6 }
  0xaf   :  { %v3263_v58 = vld [vmem:[%s4398_s0 + $0xb8] sm:$0xff]   ;;  %v3268_v59 = vld [vmem:[%s4398_s0 + $0xb0] sm:$0xff]  }
  0xb0   :  { %v447_v62 = vpop.permute.xlu1 %446   ;;  %v438_v63 = vpop.permute.xlu0 %437   ;;  %1736 = vst.msk [vmem:[%s4399_s1 + $0x580] ss:$8 sm:$0xf] %vm3_vm0, %v3268_v59   ;;  %1737 = vst.msk [vmem:[%s4399_s1 + $0x580] ss:$8 sm:$0xf0] %vm3_vm0, %v3268_v59  }
  0xb1   :  { %1833 = vst.msk [vmem:[%s4399_s1 + $0x1c2] ss:$8 sm:$0xf] %vm3_vm0, %v447_v62   ;;  %1834 = vst.msk [vmem:[%s4399_s1 + $0x1c2] ss:$8 sm:$0xf0] %vm3_vm0, %v447_v62  }
  0xb2   :  { %1830 = vst.msk [vmem:[%s4399_s1 + $0x182] ss:$8 sm:$0xf] %vm3_vm0, %v438_v63   ;;  %1831 = vst.msk [vmem:[%s4399_s1 + $0x182] ss:$8 sm:$0xf0] %vm3_vm0, %v438_v63   ;;  %966 = vrot.lane.b32.xlu1 %v2377_v16, %s2248_s6  ;;  %957 = vrot.lane.b32.xlu0 %v2382_v17, %s2248_s6 }
  0xb3   :  { %1739 = vst.msk [vmem:[%s4399_s1 + $0x5c0] ss:$8 sm:$0xf] %vm3_vm0, %v3263_v58   ;;  %1740 = vst.msk [vmem:[%s4399_s1 + $0x5c0] ss:$8 sm:$0xf0] %vm3_vm0, %v3263_v58  }
  0xb4   :  { %v465_v26 = vpop.permute.xlu1 %464   ;;  %v456_v27 = vpop.permute.xlu0 %455  }
  0xb5   :  { %1839 = vst.msk [vmem:[%s4399_s1 + $0x242] ss:$8 sm:$0xf] %vm3_vm0, %v465_v26   ;;  %1840 = vst.msk [vmem:[%s4399_s1 + $0x242] ss:$8 sm:$0xf0] %vm3_vm0, %v465_v26  }
  0xb6   :  { %1836 = vst.msk [vmem:[%s4399_s1 + $0x202] ss:$8 sm:$0xf] %vm3_vm0, %v456_v27   ;;  %1837 = vst.msk [vmem:[%s4399_s1 + $0x202] ss:$8 sm:$0xf0] %vm3_vm0, %v456_v27   ;;  %984 = vrot.lane.b32.xlu1 %v2391_v18, %s2248_s6  ;;  %975 = vrot.lane.b32.xlu0 %v2396_v19, %s2248_s6 }
  0xb8   :  { %v483_v30 = vpop.permute.xlu1 %482   ;;  %v474_v31 = vpop.permute.xlu0 %473  }
  0xb9   :  { %1845 = vst.msk [vmem:[%s4399_s1 + $0x2c2] ss:$8 sm:$0xf] %vm3_vm0, %v483_v30   ;;  %1846 = vst.msk [vmem:[%s4399_s1 + $0x2c2] ss:$8 sm:$0xf0] %vm3_vm0, %v483_v30  }
  0xba   :  { %1842 = vst.msk [vmem:[%s4399_s1 + $0x282] ss:$8 sm:$0xf] %vm3_vm0, %v474_v31   ;;  %1843 = vst.msk [vmem:[%s4399_s1 + $0x282] ss:$8 sm:$0xf0] %vm3_vm0, %v474_v31   ;;  %1002 = vrot.lane.b32.xlu1 %v2405_v20, %s2248_s6  ;;  %993 = vrot.lane.b32.xlu0 %v2410_v21, %s2248_s6 }
  0xbc   :  { %v501_v34 = vpop.permute.xlu1 %500   ;;  %v492_v35 = vpop.permute.xlu0 %491  }
  0xbd   :  { %1851 = vst.msk [vmem:[%s4399_s1 + $0x342] ss:$8 sm:$0xf] %vm3_vm0, %v501_v34   ;;  %1852 = vst.msk [vmem:[%s4399_s1 + $0x342] ss:$8 sm:$0xf0] %vm3_vm0, %v501_v34  }
  0xbe   :  { %1848 = vst.msk [vmem:[%s4399_s1 + $0x302] ss:$8 sm:$0xf] %vm3_vm0, %v492_v35   ;;  %1849 = vst.msk [vmem:[%s4399_s1 + $0x302] ss:$8 sm:$0xf0] %vm3_vm0, %v492_v35   ;;  %1020 = vrot.lane.b32.xlu1 %v2419_v22, %s2248_s6  ;;  %1011 = vrot.lane.b32.xlu0 %v2424_v23, %s2248_s6 }
  0xc0   :  { %v519_v38 = vpop.permute.xlu1 %518   ;;  %v510_v39 = vpop.permute.xlu0 %509  }
  0xc1   :  { %1857 = vst.msk [vmem:[%s4399_s1 + $0x3c2] ss:$8 sm:$0xf] %vm3_vm0, %v519_v38   ;;  %1858 = vst.msk [vmem:[%s4399_s1 + $0x3c2] ss:$8 sm:$0xf0] %vm3_vm0, %v519_v38  }
  0xc2   :  { %1854 = vst.msk [vmem:[%s4399_s1 + $0x382] ss:$8 sm:$0xf] %vm3_vm0, %v510_v39   ;;  %1855 = vst.msk [vmem:[%s4399_s1 + $0x382] ss:$8 sm:$0xf0] %vm3_vm0, %v510_v39   ;;  %1037 = vrot.lane.b32.xlu1 %v2284_v3, %s2249_s5  ;;  %1028 = vrot.lane.b32.xlu0 %v2270_v1, %s2249_s5 }
  0xc4   :  { %v537_v42 = vpop.permute.xlu1 %536   ;;  %v528_v43 = vpop.permute.xlu0 %527  }
  0xc5   :  { %1863 = vst.msk [vmem:[%s4399_s1 + $0x442] ss:$8 sm:$0xf] %vm3_vm0, %v537_v42   ;;  %1864 = vst.msk [vmem:[%s4399_s1 + $0x442] ss:$8 sm:$0xf0] %vm3_vm0, %v537_v42  }
  0xc6   :  { %1860 = vst.msk [vmem:[%s4399_s1 + $0x402] ss:$8 sm:$0xf] %vm3_vm0, %v528_v43   ;;  %1861 = vst.msk [vmem:[%s4399_s1 + $0x402] ss:$8 sm:$0xf0] %vm3_vm0, %v528_v43   ;;  %1055 = vrot.lane.b32.xlu1 %v2279_v2, %s2249_s5  ;;  %1046 = vrot.lane.b32.xlu0 %v2265_v0, %s2249_s5 }
  0xc8   :  { %v555_v46 = vpop.permute.xlu1 %554   ;;  %v546_v47 = vpop.permute.xlu0 %545  }
  0xc9   :  { %1869 = vst.msk [vmem:[%s4399_s1 + $0x4c2] ss:$8 sm:$0xf] %vm3_vm0, %v555_v46   ;;  %1870 = vst.msk [vmem:[%s4399_s1 + $0x4c2] ss:$8 sm:$0xf0] %vm3_vm0, %v555_v46  }
  0xca   :  { %1866 = vst.msk [vmem:[%s4399_s1 + $0x482] ss:$8 sm:$0xf] %vm3_vm0, %v546_v47   ;;  %1867 = vst.msk [vmem:[%s4399_s1 + $0x482] ss:$8 sm:$0xf0] %vm3_vm0, %v546_v47   ;;  %1073 = vrot.lane.b32.xlu1 %v2293_v4, %s2249_s5  ;;  %1064 = vrot.lane.b32.xlu0 %v2298_v5, %s2249_s5 }
  0xcc   :  { %v573_v54 = vpop.permute.xlu1 %572   ;;  %v564_v55 = vpop.permute.xlu0 %563  }
  0xcd   :  { %1875 = vst.msk [vmem:[%s4399_s1 + $0x542] ss:$8 sm:$0xf] %vm3_vm0, %v573_v54   ;;  %1876 = vst.msk [vmem:[%s4399_s1 + $0x542] ss:$8 sm:$0xf0] %vm3_vm0, %v573_v54  }
  0xce   :  { %1872 = vst.msk [vmem:[%s4399_s1 + $0x502] ss:$8 sm:$0xf] %vm3_vm0, %v564_v55   ;;  %1873 = vst.msk [vmem:[%s4399_s1 + $0x502] ss:$8 sm:$0xf0] %vm3_vm0, %v564_v55   ;;  %1091 = vrot.lane.b32.xlu1 %v2307_v6, %s2249_s5  ;;  %1082 = vrot.lane.b32.xlu0 %v2312_v7, %s2249_s5 }
  0xd0   :  { %v591_v62 = vpop.permute.xlu1 %590   ;;  %v582_v63 = vpop.permute.xlu0 %581  }
  0xd1   :  { %1881 = vst.msk [vmem:[%s4399_s1 + $0x5c2] ss:$8 sm:$0xf] %vm3_vm0, %v591_v62   ;;  %1882 = vst.msk [vmem:[%s4399_s1 + $0x5c2] ss:$8 sm:$0xf0] %vm3_vm0, %v591_v62  }
  0xd2   :  { %1878 = vst.msk [vmem:[%s4399_s1 + $0x582] ss:$8 sm:$0xf] %vm3_vm0, %v582_v63   ;;  %1879 = vst.msk [vmem:[%s4399_s1 + $0x582] ss:$8 sm:$0xf0] %vm3_vm0, %v582_v63   ;;  %1109 = vrot.lane.b32.xlu1 %v2321_v8, %s2249_s5  ;;  %1100 = vrot.lane.b32.xlu0 %v2326_v9, %s2249_s5 }
  0xd4   :  { %v608_v26 = vpop.permute.xlu1 %607   ;;  %v599_v27 = vpop.permute.xlu0 %598  }
  0xd5   :  { %1886 = vst.msk [vmem:[%s4399_s1 + $0x43] ss:$8 sm:$0xf] %vm3_vm0, %v608_v26   ;;  %1887 = vst.msk [vmem:[%s4399_s1 + $0x43] ss:$8 sm:$0xf0] %vm3_vm0, %v608_v26  }
  0xd6   :  { %1883 = vst.msk [vmem:[%s4399_s1 + $0x3] ss:$8 sm:$0xf] %vm3_vm0, %v599_v27   ;;  %1884 = vst.msk [vmem:[%s4399_s1 + $0x3] ss:$8 sm:$0xf0] %vm3_vm0, %v599_v27   ;;  %1127 = vrot.lane.b32.xlu1 %v2335_v10, %s2249_s5  ;;  %1118 = vrot.lane.b32.xlu0 %v2340_v11, %s2249_s5 }
  0xd8   :  { %v626_v30 = vpop.permute.xlu1 %625   ;;  %v617_v31 = vpop.permute.xlu0 %616  }
  0xd9   :  { %1892 = vst.msk [vmem:[%s4399_s1 + $0xc3] ss:$8 sm:$0xf] %vm3_vm0, %v626_v30   ;;  %1893 = vst.msk [vmem:[%s4399_s1 + $0xc3] ss:$8 sm:$0xf0] %vm3_vm0, %v626_v30  }
  0xda   :  { %1889 = vst.msk [vmem:[%s4399_s1 + $0x83] ss:$8 sm:$0xf] %vm3_vm0, %v617_v31   ;;  %1890 = vst.msk [vmem:[%s4399_s1 + $0x83] ss:$8 sm:$0xf0] %vm3_vm0, %v617_v31   ;;  %1145 = vrot.lane.b32.xlu1 %v2349_v12, %s2249_s5  ;;  %1136 = vrot.lane.b32.xlu0 %v2354_v13, %s2249_s5 }
  0xdc   :  { %v644_v34 = vpop.permute.xlu1 %643   ;;  %v635_v35 = vpop.permute.xlu0 %634  }
  0xdd   :  { %1898 = vst.msk [vmem:[%s4399_s1 + $0x143] ss:$8 sm:$0xf] %vm3_vm0, %v644_v34   ;;  %1899 = vst.msk [vmem:[%s4399_s1 + $0x143] ss:$8 sm:$0xf0] %vm3_vm0, %v644_v34  }
  0xde   :  { %1895 = vst.msk [vmem:[%s4399_s1 + $0x103] ss:$8 sm:$0xf] %vm3_vm0, %v635_v35   ;;  %1896 = vst.msk [vmem:[%s4399_s1 + $0x103] ss:$8 sm:$0xf0] %vm3_vm0, %v635_v35   ;;  %1163 = vrot.lane.b32.xlu1 %v2363_v14, %s2249_s5  ;;  %1154 = vrot.lane.b32.xlu0 %v2368_v15, %s2249_s5 }
  0xe0   :  { %v662_v38 = vpop.permute.xlu1 %661   ;;  %v653_v39 = vpop.permute.xlu0 %652  }
  0xe1   :  { %1904 = vst.msk [vmem:[%s4399_s1 + $0x1c3] ss:$8 sm:$0xf] %vm3_vm0, %v662_v38   ;;  %1905 = vst.msk [vmem:[%s4399_s1 + $0x1c3] ss:$8 sm:$0xf0] %vm3_vm0, %v662_v38  }
  0xe2   :  { %1901 = vst.msk [vmem:[%s4399_s1 + $0x183] ss:$8 sm:$0xf] %vm3_vm0, %v653_v39   ;;  %1902 = vst.msk [vmem:[%s4399_s1 + $0x183] ss:$8 sm:$0xf0] %vm3_vm0, %v653_v39   ;;  %1181 = vrot.lane.b32.xlu1 %v2377_v16, %s2249_s5  ;;  %1172 = vrot.lane.b32.xlu0 %v2382_v17, %s2249_s5 }
  0xe4   :  { %v680_v42 = vpop.permute.xlu1 %679   ;;  %v671_v43 = vpop.permute.xlu0 %670  }
  0xe5   :  { %1910 = vst.msk [vmem:[%s4399_s1 + $0x243] ss:$8 sm:$0xf] %vm3_vm0, %v680_v42   ;;  %1911 = vst.msk [vmem:[%s4399_s1 + $0x243] ss:$8 sm:$0xf0] %vm3_vm0, %v680_v42  }
  0xe6   :  { %1907 = vst.msk [vmem:[%s4399_s1 + $0x203] ss:$8 sm:$0xf] %vm3_vm0, %v671_v43   ;;  %1908 = vst.msk [vmem:[%s4399_s1 + $0x203] ss:$8 sm:$0xf0] %vm3_vm0, %v671_v43   ;;  %1199 = vrot.lane.b32.xlu1 %v2391_v18, %s2249_s5  ;;  %1190 = vrot.lane.b32.xlu0 %v2396_v19, %s2249_s5 }
  0xe8   :  { %v698_v46 = vpop.permute.xlu1 %697   ;;  %v689_v47 = vpop.permute.xlu0 %688  }
  0xe9   :  { %1916 = vst.msk [vmem:[%s4399_s1 + $0x2c3] ss:$8 sm:$0xf] %vm3_vm0, %v698_v46   ;;  %1917 = vst.msk [vmem:[%s4399_s1 + $0x2c3] ss:$8 sm:$0xf0] %vm3_vm0, %v698_v46  }
  0xea   :  { %1913 = vst.msk [vmem:[%s4399_s1 + $0x283] ss:$8 sm:$0xf] %vm3_vm0, %v689_v47   ;;  %1914 = vst.msk [vmem:[%s4399_s1 + $0x283] ss:$8 sm:$0xf0] %vm3_vm0, %v689_v47   ;;  %1217 = vrot.lane.b32.xlu1 %v2405_v20, %s2249_s5  ;;  %1208 = vrot.lane.b32.xlu0 %v2410_v21, %s2249_s5 }
  0xec   :  { %v716_v54 = vpop.permute.xlu1 %715   ;;  %v707_v55 = vpop.permute.xlu0 %706  }
  0xed   :  { %1922 = vst.msk [vmem:[%s4399_s1 + $0x343] ss:$8 sm:$0xf] %vm3_vm0, %v716_v54   ;;  %1923 = vst.msk [vmem:[%s4399_s1 + $0x343] ss:$8 sm:$0xf0] %vm3_vm0, %v716_v54  }
  0xee   :  { %1919 = vst.msk [vmem:[%s4399_s1 + $0x303] ss:$8 sm:$0xf] %vm3_vm0, %v707_v55   ;;  %1920 = vst.msk [vmem:[%s4399_s1 + $0x303] ss:$8 sm:$0xf0] %vm3_vm0, %v707_v55   ;;  %1235 = vrot.lane.b32.xlu1 %v2419_v22, %s2249_s5  ;;  %1226 = vrot.lane.b32.xlu0 %v2424_v23, %s2249_s5 }
  0xf0   :  { %v734_v62 = vpop.permute.xlu1 %733   ;;  %v725_v63 = vpop.permute.xlu0 %724  }
  0xf1   :  { %1928 = vst.msk [vmem:[%s4399_s1 + $0x3c3] ss:$8 sm:$0xf] %vm3_vm0, %v734_v62   ;;  %1929 = vst.msk [vmem:[%s4399_s1 + $0x3c3] ss:$8 sm:$0xf0] %vm3_vm0, %v734_v62  }
  0xf2   :  { %1925 = vst.msk [vmem:[%s4399_s1 + $0x383] ss:$8 sm:$0xf] %vm3_vm0, %v725_v63   ;;  %1926 = vst.msk [vmem:[%s4399_s1 + $0x383] ss:$8 sm:$0xf0] %vm3_vm0, %v725_v63   ;;  %1252 = vrot.lane.b32.xlu1 %v2284_v3, %s2250_s30  ;;  %1243 = vrot.lane.b32.xlu0 %v2270_v1, %s2250_s30 }
  0xf4   :  { %v752_v1 = vpop.permute.xlu1 %751   ;;  %v743_v3 = vpop.permute.xlu0 %742  }
  0xf5   :  { %1934 = vst.msk [vmem:[%s4399_s1 + $0x443] ss:$8 sm:$0xf] %vm3_vm0, %v752_v1   ;;  %1935 = vst.msk [vmem:[%s4399_s1 + $0x443] ss:$8 sm:$0xf0] %vm3_vm0, %v752_v1  }
  0xf6   :  { %1931 = vst.msk [vmem:[%s4399_s1 + $0x403] ss:$8 sm:$0xf] %vm3_vm0, %v743_v3   ;;  %1932 = vst.msk [vmem:[%s4399_s1 + $0x403] ss:$8 sm:$0xf0] %vm3_vm0, %v743_v3   ;;  %1270 = vrot.lane.b32.xlu1 %v2279_v2, %s2250_s30  ;;  %1261 = vrot.lane.b32.xlu0 %v2265_v0, %s2250_s30 }
  0xf8   :  { %v770_v0 = vpop.permute.xlu1 %769   ;;  %v761_v2 = vpop.permute.xlu0 %760  }
  0xf9   :  { %1940 = vst.msk [vmem:[%s4399_s1 + $0x4c3] ss:$8 sm:$0xf] %vm3_vm0, %v770_v0   ;;  %1941 = vst.msk [vmem:[%s4399_s1 + $0x4c3] ss:$8 sm:$0xf0] %vm3_vm0, %v770_v0  }
  0xfa   :  { %1937 = vst.msk [vmem:[%s4399_s1 + $0x483] ss:$8 sm:$0xf] %vm3_vm0, %v761_v2   ;;  %1938 = vst.msk [vmem:[%s4399_s1 + $0x483] ss:$8 sm:$0xf0] %vm3_vm0, %v761_v2   ;;  %1288 = vrot.lane.b32.xlu1 %v2293_v4, %s2250_s30  ;;  %1279 = vrot.lane.b32.xlu0 %v2298_v5, %s2250_s30 }
  0xfc   :  { %v788_v4 = vpop.permute.xlu1 %787   ;;  %v779_v5 = vpop.permute.xlu0 %778  }
  0xfd   :  { %1946 = vst.msk [vmem:[%s4399_s1 + $0x543] ss:$8 sm:$0xf] %vm3_vm0, %v788_v4   ;;  %1947 = vst.msk [vmem:[%s4399_s1 + $0x543] ss:$8 sm:$0xf0] %vm3_vm0, %v788_v4  }
  0xfe   :  { %1943 = vst.msk [vmem:[%s4399_s1 + $0x503] ss:$8 sm:$0xf] %vm3_vm0, %v779_v5   ;;  %1944 = vst.msk [vmem:[%s4399_s1 + $0x503] ss:$8 sm:$0xf0] %vm3_vm0, %v779_v5   ;;  %1306 = vrot.lane.b32.xlu1 %v2307_v6, %s2250_s30  ;;  %1297 = vrot.lane.b32.xlu0 %v2312_v7, %s2250_s30 }
 0x100   :  { %v806_v6 = vpop.permute.xlu1 %805   ;;  %v797_v7 = vpop.permute.xlu0 %796  }
 0x101   :  { %1952 = vst.msk [vmem:[%s4399_s1 + $0x5c3] ss:$8 sm:$0xf] %vm3_vm0, %v806_v6   ;;  %1953 = vst.msk [vmem:[%s4399_s1 + $0x5c3] ss:$8 sm:$0xf0] %vm3_vm0, %v806_v6  }
 0x102   :  { %1949 = vst.msk [vmem:[%s4399_s1 + $0x583] ss:$8 sm:$0xf] %vm3_vm0, %v797_v7   ;;  %1950 = vst.msk [vmem:[%s4399_s1 + $0x583] ss:$8 sm:$0xf0] %vm3_vm0, %v797_v7   ;;  %1324 = vrot.lane.b32.xlu1 %v2321_v8, %s2250_s30  ;;  %1315 = vrot.lane.b32.xlu0 %v2326_v9, %s2250_s30 }
 0x104   :  { %v823_v8 = vpop.permute.xlu1 %822   ;;  %v814_v9 = vpop.permute.xlu0 %813  }
 0x105   :  { %1957 = vst.msk [vmem:[%s4399_s1 + $0x44] ss:$8 sm:$0xf] %vm3_vm0, %v823_v8   ;;  %1958 = vst.msk [vmem:[%s4399_s1 + $0x44] ss:$8 sm:$0xf0] %vm3_vm0, %v823_v8  }
 0x106   :  { %1954 = vst.msk [vmem:[%s4399_s1 + $0x4] ss:$8 sm:$0xf] %vm3_vm0, %v814_v9   ;;  %1955 = vst.msk [vmem:[%s4399_s1 + $0x4] ss:$8 sm:$0xf0] %vm3_vm0, %v814_v9   ;;  %1342 = vrot.lane.b32.xlu1 %v2335_v10, %s2250_s30  ;;  %1333 = vrot.lane.b32.xlu0 %v2340_v11, %s2250_s30 }
 0x108   :  { %v841_v10 = vpop.permute.xlu1 %840   ;;  %v832_v11 = vpop.permute.xlu0 %831  }
 0x109   :  { %1963 = vst.msk [vmem:[%s4399_s1 + $0xc4] ss:$8 sm:$0xf] %vm3_vm0, %v841_v10   ;;  %1964 = vst.msk [vmem:[%s4399_s1 + $0xc4] ss:$8 sm:$0xf0] %vm3_vm0, %v841_v10  }
 0x10a   :  { %1960 = vst.msk [vmem:[%s4399_s1 + $0x84] ss:$8 sm:$0xf] %vm3_vm0, %v832_v11   ;;  %1961 = vst.msk [vmem:[%s4399_s1 + $0x84] ss:$8 sm:$0xf0] %vm3_vm0, %v832_v11   ;;  %1360 = vrot.lane.b32.xlu1 %v2349_v12, %s2250_s30  ;;  %1351 = vrot.lane.b32.xlu0 %v2354_v13, %s2250_s30 }
 0x10c   :  { %v859_v12 = vpop.permute.xlu1 %858   ;;  %v850_v13 = vpop.permute.xlu0 %849  }
 0x10d   :  { %1969 = vst.msk [vmem:[%s4399_s1 + $0x144] ss:$8 sm:$0xf] %vm3_vm0, %v859_v12   ;;  %1970 = vst.msk [vmem:[%s4399_s1 + $0x144] ss:$8 sm:$0xf0] %vm3_vm0, %v859_v12  }
 0x10e   :  { %1966 = vst.msk [vmem:[%s4399_s1 + $0x104] ss:$8 sm:$0xf] %vm3_vm0, %v850_v13   ;;  %1967 = vst.msk [vmem:[%s4399_s1 + $0x104] ss:$8 sm:$0xf0] %vm3_vm0, %v850_v13   ;;  %1378 = vrot.lane.b32.xlu1 %v2363_v14, %s2250_s30  ;;  %1369 = vrot.lane.b32.xlu0 %v2368_v15, %s2250_s30 }
 0x110   :  { %v877_v14 = vpop.permute.xlu1 %876   ;;  %v868_v15 = vpop.permute.xlu0 %867  }
 0x111   :  { %1975 = vst.msk [vmem:[%s4399_s1 + $0x1c4] ss:$8 sm:$0xf] %vm3_vm0, %v877_v14   ;;  %1976 = vst.msk [vmem:[%s4399_s1 + $0x1c4] ss:$8 sm:$0xf0] %vm3_vm0, %v877_v14  }
 0x112   :  { %1972 = vst.msk [vmem:[%s4399_s1 + $0x184] ss:$8 sm:$0xf] %vm3_vm0, %v868_v15   ;;  %1973 = vst.msk [vmem:[%s4399_s1 + $0x184] ss:$8 sm:$0xf0] %vm3_vm0, %v868_v15   ;;  %1396 = vrot.lane.b32.xlu1 %v2377_v16, %s2250_s30  ;;  %1387 = vrot.lane.b32.xlu0 %v2382_v17, %s2250_s30 }
 0x114   :  { %v895_v16 = vpop.permute.xlu1 %894   ;;  %v886_v17 = vpop.permute.xlu0 %885  }
 0x115   :  { %1981 = vst.msk [vmem:[%s4399_s1 + $0x244] ss:$8 sm:$0xf] %vm3_vm0, %v895_v16   ;;  %1982 = vst.msk [vmem:[%s4399_s1 + $0x244] ss:$8 sm:$0xf0] %vm3_vm0, %v895_v16  }
 0x116   :  { %1978 = vst.msk [vmem:[%s4399_s1 + $0x204] ss:$8 sm:$0xf] %vm3_vm0, %v886_v17   ;;  %1979 = vst.msk [vmem:[%s4399_s1 + $0x204] ss:$8 sm:$0xf0] %vm3_vm0, %v886_v17   ;;  %1414 = vrot.lane.b32.xlu1 %v2391_v18, %s2250_s30  ;;  %1405 = vrot.lane.b32.xlu0 %v2396_v19, %s2250_s30 }
 0x118   :  { %v913_v18 = vpop.permute.xlu1 %912   ;;  %v904_v19 = vpop.permute.xlu0 %903  }
 0x119   :  { %1987 = vst.msk [vmem:[%s4399_s1 + $0x2c4] ss:$8 sm:$0xf] %vm3_vm0, %v913_v18   ;;  %1988 = vst.msk [vmem:[%s4399_s1 + $0x2c4] ss:$8 sm:$0xf0] %vm3_vm0, %v913_v18  }
 0x11a   :  { %1984 = vst.msk [vmem:[%s4399_s1 + $0x284] ss:$8 sm:$0xf] %vm3_vm0, %v904_v19   ;;  %1985 = vst.msk [vmem:[%s4399_s1 + $0x284] ss:$8 sm:$0xf0] %vm3_vm0, %v904_v19   ;;  %1432 = vrot.lane.b32.xlu1 %v2405_v20, %s2250_s30  ;;  %1423 = vrot.lane.b32.xlu0 %v2410_v21, %s2250_s30 }
 0x11c   :  { %v931_v20 = vpop.permute.xlu1 %930   ;;  %v922_v21 = vpop.permute.xlu0 %921  }
 0x11d   :  { %1993 = vst.msk [vmem:[%s4399_s1 + $0x344] ss:$8 sm:$0xf] %vm3_vm0, %v931_v20   ;;  %1994 = vst.msk [vmem:[%s4399_s1 + $0x344] ss:$8 sm:$0xf0] %vm3_vm0, %v931_v20  }
 0x11e   :  { %1990 = vst.msk [vmem:[%s4399_s1 + $0x304] ss:$8 sm:$0xf] %vm3_vm0, %v922_v21   ;;  %1991 = vst.msk [vmem:[%s4399_s1 + $0x304] ss:$8 sm:$0xf0] %vm3_vm0, %v922_v21   ;;  %1450 = vrot.lane.b32.xlu1 %v2419_v22, %s2250_s30  ;;  %1441 = vrot.lane.b32.xlu0 %v2424_v23, %s2250_s30 }
 0x120   :  { %v949_v22 = vpop.permute.xlu1 %948   ;;  %v940_v23 = vpop.permute.xlu0 %939  }
 0x121   :  { %1999 = vst.msk [vmem:[%s4399_s1 + $0x3c4] ss:$8 sm:$0xf] %vm3_vm0, %v949_v22   ;;  %2000 = vst.msk [vmem:[%s4399_s1 + $0x3c4] ss:$8 sm:$0xf0] %vm3_vm0, %v949_v22  }
 0x122   :  { %1996 = vst.msk [vmem:[%s4399_s1 + $0x384] ss:$8 sm:$0xf] %vm3_vm0, %v940_v23   ;;  %1997 = vst.msk [vmem:[%s4399_s1 + $0x384] ss:$8 sm:$0xf0] %vm3_vm0, %v940_v23   ;;  %1467 = vrot.lane.b32.xlu1 %v2713_v48, %s2251_s12  ;;  %1458 = vrot.lane.b32.xlu0 %v2718_v49, %s2251_s12 }
 0x124   :  { %v967_v48 = vpop.permute.xlu1 %966   ;;  %v958_v49 = vpop.permute.xlu0 %957  }
 0x125   :  { %2005 = vst.msk [vmem:[%s4399_s1 + $0x444] ss:$8 sm:$0xf] %vm3_vm0, %v967_v48   ;;  %2006 = vst.msk [vmem:[%s4399_s1 + $0x444] ss:$8 sm:$0xf0] %vm3_vm0, %v967_v48  }
 0x126   :  { %2002 = vst.msk [vmem:[%s4399_s1 + $0x404] ss:$8 sm:$0xf] %vm3_vm0, %v958_v49   ;;  %2003 = vst.msk [vmem:[%s4399_s1 + $0x404] ss:$8 sm:$0xf0] %vm3_vm0, %v958_v49   ;;  %1485 = vrot.lane.b32.xlu1 %v2763_v52, %s2251_s12  ;;  %1476 = vrot.lane.b32.xlu0 %v2768_v53, %s2251_s12 }
 0x128   :  { %v985_v52 = vpop.permute.xlu1 %984   ;;  %v976_v53 = vpop.permute.xlu0 %975  }
 0x129   :  { %2011 = vst.msk [vmem:[%s4399_s1 + $0x4c4] ss:$8 sm:$0xf] %vm3_vm0, %v985_v52   ;;  %2012 = vst.msk [vmem:[%s4399_s1 + $0x4c4] ss:$8 sm:$0xf0] %vm3_vm0, %v985_v52  }
 0x12a   :  { %2008 = vst.msk [vmem:[%s4399_s1 + $0x484] ss:$8 sm:$0xf] %vm3_vm0, %v976_v53   ;;  %2009 = vst.msk [vmem:[%s4399_s1 + $0x484] ss:$8 sm:$0xf0] %vm3_vm0, %v976_v53   ;;  %1503 = vrot.lane.b32.xlu1 %v2813_v56, %s2251_s12  ;;  %1494 = vrot.lane.b32.xlu0 %v2818_v57, %s2251_s12 }
 0x12c   :  { %v1003_v56 = vpop.permute.xlu1 %1002   ;;  %v994_v57 = vpop.permute.xlu0 %993  }
 0x12d   :  { %2017 = vst.msk [vmem:[%s4399_s1 + $0x544] ss:$8 sm:$0xf] %vm3_vm0, %v1003_v56   ;;  %2018 = vst.msk [vmem:[%s4399_s1 + $0x544] ss:$8 sm:$0xf0] %vm3_vm0, %v1003_v56  }
 0x12e   :  { %2014 = vst.msk [vmem:[%s4399_s1 + $0x504] ss:$8 sm:$0xf] %vm3_vm0, %v994_v57   ;;  %2015 = vst.msk [vmem:[%s4399_s1 + $0x504] ss:$8 sm:$0xf0] %vm3_vm0, %v994_v57   ;;  %1521 = vrot.lane.b32.xlu1 %v2863_v60, %s2251_s12  ;;  %1512 = vrot.lane.b32.xlu0 %v2868_v61, %s2251_s12 }
 0x130   :  { %v1021_v60 = vpop.permute.xlu1 %1020   ;;  %v1012_v61 = vpop.permute.xlu0 %1011  }
 0x131   :  { %2023 = vst.msk [vmem:[%s4399_s1 + $0x5c4] ss:$8 sm:$0xf] %vm3_vm0, %v1021_v60   ;;  %2024 = vst.msk [vmem:[%s4399_s1 + $0x5c4] ss:$8 sm:$0xf0] %vm3_vm0, %v1021_v60  }
 0x132   :  { %2020 = vst.msk [vmem:[%s4399_s1 + $0x584] ss:$8 sm:$0xf] %vm3_vm0, %v1012_v61   ;;  %2021 = vst.msk [vmem:[%s4399_s1 + $0x584] ss:$8 sm:$0xf0] %vm3_vm0, %v1012_v61   ;;  %1539 = vrot.lane.b32.xlu1 %v2913_v24, %s2251_s12  ;;  %1530 = vrot.lane.b32.xlu0 %v2918_v25, %s2251_s12 }
 0x134   :  { %v1038_v24 = vpop.permute.xlu1 %1037   ;;  %v1029_v25 = vpop.permute.xlu0 %1028  }
 0x135   :  { %2028 = vst.msk [vmem:[%s4399_s1 + $0x45] ss:$8 sm:$0xf] %vm3_vm0, %v1038_v24   ;;  %2029 = vst.msk [vmem:[%s4399_s1 + $0x45] ss:$8 sm:$0xf0] %vm3_vm0, %v1038_v24  }
 0x136   :  { %2025 = vst.msk [vmem:[%s4399_s1 + $0x5] ss:$8 sm:$0xf] %vm3_vm0, %v1029_v25   ;;  %2026 = vst.msk [vmem:[%s4399_s1 + $0x5] ss:$8 sm:$0xf0] %vm3_vm0, %v1029_v25   ;;  %1557 = vrot.lane.b32.xlu1 %v2963_v28, %s2251_s12  ;;  %1548 = vrot.lane.b32.xlu0 %v2968_v29, %s2251_s12 }
 0x138   :  { %v1056_v28 = vpop.permute.xlu1 %1055   ;;  %v1047_v29 = vpop.permute.xlu0 %1046  }
 0x139   :  { %2034 = vst.msk [vmem:[%s4399_s1 + $0xc5] ss:$8 sm:$0xf] %vm3_vm0, %v1056_v28   ;;  %2035 = vst.msk [vmem:[%s4399_s1 + $0xc5] ss:$8 sm:$0xf0] %vm3_vm0, %v1056_v28  }
 0x13a   :  { %2031 = vst.msk [vmem:[%s4399_s1 + $0x85] ss:$8 sm:$0xf] %vm3_vm0, %v1047_v29   ;;  %2032 = vst.msk [vmem:[%s4399_s1 + $0x85] ss:$8 sm:$0xf0] %vm3_vm0, %v1047_v29   ;;  %1575 = vrot.lane.b32.xlu1 %v3013_v32, %s2251_s12  ;;  %1566 = vrot.lane.b32.xlu0 %v3018_v33, %s2251_s12 }
 0x13c   :  { %v1074_v32 = vpop.permute.xlu1 %1073   ;;  %v1065_v33 = vpop.permute.xlu0 %1064  }
 0x13d   :  { %2040 = vst.msk [vmem:[%s4399_s1 + $0x145] ss:$8 sm:$0xf] %vm3_vm0, %v1074_v32   ;;  %2041 = vst.msk [vmem:[%s4399_s1 + $0x145] ss:$8 sm:$0xf0] %vm3_vm0, %v1074_v32  }
 0x13e   :  { %2037 = vst.msk [vmem:[%s4399_s1 + $0x105] ss:$8 sm:$0xf] %vm3_vm0, %v1065_v33   ;;  %2038 = vst.msk [vmem:[%s4399_s1 + $0x105] ss:$8 sm:$0xf0] %vm3_vm0, %v1065_v33   ;;  %1593 = vrot.lane.b32.xlu1 %v3063_v36, %s2251_s12  ;;  %1584 = vrot.lane.b32.xlu0 %v3068_v37, %s2251_s12 }
 0x140   :  { %v1092_v36 = vpop.permute.xlu1 %1091   ;;  %v1083_v37 = vpop.permute.xlu0 %1082  }
 0x141   :  { %2046 = vst.msk [vmem:[%s4399_s1 + $0x1c5] ss:$8 sm:$0xf] %vm3_vm0, %v1092_v36   ;;  %2047 = vst.msk [vmem:[%s4399_s1 + $0x1c5] ss:$8 sm:$0xf0] %vm3_vm0, %v1092_v36  }
 0x142   :  { %2043 = vst.msk [vmem:[%s4399_s1 + $0x185] ss:$8 sm:$0xf] %vm3_vm0, %v1083_v37   ;;  %2044 = vst.msk [vmem:[%s4399_s1 + $0x185] ss:$8 sm:$0xf0] %vm3_vm0, %v1083_v37   ;;  %1611 = vrot.lane.b32.xlu1 %v3113_v40, %s2251_s12  ;;  %1602 = vrot.lane.b32.xlu0 %v3118_v41, %s2251_s12 }
 0x144   :  { %v1110_v40 = vpop.permute.xlu1 %1109   ;;  %v1101_v41 = vpop.permute.xlu0 %1100  }
 0x145   :  { %2052 = vst.msk [vmem:[%s4399_s1 + $0x245] ss:$8 sm:$0xf] %vm3_vm0, %v1110_v40   ;;  %2053 = vst.msk [vmem:[%s4399_s1 + $0x245] ss:$8 sm:$0xf0] %vm3_vm0, %v1110_v40  }
 0x146   :  { %2049 = vst.msk [vmem:[%s4399_s1 + $0x205] ss:$8 sm:$0xf] %vm3_vm0, %v1101_v41   ;;  %2050 = vst.msk [vmem:[%s4399_s1 + $0x205] ss:$8 sm:$0xf0] %vm3_vm0, %v1101_v41   ;;  %1629 = vrot.lane.b32.xlu1 %v3163_v44, %s2251_s12  ;;  %1620 = vrot.lane.b32.xlu0 %v3168_v45, %s2251_s12 }
 0x148   :  { %v1128_v44 = vpop.permute.xlu1 %1127   ;;  %v1119_v45 = vpop.permute.xlu0 %1118  }
 0x149   :  { %2058 = vst.msk [vmem:[%s4399_s1 + $0x2c5] ss:$8 sm:$0xf] %vm3_vm0, %v1128_v44   ;;  %2059 = vst.msk [vmem:[%s4399_s1 + $0x2c5] ss:$8 sm:$0xf0] %vm3_vm0, %v1128_v44  }
 0x14a   :  { %2055 = vst.msk [vmem:[%s4399_s1 + $0x285] ss:$8 sm:$0xf] %vm3_vm0, %v1119_v45   ;;  %2056 = vst.msk [vmem:[%s4399_s1 + $0x285] ss:$8 sm:$0xf0] %vm3_vm0, %v1119_v45   ;;  %1647 = vrot.lane.b32.xlu1 %v3213_v50, %s2251_s12  ;;  %1638 = vrot.lane.b32.xlu0 %v3218_v51, %s2251_s12 }
 0x14c   :  { %v1146_v50 = vpop.permute.xlu1 %1145   ;;  %v1137_v51 = vpop.permute.xlu0 %1136  }
 0x14d   :  { %2064 = vst.msk [vmem:[%s4399_s1 + $0x345] ss:$8 sm:$0xf] %vm3_vm0, %v1146_v50   ;;  %2065 = vst.msk [vmem:[%s4399_s1 + $0x345] ss:$8 sm:$0xf0] %vm3_vm0, %v1146_v50  }
 0x14e   :  { %2061 = vst.msk [vmem:[%s4399_s1 + $0x305] ss:$8 sm:$0xf] %vm3_vm0, %v1137_v51   ;;  %2062 = vst.msk [vmem:[%s4399_s1 + $0x305] ss:$8 sm:$0xf0] %vm3_vm0, %v1137_v51   ;;  %1665 = vrot.lane.b32.xlu1 %v3263_v58, %s2251_s12  ;;  %1656 = vrot.lane.b32.xlu0 %v3268_v59, %s2251_s12 }
 0x150   :  { %v1164_v58 = vpop.permute.xlu1 %1163   ;;  %v1155_v59 = vpop.permute.xlu0 %1154  }
 0x151   :  { %2070 = vst.msk [vmem:[%s4399_s1 + $0x3c5] ss:$8 sm:$0xf] %vm3_vm0, %v1164_v58   ;;  %2071 = vst.msk [vmem:[%s4399_s1 + $0x3c5] ss:$8 sm:$0xf0] %vm3_vm0, %v1164_v58  }
 0x152   :  { %2067 = vst.msk [vmem:[%s4399_s1 + $0x385] ss:$8 sm:$0xf] %vm3_vm0, %v1155_v59   ;;  %2068 = vst.msk [vmem:[%s4399_s1 + $0x385] ss:$8 sm:$0xf0] %vm3_vm0, %v1155_v59  }
 0x154   :  { %v1182_v26 = vpop.permute.xlu1 %1181   ;;  %v1173_v27 = vpop.permute.xlu0 %1172  }
 0x155   :  { %2076 = vst.msk [vmem:[%s4399_s1 + $0x445] ss:$8 sm:$0xf] %vm3_vm0, %v1182_v26   ;;  %2077 = vst.msk [vmem:[%s4399_s1 + $0x445] ss:$8 sm:$0xf0] %vm3_vm0, %v1182_v26  }
 0x156   :  { %2073 = vst.msk [vmem:[%s4399_s1 + $0x405] ss:$8 sm:$0xf] %vm3_vm0, %v1173_v27   ;;  %2074 = vst.msk [vmem:[%s4399_s1 + $0x405] ss:$8 sm:$0xf0] %vm3_vm0, %v1173_v27  }
 0x158   :  { %v1200_v30 = vpop.permute.xlu1 %1199   ;;  %v1191_v31 = vpop.permute.xlu0 %1190  }
 0x159   :  { %2082 = vst.msk [vmem:[%s4399_s1 + $0x4c5] ss:$8 sm:$0xf] %vm3_vm0, %v1200_v30   ;;  %2083 = vst.msk [vmem:[%s4399_s1 + $0x4c5] ss:$8 sm:$0xf0] %vm3_vm0, %v1200_v30  }
 0x15a   :  { %2079 = vst.msk [vmem:[%s4399_s1 + $0x485] ss:$8 sm:$0xf] %vm3_vm0, %v1191_v31   ;;  %2080 = vst.msk [vmem:[%s4399_s1 + $0x485] ss:$8 sm:$0xf0] %vm3_vm0, %v1191_v31  }
 0x15c   :  { %v1218_v34 = vpop.permute.xlu1 %1217   ;;  %v1209_v35 = vpop.permute.xlu0 %1208  }
 0x15d   :  { %2088 = vst.msk [vmem:[%s4399_s1 + $0x545] ss:$8 sm:$0xf] %vm3_vm0, %v1218_v34   ;;  %2089 = vst.msk [vmem:[%s4399_s1 + $0x545] ss:$8 sm:$0xf0] %vm3_vm0, %v1218_v34  }
 0x15e   :  { %2085 = vst.msk [vmem:[%s4399_s1 + $0x505] ss:$8 sm:$0xf] %vm3_vm0, %v1209_v35   ;;  %2086 = vst.msk [vmem:[%s4399_s1 + $0x505] ss:$8 sm:$0xf0] %vm3_vm0, %v1209_v35  }
 0x160   :  { %v1236_v38 = vpop.permute.xlu1 %1235   ;;  %v1227_v39 = vpop.permute.xlu0 %1226  }
 0x161   :  { %2094 = vst.msk [vmem:[%s4399_s1 + $0x5c5] ss:$8 sm:$0xf] %vm3_vm0, %v1236_v38   ;;  %2095 = vst.msk [vmem:[%s4399_s1 + $0x5c5] ss:$8 sm:$0xf0] %vm3_vm0, %v1236_v38  }
 0x162   :  { %2091 = vst.msk [vmem:[%s4399_s1 + $0x585] ss:$8 sm:$0xf] %vm3_vm0, %v1227_v39   ;;  %2092 = vst.msk [vmem:[%s4399_s1 + $0x585] ss:$8 sm:$0xf0] %vm3_vm0, %v1227_v39  }
 0x164   :  { %v1253_v42 = vpop.permute.xlu1 %1252   ;;  %v1244_v43 = vpop.permute.xlu0 %1243  }
 0x165   :  { %2099 = vst.msk [vmem:[%s4399_s1 + $0x46] ss:$8 sm:$0xf] %vm3_vm0, %v1253_v42   ;;  %2100 = vst.msk [vmem:[%s4399_s1 + $0x46] ss:$8 sm:$0xf0] %vm3_vm0, %v1253_v42  }
 0x166   :  { %2096 = vst.msk [vmem:[%s4399_s1 + $0x6] ss:$8 sm:$0xf] %vm3_vm0, %v1244_v43   ;;  %2097 = vst.msk [vmem:[%s4399_s1 + $0x6] ss:$8 sm:$0xf0] %vm3_vm0, %v1244_v43  }
 0x168   :  { %v1271_v46 = vpop.permute.xlu1 %1270   ;;  %v1262_v47 = vpop.permute.xlu0 %1261  }
 0x169   :  { %2105 = vst.msk [vmem:[%s4399_s1 + $0xc6] ss:$8 sm:$0xf] %vm3_vm0, %v1271_v46   ;;  %2106 = vst.msk [vmem:[%s4399_s1 + $0xc6] ss:$8 sm:$0xf0] %vm3_vm0, %v1271_v46  }
 0x16a   :  { %2102 = vst.msk [vmem:[%s4399_s1 + $0x86] ss:$8 sm:$0xf] %vm3_vm0, %v1262_v47   ;;  %2103 = vst.msk [vmem:[%s4399_s1 + $0x86] ss:$8 sm:$0xf0] %vm3_vm0, %v1262_v47  }
 0x16c   :  { %v1289_v54 = vpop.permute.xlu1 %1288   ;;  %v1280_v55 = vpop.permute.xlu0 %1279  }
 0x16d   :  { %2111 = vst.msk [vmem:[%s4399_s1 + $0x146] ss:$8 sm:$0xf] %vm3_vm0, %v1289_v54   ;;  %2112 = vst.msk [vmem:[%s4399_s1 + $0x146] ss:$8 sm:$0xf0] %vm3_vm0, %v1289_v54  }
 0x16e   :  { %2108 = vst.msk [vmem:[%s4399_s1 + $0x106] ss:$8 sm:$0xf] %vm3_vm0, %v1280_v55   ;;  %2109 = vst.msk [vmem:[%s4399_s1 + $0x106] ss:$8 sm:$0xf0] %vm3_vm0, %v1280_v55  }
 0x170   :  { %v1307_v62 = vpop.permute.xlu1 %1306   ;;  %v1298_v63 = vpop.permute.xlu0 %1297  }
 0x171   :  { %2117 = vst.msk [vmem:[%s4399_s1 + $0x1c6] ss:$8 sm:$0xf] %vm3_vm0, %v1307_v62   ;;  %2118 = vst.msk [vmem:[%s4399_s1 + $0x1c6] ss:$8 sm:$0xf0] %vm3_vm0, %v1307_v62  }
 0x172   :  { %2114 = vst.msk [vmem:[%s4399_s1 + $0x186] ss:$8 sm:$0xf] %vm3_vm0, %v1298_v63   ;;  %2115 = vst.msk [vmem:[%s4399_s1 + $0x186] ss:$8 sm:$0xf0] %vm3_vm0, %v1298_v63  }
 0x174   :  { %v1325_v1 = vpop.permute.xlu1 %1324   ;;  %v1316_v3 = vpop.permute.xlu0 %1315  }
 0x175   :  { %2123 = vst.msk [vmem:[%s4399_s1 + $0x246] ss:$8 sm:$0xf] %vm3_vm0, %v1325_v1   ;;  %2124 = vst.msk [vmem:[%s4399_s1 + $0x246] ss:$8 sm:$0xf0] %vm3_vm0, %v1325_v1  }
 0x176   :  { %2120 = vst.msk [vmem:[%s4399_s1 + $0x206] ss:$8 sm:$0xf] %vm3_vm0, %v1316_v3   ;;  %2121 = vst.msk [vmem:[%s4399_s1 + $0x206] ss:$8 sm:$0xf0] %vm3_vm0, %v1316_v3  }
 0x178   :  { %v1343_v0 = vpop.permute.xlu1 %1342   ;;  %v1334_v2 = vpop.permute.xlu0 %1333  }
 0x179   :  { %2129 = vst.msk [vmem:[%s4399_s1 + $0x2c6] ss:$8 sm:$0xf] %vm3_vm0, %v1343_v0   ;;  %2130 = vst.msk [vmem:[%s4399_s1 + $0x2c6] ss:$8 sm:$0xf0] %vm3_vm0, %v1343_v0  }
 0x17a   :  { %2126 = vst.msk [vmem:[%s4399_s1 + $0x286] ss:$8 sm:$0xf] %vm3_vm0, %v1334_v2   ;;  %2127 = vst.msk [vmem:[%s4399_s1 + $0x286] ss:$8 sm:$0xf0] %vm3_vm0, %v1334_v2  }
 0x17c   :  { %v1361_v4 = vpop.permute.xlu1 %1360   ;;  %v1352_v5 = vpop.permute.xlu0 %1351  }
 0x17d   :  { %2135 = vst.msk [vmem:[%s4399_s1 + $0x346] ss:$8 sm:$0xf] %vm3_vm0, %v1361_v4   ;;  %2136 = vst.msk [vmem:[%s4399_s1 + $0x346] ss:$8 sm:$0xf0] %vm3_vm0, %v1361_v4  }
 0x17e   :  { %2132 = vst.msk [vmem:[%s4399_s1 + $0x306] ss:$8 sm:$0xf] %vm3_vm0, %v1352_v5   ;;  %2133 = vst.msk [vmem:[%s4399_s1 + $0x306] ss:$8 sm:$0xf0] %vm3_vm0, %v1352_v5  }
 0x180   :  { %v1379_v6 = vpop.permute.xlu1 %1378   ;;  %v1370_v7 = vpop.permute.xlu0 %1369  }
 0x181   :  { %2141 = vst.msk [vmem:[%s4399_s1 + $0x3c6] ss:$8 sm:$0xf] %vm3_vm0, %v1379_v6   ;;  %2142 = vst.msk [vmem:[%s4399_s1 + $0x3c6] ss:$8 sm:$0xf0] %vm3_vm0, %v1379_v6  }
 0x182   :  { %2138 = vst.msk [vmem:[%s4399_s1 + $0x386] ss:$8 sm:$0xf] %vm3_vm0, %v1370_v7   ;;  %2139 = vst.msk [vmem:[%s4399_s1 + $0x386] ss:$8 sm:$0xf0] %vm3_vm0, %v1370_v7  }
 0x184   :  { %v1397_v8 = vpop.permute.xlu1 %1396   ;;  %v1388_v9 = vpop.permute.xlu0 %1387  }
 0x185   :  { %2147 = vst.msk [vmem:[%s4399_s1 + $0x446] ss:$8 sm:$0xf] %vm3_vm0, %v1397_v8   ;;  %2148 = vst.msk [vmem:[%s4399_s1 + $0x446] ss:$8 sm:$0xf0] %vm3_vm0, %v1397_v8  }
 0x186   :  { %2144 = vst.msk [vmem:[%s4399_s1 + $0x406] ss:$8 sm:$0xf] %vm3_vm0, %v1388_v9   ;;  %2145 = vst.msk [vmem:[%s4399_s1 + $0x406] ss:$8 sm:$0xf0] %vm3_vm0, %v1388_v9  }
 0x188   :  { %v1415_v10 = vpop.permute.xlu1 %1414   ;;  %v1406_v11 = vpop.permute.xlu0 %1405  }
 0x189   :  { %2153 = vst.msk [vmem:[%s4399_s1 + $0x4c6] ss:$8 sm:$0xf] %vm3_vm0, %v1415_v10   ;;  %2154 = vst.msk [vmem:[%s4399_s1 + $0x4c6] ss:$8 sm:$0xf0] %vm3_vm0, %v1415_v10  }
 0x18a   :  { %2150 = vst.msk [vmem:[%s4399_s1 + $0x486] ss:$8 sm:$0xf] %vm3_vm0, %v1406_v11   ;;  %2151 = vst.msk [vmem:[%s4399_s1 + $0x486] ss:$8 sm:$0xf0] %vm3_vm0, %v1406_v11  }
 0x18c   :  { %v1433_v12 = vpop.permute.xlu1 %1432   ;;  %v1424_v13 = vpop.permute.xlu0 %1423  }
 0x18d   :  { %2159 = vst.msk [vmem:[%s4399_s1 + $0x546] ss:$8 sm:$0xf] %vm3_vm0, %v1433_v12   ;;  %2160 = vst.msk [vmem:[%s4399_s1 + $0x546] ss:$8 sm:$0xf0] %vm3_vm0, %v1433_v12  }
 0x18e   :  { %2156 = vst.msk [vmem:[%s4399_s1 + $0x506] ss:$8 sm:$0xf] %vm3_vm0, %v1424_v13   ;;  %2157 = vst.msk [vmem:[%s4399_s1 + $0x506] ss:$8 sm:$0xf0] %vm3_vm0, %v1424_v13  }
 0x190   :  { %v1451_v14 = vpop.permute.xlu1 %1450   ;;  %v1442_v15 = vpop.permute.xlu0 %1441  }
 0x191   :  { %2165 = vst.msk [vmem:[%s4399_s1 + $0x5c6] ss:$8 sm:$0xf] %vm3_vm0, %v1451_v14   ;;  %2166 = vst.msk [vmem:[%s4399_s1 + $0x5c6] ss:$8 sm:$0xf0] %vm3_vm0, %v1451_v14  }
 0x192   :  { %2162 = vst.msk [vmem:[%s4399_s1 + $0x586] ss:$8 sm:$0xf] %vm3_vm0, %v1442_v15   ;;  %2163 = vst.msk [vmem:[%s4399_s1 + $0x586] ss:$8 sm:$0xf0] %vm3_vm0, %v1442_v15  }
 0x194   :  { %v1468_v16 = vpop.permute.xlu1 %1467   ;;  %v1459_v17 = vpop.permute.xlu0 %1458  }
 0x195   :  { %2170 = vst.msk [vmem:[%s4399_s1 + $0x47] ss:$8 sm:$0xf] %vm3_vm0, %v1468_v16   ;;  %2171 = vst.msk [vmem:[%s4399_s1 + $0x47] ss:$8 sm:$0xf0] %vm3_vm0, %v1468_v16  }
 0x196   :  { %2167 = vst.msk [vmem:[%s4399_s1 + $0x7] ss:$8 sm:$0xf] %vm3_vm0, %v1459_v17   ;;  %2168 = vst.msk [vmem:[%s4399_s1 + $0x7] ss:$8 sm:$0xf0] %vm3_vm0, %v1459_v17  }
 0x198   :  { %v1486_v18 = vpop.permute.xlu1 %1485   ;;  %v1477_v19 = vpop.permute.xlu0 %1476  }
 0x199   :  { %2176 = vst.msk [vmem:[%s4399_s1 + $0xc7] ss:$8 sm:$0xf] %vm3_vm0, %v1486_v18   ;;  %2177 = vst.msk [vmem:[%s4399_s1 + $0xc7] ss:$8 sm:$0xf0] %vm3_vm0, %v1486_v18  }
 0x19a   :  { %2173 = vst.msk [vmem:[%s4399_s1 + $0x87] ss:$8 sm:$0xf] %vm3_vm0, %v1477_v19   ;;  %2174 = vst.msk [vmem:[%s4399_s1 + $0x87] ss:$8 sm:$0xf0] %vm3_vm0, %v1477_v19  }
 0x19c   :  { %v1504_v20 = vpop.permute.xlu1 %1503   ;;  %v1495_v21 = vpop.permute.xlu0 %1494  }
 0x19d   :  { %2182 = vst.msk [vmem:[%s4399_s1 + $0x147] ss:$8 sm:$0xf] %vm3_vm0, %v1504_v20   ;;  %2183 = vst.msk [vmem:[%s4399_s1 + $0x147] ss:$8 sm:$0xf0] %vm3_vm0, %v1504_v20  }
 0x19e   :  { %2179 = vst.msk [vmem:[%s4399_s1 + $0x107] ss:$8 sm:$0xf] %vm3_vm0, %v1495_v21   ;;  %2180 = vst.msk [vmem:[%s4399_s1 + $0x107] ss:$8 sm:$0xf0] %vm3_vm0, %v1495_v21  }
 0x1a0   :  { %v1522_v22 = vpop.permute.xlu1 %1521   ;;  %v1513_v23 = vpop.permute.xlu0 %1512  }
 0x1a1   :  { %2188 = vst.msk [vmem:[%s4399_s1 + $0x1c7] ss:$8 sm:$0xf] %vm3_vm0, %v1522_v22   ;;  %2189 = vst.msk [vmem:[%s4399_s1 + $0x1c7] ss:$8 sm:$0xf0] %vm3_vm0, %v1522_v22  }
 0x1a2   :  { %2185 = vst.msk [vmem:[%s4399_s1 + $0x187] ss:$8 sm:$0xf] %vm3_vm0, %v1513_v23   ;;  %2186 = vst.msk [vmem:[%s4399_s1 + $0x187] ss:$8 sm:$0xf0] %vm3_vm0, %v1513_v23  }
 0x1a4   :  { %v1540_v48 = vpop.permute.xlu1 %1539   ;;  %v1531_v49 = vpop.permute.xlu0 %1530  }
 0x1a5   :  { %2194 = vst.msk [vmem:[%s4399_s1 + $0x247] ss:$8 sm:$0xf] %vm3_vm0, %v1540_v48   ;;  %2195 = vst.msk [vmem:[%s4399_s1 + $0x247] ss:$8 sm:$0xf0] %vm3_vm0, %v1540_v48  }
 0x1a6   :  { %2191 = vst.msk [vmem:[%s4399_s1 + $0x207] ss:$8 sm:$0xf] %vm3_vm0, %v1531_v49   ;;  %2192 = vst.msk [vmem:[%s4399_s1 + $0x207] ss:$8 sm:$0xf0] %vm3_vm0, %v1531_v49  }
 0x1a8   :  { %v1558_v52 = vpop.permute.xlu1 %1557   ;;  %v1549_v53 = vpop.permute.xlu0 %1548  }
 0x1a9   :  { %2200 = vst.msk [vmem:[%s4399_s1 + $0x2c7] ss:$8 sm:$0xf] %vm3_vm0, %v1558_v52   ;;  %2201 = vst.msk [vmem:[%s4399_s1 + $0x2c7] ss:$8 sm:$0xf0] %vm3_vm0, %v1558_v52  }
 0x1aa   :  { %2197 = vst.msk [vmem:[%s4399_s1 + $0x287] ss:$8 sm:$0xf] %vm3_vm0, %v1549_v53   ;;  %2198 = vst.msk [vmem:[%s4399_s1 + $0x287] ss:$8 sm:$0xf0] %vm3_vm0, %v1549_v53  }
 0x1ac   :  { %v1576_v56 = vpop.permute.xlu1 %1575   ;;  %v1567_v57 = vpop.permute.xlu0 %1566  }
 0x1ad   :  { %2206 = vst.msk [vmem:[%s4399_s1 + $0x347] ss:$8 sm:$0xf] %vm3_vm0, %v1576_v56   ;;  %2207 = vst.msk [vmem:[%s4399_s1 + $0x347] ss:$8 sm:$0xf0] %vm3_vm0, %v1576_v56  }
 0x1ae   :  { %2203 = vst.msk [vmem:[%s4399_s1 + $0x307] ss:$8 sm:$0xf] %vm3_vm0, %v1567_v57   ;;  %2204 = vst.msk [vmem:[%s4399_s1 + $0x307] ss:$8 sm:$0xf0] %vm3_vm0, %v1567_v57  }
 0x1b0   :  { %v1594_v60 = vpop.permute.xlu1 %1593   ;;  %v1585_v61 = vpop.permute.xlu0 %1584  }
 0x1b1   :  { %2212 = vst.msk [vmem:[%s4399_s1 + $0x3c7] ss:$8 sm:$0xf] %vm3_vm0, %v1594_v60   ;;  %2213 = vst.msk [vmem:[%s4399_s1 + $0x3c7] ss:$8 sm:$0xf0] %vm3_vm0, %v1594_v60  }
 0x1b2   :  { %2209 = vst.msk [vmem:[%s4399_s1 + $0x387] ss:$8 sm:$0xf] %vm3_vm0, %v1585_v61   ;;  %2210 = vst.msk [vmem:[%s4399_s1 + $0x387] ss:$8 sm:$0xf0] %vm3_vm0, %v1585_v61  }
 0x1b4   :  { %v1612_v24 = vpop.permute.xlu1 %1611   ;;  %v1603_v25 = vpop.permute.xlu0 %1602  }
 0x1b5   :  { %2218 = vst.msk [vmem:[%s4399_s1 + $0x447] ss:$8 sm:$0xf] %vm3_vm0, %v1612_v24   ;;  %2219 = vst.msk [vmem:[%s4399_s1 + $0x447] ss:$8 sm:$0xf0] %vm3_vm0, %v1612_v24  }
 0x1b6   :  { %2215 = vst.msk [vmem:[%s4399_s1 + $0x407] ss:$8 sm:$0xf] %vm3_vm0, %v1603_v25   ;;  %2216 = vst.msk [vmem:[%s4399_s1 + $0x407] ss:$8 sm:$0xf0] %vm3_vm0, %v1603_v25  }
 0x1b8   :  { %v1630_v28 = vpop.permute.xlu1 %1629   ;;  %v1621_v29 = vpop.permute.xlu0 %1620  }
 0x1b9   :  { %2224 = vst.msk [vmem:[%s4399_s1 + $0x4c7] ss:$8 sm:$0xf] %vm3_vm0, %v1630_v28   ;;  %2225 = vst.msk [vmem:[%s4399_s1 + $0x4c7] ss:$8 sm:$0xf0] %vm3_vm0, %v1630_v28  }
 0x1ba   :  { %2221 = vst.msk [vmem:[%s4399_s1 + $0x487] ss:$8 sm:$0xf] %vm3_vm0, %v1621_v29   ;;  %2222 = vst.msk [vmem:[%s4399_s1 + $0x487] ss:$8 sm:$0xf0] %vm3_vm0, %v1621_v29  }
 0x1bc   :  { %v1648_v32 = vpop.permute.xlu1 %1647   ;;  %v1639_v33 = vpop.permute.xlu0 %1638  }
 0x1bd   :  { %2230 = vst.msk [vmem:[%s4399_s1 + $0x547] ss:$8 sm:$0xf] %vm3_vm0, %v1648_v32   ;;  %2231 = vst.msk [vmem:[%s4399_s1 + $0x547] ss:$8 sm:$0xf0] %vm3_vm0, %v1648_v32  }
 0x1be   :  { %2227 = vst.msk [vmem:[%s4399_s1 + $0x507] ss:$8 sm:$0xf] %vm3_vm0, %v1639_v33   ;;  %2228 = vst.msk [vmem:[%s4399_s1 + $0x507] ss:$8 sm:$0xf0] %vm3_vm0, %v1639_v33  }
 0x1c0   :  { %v1666_v36 = vpop.permute.xlu1 %1665   ;;  %v1657_v37 = vpop.permute.xlu0 %1656  }
 0x1c1   :  { %2236 = vst.msk [vmem:[%s4399_s1 + $0x5c7] ss:$8 sm:$0xf] %vm3_vm0, %v1666_v36   ;;  %2237 = vst.msk [vmem:[%s4399_s1 + $0x5c7] ss:$8 sm:$0xf0] %vm3_vm0, %v1666_v36  }
 0x1c2   :  { %2233 = vst.msk [vmem:[%s4399_s1 + $0x587] ss:$8 sm:$0xf] %vm3_vm0, %v1657_v37   ;;  %2234 = vst.msk [vmem:[%s4399_s1 + $0x587] ss:$8 sm:$0xf0] %vm3_vm0, %v1657_v37  }

// kernel: yowo_forward.7
= control target key start
LH: loop header
LB: loop body
LE: loop exit
PB: predicated region body
PF: predicated region fallthrough
CT: control target
= control target key end

     0   :  { %s721_s1 = inlined_call_operand.vmem [shape: bf16[128,128], index: 1, kind: input, shape index: {}]   ;;  %s722_s0 = inlined_call_operand.vmem [shape: bf16[128,128], index: 0, kind: input, shape index: {}]   ;;  %s723_s2 = inlined_call_operand.vmem [shape: f32[1,128], index: 2, kind: input, shape index: {}]   ;;  %s724_s3 = inlined_call_operand.vmem [shape: bf16[128,128], index: 3, kind: output, shape index: {}]  }
   0x1   :  { %v610_v0 = vld [vmem:[%s721_s1] sm:$0xff]   ;;  %v611_v1 = vld [vmem:[%s721_s1 + $0x8] sm:$0xff]   ;;  %v612_v2 = vld [vmem:[%s721_s1 + $0x10] sm:$0xff]  }
   0x2   :  { %562 = vmatprep.subr.bf16.mxu0 %v610_v0  ;;  %594 = vmatprep.subr.bf16.mxu1 %v610_v0  ;;  %v613_v3 = vld [vmem:[%s721_s1 + $0x18] sm:$0xff]   ;;  %v618_v4 = vld [vmem:[%s722_s0] sm:$0xff]   ;;  %v615_v7 = vld [vmem:[%s721_s1 + $0x28] sm:$0xff]  }
   0x3   :  { %563 = vmatpush3.bf16.msra.mxu0 %v610_v0  ;;  %602 = vmatpush3.bf16.msra.mxu1 %v610_v0  ;;  %v619_v5 = vld [vmem:[%s722_s0 + $0x20] sm:$0xff]   ;;  %v616_v8 = vld [vmem:[%s721_s1 + $0x30] sm:$0xff]   ;;  %v617_v9 = vld [vmem:[%s721_s1 + $0x38] sm:$0xff]  }
   0x4   :  { %564 = vmatprep.subr.bf16.mxu0 %v611_v1  ;;  %595 = vmatprep.subr.bf16.mxu1 %v611_v1  ;;  %v614_v6 = vld [vmem:[%s721_s1 + $0x20] sm:$0xff]   ;;  %v620_v10 = vld [vmem:[%s722_s0 + $0x8] sm:$0xff]   ;;  %v622_v12 = vld [vmem:[%s722_s0 + $0x10] sm:$0xff]  }
   0x5   :  { %578 = vmatprep.mubr.bf16.mxu0 %v618_v4  ;;  %586 = vmatprep.mubr.bf16.mxu1 %v619_v5  ;;  %v621_v11 = vld [vmem:[%s722_s0 + $0x28] sm:$0xff]   ;;  %v623_v13 = vld [vmem:[%s722_s0 + $0x30] sm:$0xff]   ;;  %v624_v14 = vld [vmem:[%s722_s0 + $0x18] sm:$0xff]  }
   0x6   :  { %v625_v15 = vld [vmem:[%s722_s0 + $0x38] sm:$0xff]   ;;  %v466_v16 = vld [vmem:[%s723_s2] ss:$0 sm:$0xff] }
   0x7   :  { %565 = vmatpush3.bf16.msra.mxu0 %v611_v1  ;;  %603 = vmatpush3.bf16.msra.mxu1 %v611_v1 }
   0x8   :  { %566 = vmatprep.subr.bf16.mxu0 %v612_v2  ;;  %596 = vmatprep.subr.bf16.mxu1 %v612_v2 }
   0xb   :  { %567 = vmatpush3.bf16.msra.mxu0 %v612_v2  ;;  %604 = vmatpush3.bf16.msra.mxu1 %v612_v2 }
   0xc   :  { %568 = vmatprep.subr.bf16.mxu0 %v613_v3  ;;  %597 = vmatprep.subr.bf16.mxu1 %v613_v3 }
   0xf   :  { %569 = vmatpush3.bf16.msra.mxu0 %v613_v3  ;;  %605 = vmatpush3.bf16.msra.mxu1 %v613_v3 }
  0x10   :  { %570 = vmatprep.subr.bf16.mxu0 %v614_v6  ;;  %598 = vmatprep.subr.bf16.mxu1 %v614_v6 }
  0x13   :  { %571 = vmatpush3.bf16.msra.mxu0 %v614_v6  ;;  %606 = vmatpush3.bf16.msra.mxu1 %v614_v6 }
  0x14   :  { %572 = vmatprep.subr.bf16.mxu0 %v615_v7  ;;  %599 = vmatprep.subr.bf16.mxu1 %v615_v7 }
  0x17   :  { %573 = vmatpush3.bf16.msra.mxu0 %v615_v7  ;;  %607 = vmatpush3.bf16.msra.mxu1 %v615_v7 }
  0x18   :  { %574 = vmatprep.subr.bf16.mxu0 %v616_v8  ;;  %600 = vmatprep.subr.bf16.mxu1 %v616_v8 }
  0x1b   :  { %575 = vmatpush3.bf16.msra.mxu0 %v616_v8  ;;  %608 = vmatpush3.bf16.msra.mxu1 %v616_v8 }
  0x1c   :  { %576 = vmatprep.subr.bf16.mxu0 %v617_v9  ;;  %601 = vmatprep.subr.bf16.mxu1 %v617_v9 }
  0x1f   :  { %577 = vmatpush3.bf16.msra.mxu0 %v617_v9  ;;  %609 = vmatpush3.bf16.msra.mxu1 %v617_v9 }
  0x22   :  { %579 = vmatmul.mubr.bf16.vlgmr.msra.gmra.mrb[0].mxu0 %v620_v10  ;;  %587 = vmatmul.mubr.bf16.vlgmr.msra.gmra.mrb[0].mxu1 %v621_v11 }
  0x23   :  { %582 = vmatprep.mubr.bf16.mxu0 %v622_v12  ;;  %590 = vmatprep.mubr.bf16.mxu1 %v623_v13 }
  0x2a   :  { %583 = vmatmul.mubr.bf16.gmra.mrb[4].mxu0 %v624_v14  ;;  %591 = vmatmul.mubr.bf16.gmra.mrb[4].mxu1 %v625_v15 }
  0xf5   :  { %v580_v17 = vpop.f32.mrb[0].mxu0  ;;  %v588_v18 = vpop.f32.mrb[0].mxu1 }
  0xf6   :  { %v336_v19 = vadd.f32 %v580_v17, %v466_v16  ;;  %v344_v20 = vadd.f32 %v588_v18, %v466_v16  ;;  %v213_v21 = vpop.f32.mrb[1].mxu0  ;;  %v245_v22 = vpop.f32.mrb[1].mxu1 }
  0xf7   :  { %v334_v23 = vadd.f32 %v466_v16, %v213_v21  ;;  %v342_v24 = vadd.f32 %v466_v16, %v245_v22  ;;  %v581_v25 = vpop.f32.mrb[2].mxu0  ;;  %v589_v26 = vpop.f32.mrb[2].mxu1 }
  0xf8   :  { %v337_v27 = vadd.f32 %v581_v25, %v466_v16  ;;  %v345_v28 = vadd.f32 %v589_v26, %v466_v16  ;;  %v216_v29 = vpop.f32.mrb[3].mxu0  ;;  %v248_v30 = vpop.f32.mrb[3].mxu1  ;;  %v352_v33 = vmax.f32 %v336_v19, 0.0  ;;  %v360_v34 = vmax.f32 %v344_v20, 0.0 }
  0xf9   :  { %v335_v31 = vadd.f32 %v466_v16, %v216_v29  ;;  %v343_v32 = vadd.f32 %v466_v16, %v248_v30  ;;  %v350_v37 = vmax.f32 %v334_v23, 0.0  ;;  %v358_v38 = vmax.f32 %v342_v24, 0.0 }
  0xfa   :  { %v353_v35 = vmax.f32 %v337_v27, 0.0  ;;  %v361_v36 = vmax.f32 %v345_v28, 0.0 }
  0xfb   :  { %v351_v39 = vmax.f32 %v335_v31, 0.0  ;;  %v359_v40 = vmax.f32 %v343_v32, 0.0 }
  0xfc   :  { %v507_v41 = vpack.c.bf16 %v353_v35, %v352_v33  ;;  %v527_v42 = vpack.c.bf16 %v361_v36, %v360_v34 }
  0xfd   :  { %v502_v43 = vpack.c.bf16 %v351_v39, %v350_v37  ;;  %v522_v44 = vpack.c.bf16 %v359_v40, %v358_v38  ;;  %v584_v45 = vpop.f32.mrb[4].mxu0  ;;  %v592_v46 = vpop.f32.mrb[4].mxu1 }
  0xfe   :  { %539 = vst [vmem:[%s724_s3 + $0x8] sm:$0xff] %v507_v41   ;;  %543 = vst [vmem:[%s724_s3 + $0x28] sm:$0xff] %v527_v42   ;;  %v340_v47 = vadd.f32 %v584_v45, %v466_v16  ;;  %v348_v48 = vadd.f32 %v592_v46, %v466_v16  ;;  %v229_v49 = vpop.f32.mrb[5].mxu0  ;;  %v261_v50 = vpop.f32.mrb[5].mxu1 }
  0xff   :  { %503 = vst [vmem:[%s724_s3] sm:$0xff] %v502_v43   ;;  %542 = vst [vmem:[%s724_s3 + $0x20] sm:$0xff] %v522_v44   ;;  %v338_v51 = vadd.f32 %v466_v16, %v229_v49  ;;  %v346_v52 = vadd.f32 %v466_v16, %v261_v50  ;;  %v585_v53 = vpop.f32.mrb[6].mxu0  ;;  %v593_v54 = vpop.f32.mrb[6].mxu1 }
 0x100   :  { %v341_v55 = vadd.f32 %v585_v53, %v466_v16  ;;  %v349_v56 = vadd.f32 %v593_v54, %v466_v16  ;;  %v232_v57 = vpop.f32.mrb[7].mxu0  ;;  %v264_v58 = vpop.f32.mrb[7].mxu1  ;;  %v356_v61 = vmax.f32 %v340_v47, 0.0  ;;  %v364_v62 = vmax.f32 %v348_v48, 0.0 }
 0x101   :  { %v339_v59 = vadd.f32 %v466_v16, %v232_v57  ;;  %v347_v60 = vadd.f32 %v466_v16, %v264_v58  ;;  %v354_v1 = vmax.f32 %v338_v51, 0.0  ;;  %v362_v2 = vmax.f32 %v346_v52, 0.0 }
 0x102   :  { %v357_v63 = vmax.f32 %v341_v55, 0.0  ;;  %v365_v0 = vmax.f32 %v349_v56, 0.0 }
 0x103   :  { %v355_v3 = vmax.f32 %v339_v59, 0.0  ;;  %v363_v4 = vmax.f32 %v347_v60, 0.0 }
 0x104   :  { %v517_v5 = vpack.c.bf16 %v357_v63, %v356_v61  ;;  %v537_v6 = vpack.c.bf16 %v365_v0, %v364_v62 }
 0x105   :  { %v512_v7 = vpack.c.bf16 %v355_v3, %v354_v1  ;;  %v532_v8 = vpack.c.bf16 %v363_v4, %v362_v2 }
 0x106   :  { %541 = vst [vmem:[%s724_s3 + $0x18] sm:$0xff] %v517_v5   ;;  %545 = vst [vmem:[%s724_s3 + $0x38] sm:$0xff] %v537_v6  }
 0x107   :  { %540 = vst [vmem:[%s724_s3 + $0x10] sm:$0xff] %v512_v7   ;;  %544 = vst [vmem:[%s724_s3 + $0x30] sm:$0xff] %v532_v8  }

// kernel: yowo_forward.8
= control target key start
LH: loop header
LB: loop body
LE: loop exit
PB: predicated region body
PF: predicated region fallthrough
CT: control target
= control target key end

     0   :  { %s1273_s12 = smov 0   ;;  %s1275_s13 = smov 0   ;;  %s1432_s0 = inlined_call_operand.vmem [shape: bf16[128,128], index: 0, kind: input, shape index: {}]   ;;  %s1433_s1 = inlined_call_operand.vmem [shape: bf16[128,256], index: 1, kind: input, shape index: {}]   ;;  %s1434_s2 = inlined_call_operand.vmem [shape: f32[1,256], index: 2, kind: input, shape index: {}]   ;;  %s1435_s3 = inlined_call_operand.vmem [shape: bf16[128,256], index: 3, kind: output, shape index: {}]  }
   0x1   :  { %s1277_s14 = smov 0   ;;  %s1279_s15 = smov 0  }
   0x2   :  { %s1281_s16 = smov 0  }
   0x3 LB: > { %s28_s17 = sadd.s32 1, %s1247_s15  ;;  %s983_s18 = sadd.s32 4294967295, %s1251_s16   ;;  %s1251_s16 = sphi %s1281_s16, %s13_s16   ;;  %s1247_s15 = sphi %s1279_s15, %s1440_s15   ;;  %s1243_s14 = sphi %s1277_s14, %s1439_s14   ;;  %s1239_s13 = sphi %s1275_s13, %s1438_s13   ;;  %s1235_s12 = sphi %s1273_s12, %s1437_s12  }
   0x4   : > { %p30_p0 = scmp.ge.s32.totalorder %s28_s17, 2  ;;  %p76_p1 = scmp.ne.s32.totalorder %s1239_s13, %s1235_s12 }
   0x5   : > { %p77_p2 = scmp.eq.s32.totalorder %s1251_s16, 0  ;;  %p134_p4 = scmp.eq.s32.totalorder %s983_s18, 1 }
   0x6   : > { %s1442_s17 = smov (%p30_p0, %s28_s17), 0  ;;  %s69_s20 = sadd.s32 1, %s1239_s13 }
   0x7   : > { %p78_p3 = por %p77_p2, %p76_p1  ;;  %s65_s19 = ssub.s32 %s1247_s15, %s1442_s17 }
   0x8   : > { %p67_p5 = scmp.eq.s32.totalorder %s65_s19, 0  ;;  %p1308_p6 = por %p134_p4, %p76_p1 }
   0x9   : > { %p987_p7 = scmp.ge.s32.totalorder %s1251_s16, 2 }
   0xa   : > { %s1313_s22 = scalar_select %p67_p5, %s1239_s13, %s69_s20  }
   0xb   : > { %168 = sbr.rel (%p987_p7) target bundleno = 32 (0x20), region = 20 }
  0x12   : > { %171 = sbr.rel (!%p78_p3) target bundleno = 32 (0x20), region = 24  ;;  %s173_s23 = sand.u32 (%p78_p3), 1, %s1239_s13  }
  0x13   : > { %s989_s24 = sshll.u32 (%p78_p3), %s1247_s15, 2  ;;  %s988_s25 = sshll.u32 (%p78_p3), %s173_s23, 6 }
  0x14   : > { %s1321_s28 = scalar_lea.vmem (%p78_p3), %s1433_s1, %s989_s24  ;;  %s175_s29 = scalar_lea.vmem (%p78_p3), [#allocation3], %s988_s25 }
  0x15   : > { %v196_v0 = vld [vmem:[%s1321_s28] sm:$0xf] (%p78_p3)  ;;  %v198_v1 = vld [vmem:[%s1321_s28 + $0x8] sm:$0xf] (%p78_p3)  ;;  %v200_v2 = vld [vmem:[%s1321_s28 + $0x10] sm:$0xf] (%p78_p3) }
  0x16   : > { %197 = vst [vmem:[%s175_s29] sm:$0xf] (%p78_p3), %v196_v0  ;;  %199 = vst [vmem:[%s175_s29 + $0x4] sm:$0xf] (%p78_p3), %v198_v1  ;;  %v202_v3 = vld [vmem:[%s1321_s28 + $0x18] sm:$0xf] (%p78_p3) }
  0x17   : > { %v204_v4 = vld [vmem:[%s1321_s28 + $0x20] sm:$0xf] (%p78_p3)  ;;  %201 = vst [vmem:[%s175_s29 + $0x8] sm:$0xf] (%p78_p3), %v200_v2  ;;  %203 = vst [vmem:[%s175_s29 + $0xc] sm:$0xf] (%p78_p3), %v202_v3 }
  0x18   : > { %205 = vst [vmem:[%s175_s29 + $0x10] sm:$0xf] (%p78_p3), %v204_v4  ;;  %v206_v5 = vld [vmem:[%s1321_s28 + $0x28] sm:$0xf] (%p78_p3)  ;;  %v208_v6 = vld [vmem:[%s1321_s28 + $0x30] sm:$0xf] (%p78_p3) }
  0x19   : > { %v210_v7 = vld [vmem:[%s1321_s28 + $0x38] sm:$0xf]  ;;  %207 = vst [vmem:[%s175_s29 + $0x14] sm:$0xf] %v206_v5  ;;  %209 = vst [vmem:[%s175_s29 + $0x18] sm:$0xf] %v208_v6 }
  0x1a   : > { %211 = vst [vmem:[%s175_s29 + $0x1c] sm:$0xf] %v210_v7  ;;  %v212_v8 = vld [vmem:[%s1321_s28 + $0x40] sm:$0xf]  ;;  %v214_v9 = vld [vmem:[%s1321_s28 + $0x48] sm:$0xf] }
  0x1b   : > { %v216_v10 = vld [vmem:[%s1321_s28 + $0x50] sm:$0xf]  ;;  %213 = vst [vmem:[%s175_s29 + $0x20] sm:$0xf] %v212_v8  ;;  %215 = vst [vmem:[%s175_s29 + $0x24] sm:$0xf] %v214_v9 }
  0x1c   : > { %217 = vst [vmem:[%s175_s29 + $0x28] sm:$0xf] %v216_v10  ;;  %v218_v11 = vld [vmem:[%s1321_s28 + $0x58] sm:$0xf]  ;;  %v220_v12 = vld [vmem:[%s1321_s28 + $0x60] sm:$0xf] }
  0x1d   : > { %v222_v13 = vld [vmem:[%s1321_s28 + $0x68] sm:$0xf]  ;;  %219 = vst [vmem:[%s175_s29 + $0x2c] sm:$0xf] %v218_v11  ;;  %221 = vst [vmem:[%s175_s29 + $0x30] sm:$0xf] %v220_v12 }
  0x1e   : > { %223 = vst [vmem:[%s175_s29 + $0x34] sm:$0xf] %v222_v13  ;;  %v224_v14 = vld [vmem:[%s1321_s28 + $0x70] sm:$0xf]  ;;  %v226_v15 = vld [vmem:[%s1321_s28 + $0x78] sm:$0xf] }
  0x1f   : > { %225 = vst [vmem:[%s175_s29 + $0x38] sm:$0xf] %v224_v14  ;;  %227 = vst [vmem:[%s175_s29 + $0x3c] sm:$0xf] %v226_v15 }
  0x20 PF: > { %p990_p8 = scmp.ge.s32.totalorder %s1251_s16, 1  ;;  %p287_p9 = scmp.lt.s32.totalorder %s1251_s16, 3 }
  0x22   : > { %p288_p10 = pnand %p990_p8, %p287_p9 }
  0x23   : > { %s294_s30 = sand.u32 (!%p288_p10), 1, %s1235_s12   ;;  %v1205_v16 = vld [vmem:[%s1432_s0] sm:$0xff] (!%p288_p10)   ;;  %v1207_v26 = vld [vmem:[%s1432_s0 + $0x8] sm:$0xff] (!%p288_p10)   ;;  %v1209_v28 = vld [vmem:[%s1432_s0 + $0x10] sm:$0xff] (!%p288_p10)   ;;  %p337_p11 = scmp.lt.s32.totalorder (!%p288_p10), %s1243_s14, 1 }
  0x24   : > { %291 = sbr.rel (%p288_p10) target bundleno = 312 (0x138), region = 69  ;;  %s1345_s6 = sshll.u32 (!%p288_p10), %s294_s30, 6  ;;  %v1206_v17 = vld [vmem:[%s1432_s0 + $0x20] sm:$0xff] (!%p288_p10)   ;;  %1125 = vmatprep.mubr.bf16.mxu0 (!%p288_p10), %v1205_v16  ;;  %v1208_v27 = vld [vmem:[%s1432_s0 + $0x28] sm:$0xff] (!%p288_p10)   ;;  %v1210_v29 = vld [vmem:[%s1432_s0 + $0x30] sm:$0xff] (!%p288_p10)  }
  0x25   : > { %s1351_s9 = scalar_lea.vmem (!%p288_p10), [#allocation3], %s1345_s6  ;;  %1133 = vmatprep.mubr.bf16.mxu1 (!%p288_p10), %v1206_v17  ;;  %v1211_v30 = vld [vmem:[%s1432_s0 + $0x18] sm:$0xff] (!%p288_p10)   ;;  %s1385_s7 = scalar_lea.vmem (!%p288_p10), [#allocation4], %s1345_s6 }
  0x26   : > { %v1197_v18 = vld [vmem:[%s1351_s9] sm:$0xff] (!%p288_p10)   ;;  %v1198_v19 = vld [vmem:[%s1351_s9 + $0x8] sm:$0xff] (!%p288_p10)   ;;  %v1199_v20 = vld [vmem:[%s1351_s9 + $0x10] sm:$0xff] (!%p288_p10)  }
  0x27   : > { %1109 = vmatprep.subr.bf16.mxu0 (!%p288_p10), %v1197_v18  ;;  %1141 = vmatprep.subr.bf16.mxu1 (!%p288_p10), %v1197_v18  ;;  %v1200_v21 = vld [vmem:[%s1351_s9 + $0x18] sm:$0xff] (!%p288_p10)   ;;  %v1201_v22 = vld [vmem:[%s1351_s9 + $0x20] sm:$0xff] (!%p288_p10)   ;;  %v1202_v23 = vld [vmem:[%s1351_s9 + $0x28] sm:$0xff] (!%p288_p10)  }
  0x28   : > { %1110 = vmatpush3.bf16.msra.mxu0 (!%p288_p10), %v1197_v18  ;;  %1149 = vmatpush3.bf16.msra.mxu1 (!%p288_p10), %v1197_v18  ;;  %v1203_v24 = vld [vmem:[%s1351_s9 + $0x30] sm:$0xff] (!%p288_p10)   ;;  %v1204_v25 = vld [vmem:[%s1351_s9 + $0x38] sm:$0xff] (!%p288_p10)  }
  0x29   : > { %1111 = vmatprep.subr.bf16.mxu0 (!%p288_p10), %v1198_v19  ;;  %1142 = vmatprep.subr.bf16.mxu1 (!%p288_p10), %v1198_v19  ;;  %v1212_v31 = vld [vmem:[%s1432_s0 + $0x38] sm:$0xff] (!%p288_p10)  }
  0x2b   : > { %s338_s29 = scalar_select %p337_p11, %s1243_s14, 1 }
  0x2c   : > { %1112 = vmatpush3.bf16.msra.mxu0 %v1198_v19  ;;  %1150 = vmatpush3.bf16.msra.mxu1 %v1198_v19  ;;  %s1027_s6 = sshll.u32 (%p1308_p6), %s1243_s14, 2 }
  0x2d   : > { %1113 = vmatprep.subr.bf16.mxu0 %v1199_v20  ;;  %1143 = vmatprep.subr.bf16.mxu1 %v1199_v20  ;;  %s339_s5 = scalar_lea.vmem %s1434_s2, %s338_s29  ;;  %s784_s10 = scalar_lea.vmem (%p1308_p6), %s1435_s3, %s1027_s6 }
  0x2e   : > { %v1009_v32 = vld [vmem:[%s339_s5] ss:$0 sm:$0xff] }
  0x30   : > { %1114 = vmatpush3.bf16.msra.mxu0 %v1199_v20  ;;  %1151 = vmatpush3.bf16.msra.mxu1 %v1199_v20 }
  0x31   : > { %1115 = vmatprep.subr.bf16.mxu0 %v1200_v21  ;;  %1144 = vmatprep.subr.bf16.mxu1 %v1200_v21 }
  0x34   : > { %1116 = vmatpush3.bf16.msra.mxu0 %v1200_v21  ;;  %1152 = vmatpush3.bf16.msra.mxu1 %v1200_v21 }
  0x35   : > { %1117 = vmatprep.subr.bf16.mxu0 %v1201_v22  ;;  %1145 = vmatprep.subr.bf16.mxu1 %v1201_v22 }
  0x38   : > { %1118 = vmatpush3.bf16.msra.mxu0 %v1201_v22  ;;  %1153 = vmatpush3.bf16.msra.mxu1 %v1201_v22 }
  0x39   : > { %1119 = vmatprep.subr.bf16.mxu0 %v1202_v23  ;;  %1146 = vmatprep.subr.bf16.mxu1 %v1202_v23 }
  0x3c   : > { %1120 = vmatpush3.bf16.msra.mxu0 %v1202_v23  ;;  %1154 = vmatpush3.bf16.msra.mxu1 %v1202_v23 }
  0x3d   : > { %1121 = vmatprep.subr.bf16.mxu0 %v1203_v24  ;;  %1147 = vmatprep.subr.bf16.mxu1 %v1203_v24 }
  0x40   : > { %1122 = vmatpush3.bf16.msra.mxu0 %v1203_v24  ;;  %1155 = vmatpush3.bf16.msra.mxu1 %v1203_v24 }
  0x41   : > { %1123 = vmatprep.subr.bf16.mxu0 %v1204_v25  ;;  %1148 = vmatprep.subr.bf16.mxu1 %v1204_v25 }
  0x44   : > { %1124 = vmatpush3.bf16.msra.mxu0 %v1204_v25  ;;  %1156 = vmatpush3.bf16.msra.mxu1 %v1204_v25 }
  0x47   : > { %1126 = vmatmul.mubr.bf16.vlgmr.msra.gmra.mrb[0].mxu0 %v1207_v26  ;;  %1134 = vmatmul.mubr.bf16.vlgmr.msra.gmra.mrb[0].mxu1 %v1208_v27 }
  0x48   : > { %1129 = vmatprep.mubr.bf16.mxu0 %v1209_v28  ;;  %1137 = vmatprep.mubr.bf16.mxu1 %v1210_v29 }
  0x4f   : > { %1130 = vmatmul.mubr.bf16.gmra.mrb[4].mxu0 %v1211_v30  ;;  %1138 = vmatmul.mubr.bf16.gmra.mrb[4].mxu1 %v1212_v31 }
 0x11a   : > { %v1127_v33 = vpop.f32.mrb[0].mxu0  ;;  %v1135_v34 = vpop.f32.mrb[0].mxu1 }
 0x11b   : > { %v663_v35 = vadd.f32 %v1127_v33, %v1009_v32  ;;  %v671_v36 = vadd.f32 %v1135_v34, %v1009_v32  ;;  %v540_v37 = vpop.f32.mrb[1].mxu0  ;;  %v572_v38 = vpop.f32.mrb[1].mxu1 }
 0x11c   : > { %v661_v39 = vadd.f32 %v1009_v32, %v540_v37  ;;  %v669_v40 = vadd.f32 %v1009_v32, %v572_v38  ;;  %v1128_v41 = vpop.f32.mrb[2].mxu0  ;;  %v1136_v42 = vpop.f32.mrb[2].mxu1 }
 0x11d   : > { %v664_v43 = vadd.f32 %v1128_v41, %v1009_v32  ;;  %v672_v44 = vadd.f32 %v1136_v42, %v1009_v32  ;;  %v543_v45 = vpop.f32.mrb[3].mxu0  ;;  %v575_v46 = vpop.f32.mrb[3].mxu1  ;;  %v679_v49 = vmax.f32 %v663_v35, 0.0  ;;  %v687_v50 = vmax.f32 %v671_v36, 0.0 }
 0x11e   : > { %v662_v47 = vadd.f32 %v1009_v32, %v543_v45  ;;  %v670_v48 = vadd.f32 %v1009_v32, %v575_v46  ;;  %v677_v53 = vmax.f32 %v661_v39, 0.0  ;;  %v685_v54 = vmax.f32 %v669_v40, 0.0 }
 0x11f   : > { %v680_v51 = vmax.f32 %v664_v43, 0.0  ;;  %v688_v52 = vmax.f32 %v672_v44, 0.0 }
 0x120   : > { %v678_v55 = vmax.f32 %v662_v47, 0.0  ;;  %v686_v56 = vmax.f32 %v670_v48, 0.0 }
 0x121   : > { %v1054_v57 = vpack.c.bf16 %v680_v51, %v679_v49  ;;  %v1074_v58 = vpack.c.bf16 %v688_v52, %v687_v50 }
 0x122   : > { %v1049_v59 = vpack.c.bf16 %v678_v55, %v677_v53  ;;  %v1069_v60 = vpack.c.bf16 %v686_v56, %v685_v54  ;;  %v1131_v61 = vpop.f32.mrb[4].mxu0  ;;  %v1139_v62 = vpop.f32.mrb[4].mxu1 }
 0x123   : > { %1086 = vst [vmem:[%s1385_s7 + $0x8] sm:$0xff] %v1054_v57   ;;  %1090 = vst [vmem:[%s1385_s7 + $0x28] sm:$0xff] %v1074_v58   ;;  %v667_v63 = vadd.f32 %v1131_v61, %v1009_v32  ;;  %v675_v0 = vadd.f32 %v1139_v62, %v1009_v32  ;;  %v556_v1 = vpop.f32.mrb[5].mxu0  ;;  %v588_v2 = vpop.f32.mrb[5].mxu1 }
 0x124   : > { %1050 = vst [vmem:[%s1385_s7] sm:$0xff] %v1049_v59   ;;  %1089 = vst [vmem:[%s1385_s7 + $0x20] sm:$0xff] %v1069_v60   ;;  %v665_v3 = vadd.f32 %v1009_v32, %v556_v1  ;;  %v673_v4 = vadd.f32 %v1009_v32, %v588_v2  ;;  %v1132_v5 = vpop.f32.mrb[6].mxu0  ;;  %v1140_v6 = vpop.f32.mrb[6].mxu1 }
 0x125   : > { %v668_v7 = vadd.f32 %v1132_v5, %v1009_v32  ;;  %v676_v8 = vadd.f32 %v1140_v6, %v1009_v32  ;;  %v559_v9 = vpop.f32.mrb[7].mxu0  ;;  %v591_v10 = vpop.f32.mrb[7].mxu1  ;;  %v683_v13 = vmax.f32 %v667_v63, 0.0  ;;  %v691_v14 = vmax.f32 %v675_v0, 0.0 }
 0x126   : > { %v666_v11 = vadd.f32 %v1009_v32, %v559_v9  ;;  %v674_v12 = vadd.f32 %v1009_v32, %v591_v10  ;;  %v681_v17 = vmax.f32 %v665_v3, 0.0  ;;  %v689_v18 = vmax.f32 %v673_v4, 0.0  ;;  %779 = sbr.rel (!%p1308_p6) target bundleno = 312 (0x138), region = 85 }
 0x127   : > { %v684_v15 = vmax.f32 %v668_v7, 0.0  ;;  %v692_v16 = vmax.f32 %v676_v8, 0.0 }
 0x128   : > { %v682_v19 = vmax.f32 %v666_v11, 0.0  ;;  %v690_v20 = vmax.f32 %v674_v12, 0.0 }
 0x129   : > { %v1064_v21 = vpack.c.bf16 %v684_v15, %v683_v13  ;;  %v1084_v22 = vpack.c.bf16 %v692_v16, %v691_v14 }
 0x12a   : > { %v1059_v23 = vpack.c.bf16 %v682_v19, %v681_v17  ;;  %v1079_v24 = vpack.c.bf16 %v690_v20, %v689_v18  ;;  %v804_v27 = vld [vmem:[%s1385_s7 + $0x8] sm:$0xf] (%p1308_p6)  ;;  %v806_v28 = vld [vmem:[%s1385_s7 + $0xc] sm:$0xf] (%p1308_p6) }
 0x12b   : > { %1088 = vst [vmem:[%s1385_s7 + $0x18] sm:$0xff] %v1064_v21   ;;  %1092 = vst [vmem:[%s1385_s7 + $0x38] sm:$0xff] %v1084_v22   ;;  %v800_v25 = vld [vmem:[%s1385_s7] sm:$0xf] (%p1308_p6)  ;;  %v802_v26 = vld [vmem:[%s1385_s7 + $0x4] sm:$0xf] (%p1308_p6) }
 0x12c   : > { %1087 = vst [vmem:[%s1385_s7 + $0x10] sm:$0xff] %v1059_v23   ;;  %1091 = vst [vmem:[%s1385_s7 + $0x30] sm:$0xff] %v1079_v24   ;;  %v816_v33 = vld [vmem:[%s1385_s7 + $0x20] sm:$0xf] (%p1308_p6)  ;;  %v818_v34 = vld [vmem:[%s1385_s7 + $0x24] sm:$0xf] (%p1308_p6) }
 0x12d   : > { %801 = vst [vmem:[%s784_s10] sm:$0xf] %v800_v25  ;;  %803 = vst [vmem:[%s784_s10 + $0x8] sm:$0xf] %v802_v26  ;;  %v820_v35 = vld [vmem:[%s1385_s7 + $0x28] sm:$0xf] }
 0x12e   : > { %805 = vst [vmem:[%s784_s10 + $0x10] sm:$0xf] %v804_v27  ;;  %807 = vst [vmem:[%s784_s10 + $0x18] sm:$0xf] %v806_v28  ;;  %v822_v36 = vld [vmem:[%s1385_s7 + $0x2c] sm:$0xf] }
 0x12f   : > { %817 = vst [vmem:[%s784_s10 + $0x40] sm:$0xf] %v816_v33  ;;  %819 = vst [vmem:[%s784_s10 + $0x48] sm:$0xf] %v818_v34 }
 0x130   : > { %821 = vst [vmem:[%s784_s10 + $0x50] sm:$0xf] %v820_v35  ;;  %823 = vst [vmem:[%s784_s10 + $0x58] sm:$0xf] %v822_v36 }
 0x132   : > { %v812_v31 = vld [vmem:[%s1385_s7 + $0x18] sm:$0xf]  ;;  %v814_v32 = vld [vmem:[%s1385_s7 + $0x1c] sm:$0xf] }
 0x133   : > { %v808_v29 = vld [vmem:[%s1385_s7 + $0x10] sm:$0xf]  ;;  %v810_v30 = vld [vmem:[%s1385_s7 + $0x14] sm:$0xf]  ;;  %813 = vst [vmem:[%s784_s10 + $0x30] sm:$0xf] %v812_v31 }
 0x134   : > { %809 = vst [vmem:[%s784_s10 + $0x20] sm:$0xf] %v808_v29  ;;  %811 = vst [vmem:[%s784_s10 + $0x28] sm:$0xf] %v810_v30  ;;  %v824_v37 = vld [vmem:[%s1385_s7 + $0x30] sm:$0xf] }
 0x135   : > { %815 = vst [vmem:[%s784_s10 + $0x38] sm:$0xf] %v814_v32  ;;  %v826_v38 = vld [vmem:[%s1385_s7 + $0x34] sm:$0xf]  ;;  %825 = vst [vmem:[%s784_s10 + $0x60] sm:$0xf] %v824_v37 }
 0x136   : > { %827 = vst [vmem:[%s784_s10 + $0x68] sm:$0xf] %v826_v38  ;;  %v828_v39 = vld [vmem:[%s1385_s7 + $0x38] sm:$0xf]  ;;  %v830_v40 = vld [vmem:[%s1385_s7 + $0x3c] sm:$0xf] }
 0x137   : > { %829 = vst [vmem:[%s784_s10 + $0x70] sm:$0xf] %v828_v39  ;;  %831 = vst [vmem:[%s784_s10 + $0x78] sm:$0xf] %v830_v40 }
 0x138 PF: > { %s13_s16 = sadd.s32 1, %s1251_s16   ;;  %s1437_s12 = smov %s1239_s13 }
 0x139   : > { %p10_p12 = scmp.ge.s32.totalorder %s13_s16, 4   ;;  %s1438_s13 = smov %s1313_s22 }
 0x13a   : > { %s1439_s14 = smov %s1247_s15  ;;  %s1440_s15 = smov %s1442_s17 }
 0x13b   :  { %12 = sbr.rel (!%p10_p12) target bundleno = 3 (0x3), region = 163 }

// kernel: yowo_forward.9
= control target key start
LH: loop header
LB: loop body
LE: loop exit
PB: predicated region body
PF: predicated region fallthrough
CT: control target
= control target key end

     0   :  { %s1768_s12 = smov 0   ;;  %s1770_s13 = smov 0   ;;  %s1998_s0 = inlined_call_operand.vmem [shape: bf16[128,2560], index: 0, kind: input, shape index: {}]   ;;  %s1999_s1 = inlined_call_operand.vmem [shape: bf16[2560,128], index: 1, kind: input, shape index: {}]   ;;  %s2000_s2 = inlined_call_operand.vmem [shape: f32[1,128], index: 2, kind: input, shape index: {}]   ;;  %s2001_s3 = inlined_call_operand.vmem [shape: bf16[128,128], index: 3, kind: output, shape index: {}]  }
   0x1   :  { %s1772_s14 = smov 0   ;;  %s1774_s15 = smov 0  }
   0x2   :  { %s1776_s16 = smov 0  }
   0x3 LB: > { %s25_s17 = sadd.s32 1, %s1741_s15  ;;  %p48_p1 = scmp.ne.s32.totalorder %s1733_s13, %s1729_s12  ;;  %s1745_s16 = sphi %s1776_s16, %s13_s16   ;;  %s1741_s15 = sphi %s1774_s15, %s2005_s15   ;;  %s1737_s14 = sphi %s1772_s14, %s2004_s14   ;;  %s1733_s13 = sphi %s1770_s13, %s2003_s13   ;;  %s1729_s12 = sphi %s1768_s12, %s2002_s12  }
   0x4   : > { %p26_p0 = scmp.ge.s32.totalorder %s25_s17, 5  ;;  %p49_p2 = scmp.eq.s32.totalorder %s1745_s16, 0 }
   0x5   : > { %s41_s19 = sadd.s32 1, %s1733_s13  ;;  %p1299_p5 = scmp.ge.s32.totalorder %s1745_s16, 5 }
   0x6   : > { %s2007_s17 = smov (%p26_p0, %s25_s17), 0  ;;  %p50_p3 = por %p49_p2, %p48_p1 }
   0x7   : > { %s37_s18 = ssub.s32 %s1741_s15, %s2007_s17  ;;  %162 = sbr.rel (%p1299_p5) target bundleno = 34 (0x22), region = 20 }
   0x8   : > { %p39_p4 = scmp.eq.s32.totalorder %s37_s18, 0 }
   0xa   : > { %s1803_s20 = scalar_select %p39_p4, %s1733_s13, %s41_s19  }
   0xe   : > { %165 = sbr.rel (!%p50_p3) target bundleno = 34 (0x22), region = 24  ;;  %s167_s21 = sand.u32 (%p50_p3), 1, %s1733_s13  }
   0xf   : > { %s1394_s22 = sshll.u32 (%p50_p3), %s1741_s15, 4  ;;  %s1300_s23 = sshll.u32 (%p50_p3), %s167_s21, 8 }
  0x10   : > { %s1811_s26 = scalar_lea.vmem (%p50_p3), %s1998_s0, %s1394_s22  ;;  %s1816_s27 = scalar_lea.vmem (%p50_p3), [#allocation3], %s1300_s23 }
  0x11   : > { %v188_v0 = vld [vmem:[%s1811_s26] sm:$0xff] (%p50_p3)  ;;  %v190_v1 = vld [vmem:[%s1811_s26 + $0x8] sm:$0xff] (%p50_p3)  ;;  %v192_v2 = vld [vmem:[%s1811_s26 + $0x50] sm:$0xff] (%p50_p3) }
  0x12   : > { %189 = vst [vmem:[%s1816_s27] sm:$0xff] (%p50_p3), %v188_v0  ;;  %191 = vst [vmem:[%s1816_s27 + $0x8] sm:$0xff] (%p50_p3), %v190_v1  ;;  %v194_v3 = vld [vmem:[%s1811_s26 + $0x58] sm:$0xff] (%p50_p3)  ;;  %v196_v4 = vld [vmem:[%s1811_s26 + $0xa0] sm:$0xff] (%p50_p3) }
  0x13   : > { %193 = vst [vmem:[%s1816_s27 + $0x10] sm:$0xff] (%p50_p3), %v192_v2  ;;  %v198_v5 = vld [vmem:[%s1811_s26 + $0xa8] sm:$0xff] (%p50_p3)  ;;  %195 = vst [vmem:[%s1816_s27 + $0x18] sm:$0xff] (%p50_p3), %v194_v3  ;;  %v200_v6 = vld [vmem:[%s1811_s26 + $0xf0] sm:$0xff] (%p50_p3) }
  0x14   : > { %197 = vst [vmem:[%s1816_s27 + $0x20] sm:$0xff] (%p50_p3), %v196_v4  ;;  %199 = vst [vmem:[%s1816_s27 + $0x28] sm:$0xff] (%p50_p3), %v198_v5  ;;  %v202_v7 = vld [vmem:[%s1811_s26 + $0xf8] sm:$0xff] (%p50_p3)  ;;  %v204_v8 = vld [vmem:[%s1811_s26 + $0x140] sm:$0xff] (%p50_p3) }
  0x15   : > { %201 = vst [vmem:[%s1816_s27 + $0x30] sm:$0xff] %v200_v6  ;;  %203 = vst [vmem:[%s1816_s27 + $0x38] sm:$0xff] %v202_v7  ;;  %v206_v9 = vld [vmem:[%s1811_s26 + $0x148] sm:$0xff]  ;;  %v208_v10 = vld [vmem:[%s1811_s26 + $0x190] sm:$0xff] }
  0x16   : > { %205 = vst [vmem:[%s1816_s27 + $0x40] sm:$0xff] %v204_v8  ;;  %v210_v11 = vld [vmem:[%s1811_s26 + $0x198] sm:$0xff]  ;;  %207 = vst [vmem:[%s1816_s27 + $0x48] sm:$0xff] %v206_v9  ;;  %v212_v12 = vld [vmem:[%s1811_s26 + $0x1e0] sm:$0xff] }
  0x17   : > { %209 = vst [vmem:[%s1816_s27 + $0x50] sm:$0xff] %v208_v10  ;;  %211 = vst [vmem:[%s1816_s27 + $0x58] sm:$0xff] %v210_v11  ;;  %v214_v13 = vld [vmem:[%s1811_s26 + $0x1e8] sm:$0xff]  ;;  %v216_v14 = vld [vmem:[%s1811_s26 + $0x230] sm:$0xff] }
  0x18   : > { %213 = vst [vmem:[%s1816_s27 + $0x60] sm:$0xff] %v212_v12  ;;  %215 = vst [vmem:[%s1816_s27 + $0x68] sm:$0xff] %v214_v13  ;;  %v218_v15 = vld [vmem:[%s1811_s26 + $0x238] sm:$0xff]  ;;  %v220_v16 = vld [vmem:[%s1811_s26 + $0x280] sm:$0xff] }
  0x19   : > { %217 = vst [vmem:[%s1816_s27 + $0x70] sm:$0xff] %v216_v14  ;;  %v222_v17 = vld [vmem:[%s1811_s26 + $0x288] sm:$0xff]  ;;  %219 = vst [vmem:[%s1816_s27 + $0x78] sm:$0xff] %v218_v15  ;;  %v224_v18 = vld [vmem:[%s1811_s26 + $0x2d0] sm:$0xff] }
  0x1a   : > { %221 = vst [vmem:[%s1816_s27 + $0x80] sm:$0xff] %v220_v16  ;;  %223 = vst [vmem:[%s1816_s27 + $0x88] sm:$0xff] %v222_v17  ;;  %v226_v19 = vld [vmem:[%s1811_s26 + $0x2d8] sm:$0xff]  ;;  %v228_v20 = vld [vmem:[%s1811_s26 + $0x320] sm:$0xff] }
  0x1b   : > { %225 = vst [vmem:[%s1816_s27 + $0x90] sm:$0xff] %v224_v18  ;;  %227 = vst [vmem:[%s1816_s27 + $0x98] sm:$0xff] %v226_v19  ;;  %v230_v21 = vld [vmem:[%s1811_s26 + $0x328] sm:$0xff]  ;;  %v232_v22 = vld [vmem:[%s1811_s26 + $0x370] sm:$0xff] }
  0x1c   : > { %229 = vst [vmem:[%s1816_s27 + $0xa0] sm:$0xff] %v228_v20  ;;  %v234_v23 = vld [vmem:[%s1811_s26 + $0x378] sm:$0xff]  ;;  %231 = vst [vmem:[%s1816_s27 + $0xa8] sm:$0xff] %v230_v21  ;;  %v236_v24 = vld [vmem:[%s1811_s26 + $0x3c0] sm:$0xff] }
  0x1d   : > { %233 = vst [vmem:[%s1816_s27 + $0xb0] sm:$0xff] %v232_v22  ;;  %235 = vst [vmem:[%s1816_s27 + $0xb8] sm:$0xff] %v234_v23  ;;  %v238_v25 = vld [vmem:[%s1811_s26 + $0x3c8] sm:$0xff]  ;;  %v240_v26 = vld [vmem:[%s1811_s26 + $0x410] sm:$0xff] }
  0x1e   : > { %237 = vst [vmem:[%s1816_s27 + $0xc0] sm:$0xff] %v236_v24  ;;  %239 = vst [vmem:[%s1816_s27 + $0xc8] sm:$0xff] %v238_v25  ;;  %v242_v27 = vld [vmem:[%s1811_s26 + $0x418] sm:$0xff]  ;;  %v244_v28 = vld [vmem:[%s1811_s26 + $0x460] sm:$0xff] }
  0x1f   : > { %241 = vst [vmem:[%s1816_s27 + $0xd0] sm:$0xff] %v240_v26  ;;  %v246_v29 = vld [vmem:[%s1811_s26 + $0x468] sm:$0xff]  ;;  %243 = vst [vmem:[%s1816_s27 + $0xd8] sm:$0xff] %v242_v27  ;;  %v248_v30 = vld [vmem:[%s1811_s26 + $0x4b0] sm:$0xff] }
  0x20   : > { %245 = vst [vmem:[%s1816_s27 + $0xe0] sm:$0xff] %v244_v28  ;;  %247 = vst [vmem:[%s1816_s27 + $0xe8] sm:$0xff] %v246_v29  ;;  %v250_v31 = vld [vmem:[%s1811_s26 + $0x4b8] sm:$0xff] }
  0x21   : > { %249 = vst [vmem:[%s1816_s27 + $0xf0] sm:$0xff] %v248_v30  ;;  %251 = vst [vmem:[%s1816_s27 + $0xf8] sm:$0xff] %v250_v31 }
  0x22 PF: > { %p1303_p6 = scmp.ge.s32.totalorder %s1745_s16, 1  ;;  %p268_p7 = scmp.lt.s32.totalorder %s1745_s16, 6 }
  0x24   : > { %p269_p8 = pnand %p1303_p6, %p268_p7 }
  0x25   : > { %s275_s28 = sand.u32 (!%p269_p8), 1, %s1729_s12   ;;  %s1305_s29 = sshll.u32 (!%p269_p8), %s1737_s14, 6 }
  0x26   : > { %272 = sbr.rel (%p269_p8) target bundleno = 382 (0x17e), region = 51  ;;  %s1304_s30 = sshll.u32 (!%p269_p8), %s275_s28, 8 }
  0x27   : > { %p315_p9 = scmp.lt.s32.totalorder (!%p269_p8), %s1305_s29, 319  ;;  %s1888_s8 = scalar_lea.vmem (!%p269_p8), [#allocation3], %s1304_s30 }
  0x28   : > { %p1307_p10 = scmp.ne.s32.totalorder (!%p269_p8), %s1737_s14, 0 }
  0x2d   : > { %s2009_s29 = smov (!%p315_p9, %s1305_s29), 319  ;;  %339 = sbr.rel (%p1307_p10) target bundleno = 55 (0x37), region = 59 }
  0x2e   : > { %s1306_s4 = sshll.u32 %s2009_s29, 2  ;;  %v1747_v32 = vmov (!%p1307_p10), 0.0  }
  0x2f   : > { %s1886_s7 = scalar_lea.vmem %s1999_s1, %s1306_s4  ;;  %340 = vst [vmem:[#allocation2] sm:$0xff] (!%p1307_p10), %v1747_v32  ;;  %341 = vst [vmem:[#allocation2 + $0x8] sm:$0xff] (!%p1307_p10), %v1747_v32 }
  0x30   : > { %342 = vst [vmem:[#allocation2 + $0x10] sm:$0xff] (!%p1307_p10), %v1747_v32  ;;  %343 = vst [vmem:[#allocation2 + $0x18] sm:$0xff] (!%p1307_p10), %v1747_v32 }
  0x31   : > { %344 = vst [vmem:[#allocation2 + $0x20] sm:$0xff] (!%p1307_p10), %v1747_v32  ;;  %345 = vst [vmem:[#allocation2 + $0x28] sm:$0xff] (!%p1307_p10), %v1747_v32 }
  0x32   : > { %346 = vst [vmem:[#allocation2 + $0x30] sm:$0xff] (!%p1307_p10), %v1747_v32  ;;  %347 = vst [vmem:[#allocation2 + $0x38] sm:$0xff] (!%p1307_p10), %v1747_v32 }
  0x33   : > { %348 = vst [vmem:[#allocation2 + $0x40] sm:$0xff] (!%p1307_p10), %v1747_v32  ;;  %349 = vst [vmem:[#allocation2 + $0x48] sm:$0xff] (!%p1307_p10), %v1747_v32 }
  0x34   : > { %350 = vst [vmem:[#allocation2 + $0x50] sm:$0xff] %v1747_v32  ;;  %351 = vst [vmem:[#allocation2 + $0x58] sm:$0xff] %v1747_v32 }
  0x35   : > { %352 = vst [vmem:[#allocation2 + $0x60] sm:$0xff] %v1747_v32  ;;  %353 = vst [vmem:[#allocation2 + $0x68] sm:$0xff] %v1747_v32 }
  0x36   : > { %354 = vst [vmem:[#allocation2 + $0x70] sm:$0xff] %v1747_v32  ;;  %355 = vst [vmem:[#allocation2 + $0x78] sm:$0xff] %v1747_v32 }
  0x37 PF: > { %v1627_v33 = vld [vmem:[%s1886_s7 + $0x40] sm:$0xff]   ;;  %v1631_v37 = vld [vmem:[%s1886_s7 + $0x48] sm:$0xff]   ;;  %v1635_v41 = vld [vmem:[%s1886_s7 + $0x50] sm:$0xff]   ;;  %p1372_p11 = scmp.ne.s32.totalorder %s1737_s14, 4 }
  0x38   : > { %v1628_v34 = vld [vmem:[%s1886_s7 + $0xc0] sm:$0xff]   ;;  %1458 = vmatprep.subr.bf16.mxu0 %v1627_v33  ;;  %v1632_v38 = vld [vmem:[%s1886_s7 + $0xc8] sm:$0xff]   ;;  %v1636_v42 = vld [vmem:[%s1886_s7 + $0xd0] sm:$0xff]  }
  0x39   : > { %v1629_v35 = vld [vmem:[%s1886_s7] sm:$0xff]   ;;  %1522 = vmatprep.subr.bf16.mxu1 %v1628_v34  ;;  %v1633_v39 = vld [vmem:[%s1886_s7 + $0x8] sm:$0xff]   ;;  %v1637_v43 = vld [vmem:[%s1886_s7 + $0x10] sm:$0xff]  }
  0x3a   : > { %v1630_v36 = vld [vmem:[%s1886_s7 + $0x80] sm:$0xff]   ;;  %1459 = vmatpush3.bf16.msra.mxu0 %v1629_v35  ;;  %v1634_v40 = vld [vmem:[%s1886_s7 + $0x88] sm:$0xff]   ;;  %v1638_v44 = vld [vmem:[%s1886_s7 + $0x90] sm:$0xff]  }
  0x3b   : > { %1523 = vmatpush3.bf16.msra.mxu1 %v1630_v36  ;;  %1460 = vmatprep.subr.bf16.mxu0 %v1631_v37  ;;  %v1639_v45 = vld [vmem:[%s1886_s7 + $0x58] sm:$0xff]   ;;  %v1643_v49 = vld [vmem:[%s1886_s7 + $0x60] sm:$0xff]   ;;  %v1647_v53 = vld [vmem:[%s1886_s7 + $0x68] sm:$0xff]  }
  0x3c   : > { %1524 = vmatprep.subr.bf16.mxu1 %v1632_v38  ;;  %v1640_v46 = vld [vmem:[%s1886_s7 + $0xd8] sm:$0xff]   ;;  %v1644_v50 = vld [vmem:[%s1886_s7 + $0xe0] sm:$0xff]   ;;  %v1648_v54 = vld [vmem:[%s1886_s7 + $0xe8] sm:$0xff]  }
  0x3d   : > { %v1641_v47 = vld [vmem:[%s1886_s7 + $0x18] sm:$0xff]   ;;  %v1645_v51 = vld [vmem:[%s1886_s7 + $0x20] sm:$0xff]   ;;  %v1649_v55 = vld [vmem:[%s1886_s7 + $0x28] sm:$0xff]  }
  0x3e   : > { %1461 = vmatpush3.bf16.msra.mxu0 %v1633_v39  ;;  %v1642_v48 = vld [vmem:[%s1886_s7 + $0x98] sm:$0xff]   ;;  %v1646_v52 = vld [vmem:[%s1886_s7 + $0xa0] sm:$0xff]   ;;  %v1650_v56 = vld [vmem:[%s1886_s7 + $0xa8] sm:$0xff]  }
  0x3f   : > { %1525 = vmatpush3.bf16.msra.mxu1 %v1634_v40  ;;  %1462 = vmatprep.subr.bf16.mxu0 %v1635_v41  ;;  %v1651_v57 = vld [vmem:[%s1886_s7 + $0x70] sm:$0xff]   ;;  %v1655_v61 = vld [vmem:[%s1886_s7 + $0x78] sm:$0xff]  }
  0x40   : > { %1526 = vmatprep.subr.bf16.mxu1 %v1636_v42  ;;  %v1652_v58 = vld [vmem:[%s1886_s7 + $0xf0] sm:$0xff]   ;;  %v1656_v62 = vld [vmem:[%s1886_s7 + $0xf8] sm:$0xff]   ;;  %v356_v42 = vld [vmem:[#allocation2] sm:$0xff] }
  0x41   : > { %v1653_v59 = vld [vmem:[%s1886_s7 + $0x30] sm:$0xff]   ;;  %v1657_v63 = vld [vmem:[%s1886_s7 + $0x38] sm:$0xff]  }
  0x42   : > { %1463 = vmatpush3.bf16.msra.mxu0 %v1637_v43  ;;  %v1654_v60 = vld [vmem:[%s1886_s7 + $0xb0] sm:$0xff]   ;;  %v1658_v0 = vld [vmem:[%s1886_s7 + $0xb8] sm:$0xff]  }
  0x43   : > { %1527 = vmatpush3.bf16.msra.mxu1 %v1638_v44  ;;  %1464 = vmatprep.subr.bf16.mxu0 %v1639_v45  ;;  %v1659_v1 = vld [vmem:[%s1888_s8] ss:$16 sps:$4 sm:$0xff]   ;;  %v1661_v2 = vld [vmem:[%s1888_s8 + $0x4] ss:$16 sps:$4 sm:$0xff]   ;;  %v1662_v3 = vld [vmem:[%s1888_s8 + $0x8] ss:$16 sps:$4 sm:$0xff]  }
  0x44   : > { %1528 = vmatprep.subr.bf16.mxu1 %v1640_v46  ;;  %v1664_v4 = vld [vmem:[%s1888_s8 + $0xc] ss:$16 sps:$4 sm:$0xff]   ;;  %852 = vmatprep.mubr.bf16.mxu0 %v1661_v2  ;;  %v1665_v5 = vld [vmem:[%s1888_s8 + $0x24] ss:$16 sps:$4 sm:$0xff]   ;;  %v1669_v7 = vld [vmem:[%s1888_s8 + $0x20] ss:$16 sps:$4 sm:$0xff]  }
  0x45   : > { %949 = vmatprep.mubr.bf16.mxu1 %v1664_v4  ;;  %v1667_v6 = vld [vmem:[%s1888_s8 + $0x2c] ss:$16 sps:$4 sm:$0xff]   ;;  %v1670_v8 = vld [vmem:[%s1888_s8 + $0x28] ss:$16 sps:$4 sm:$0xff]   ;;  %v1671_v9 = vld [vmem:[%s1888_s8 + $0x44] ss:$16 sps:$4 sm:$0xff]  }
  0x46   : > { %1465 = vmatpush3.bf16.msra.mxu0 %v1641_v47  ;;  %v1673_v10 = vld [vmem:[%s1888_s8 + $0x4c] ss:$16 sps:$4 sm:$0xff]   ;;  %v1675_v11 = vld [vmem:[%s1888_s8 + $0x40] ss:$16 sps:$4 sm:$0xff]   ;;  %v1676_v12 = vld [vmem:[%s1888_s8 + $0x48] ss:$16 sps:$4 sm:$0xff]  }
  0x47   : > { %1529 = vmatpush3.bf16.msra.mxu1 %v1642_v48  ;;  %1466 = vmatprep.subr.bf16.mxu0 %v1643_v49  ;;  %v1677_v13 = vld [vmem:[%s1888_s8 + $0x64] ss:$16 sps:$4 sm:$0xff]   ;;  %v1679_v14 = vld [vmem:[%s1888_s8 + $0x6c] ss:$16 sps:$4 sm:$0xff]   ;;  %v1681_v15 = vld [vmem:[%s1888_s8 + $0x60] ss:$16 sps:$4 sm:$0xff]  }
  0x48   : > { %1530 = vmatprep.subr.bf16.mxu1 %v1644_v50  ;;  %v1682_v16 = vld [vmem:[%s1888_s8 + $0x68] ss:$16 sps:$4 sm:$0xff]   ;;  %v1683_v17 = vld [vmem:[%s1888_s8 + $0x84] ss:$16 sps:$4 sm:$0xff]   ;;  %v1685_v18 = vld [vmem:[%s1888_s8 + $0x8c] ss:$16 sps:$4 sm:$0xff]  }
  0x49   : > { %v1687_v19 = vld [vmem:[%s1888_s8 + $0x80] ss:$16 sps:$4 sm:$0xff]   ;;  %v1688_v20 = vld [vmem:[%s1888_s8 + $0x88] ss:$16 sps:$4 sm:$0xff]   ;;  %v1689_v21 = vld [vmem:[%s1888_s8 + $0xa4] ss:$16 sps:$4 sm:$0xff]  }
  0x4a   : > { %1467 = vmatpush3.bf16.msra.mxu0 %v1645_v51  ;;  %v1691_v22 = vld [vmem:[%s1888_s8 + $0xac] ss:$16 sps:$4 sm:$0xff]   ;;  %v1693_v23 = vld [vmem:[%s1888_s8 + $0xa0] ss:$16 sps:$4 sm:$0xff]   ;;  %v1694_v24 = vld [vmem:[%s1888_s8 + $0xa8] ss:$16 sps:$4 sm:$0xff]  }
  0x4b   : > { %1531 = vmatpush3.bf16.msra.mxu1 %v1646_v52  ;;  %1468 = vmatprep.subr.bf16.mxu0 %v1647_v53  ;;  %v1695_v25 = vld [vmem:[%s1888_s8 + $0xc4] ss:$16 sps:$4 sm:$0xff]   ;;  %v1697_v26 = vld [vmem:[%s1888_s8 + $0xcc] ss:$16 sps:$4 sm:$0xff]   ;;  %v1699_v27 = vld [vmem:[%s1888_s8 + $0xc0] ss:$16 sps:$4 sm:$0xff]  }
  0x4c   : > { %1532 = vmatprep.subr.bf16.mxu1 %v1648_v54  ;;  %v1700_v28 = vld [vmem:[%s1888_s8 + $0xc8] ss:$16 sps:$4 sm:$0xff]   ;;  %v1701_v29 = vld [vmem:[%s1888_s8 + $0xe4] ss:$16 sps:$4 sm:$0xff]   ;;  %v1703_v30 = vld [vmem:[%s1888_s8 + $0xec] ss:$16 sps:$4 sm:$0xff]  }
  0x4d   : > { %v1705_v31 = vld [vmem:[%s1888_s8 + $0xe0] ss:$16 sps:$4 sm:$0xff]   ;;  %v1706_v32 = vld [vmem:[%s1888_s8 + $0xe8] ss:$16 sps:$4 sm:$0xff]  }
  0x4e   : > { %1469 = vmatpush3.bf16.msra.mxu0 %v1649_v55  ;;  %v357_v47 = vld [vmem:[#allocation2 + $0x8] sm:$0xff] }
  0x4f   : > { %1533 = vmatpush3.bf16.msra.mxu1 %v1650_v56  ;;  %1470 = vmatprep.subr.bf16.mxu0 %v1651_v57 }
  0x50   : > { %1534 = vmatprep.subr.bf16.mxu1 %v1652_v58 }
  0x52   : > { %1471 = vmatpush3.bf16.msra.mxu0 %v1653_v59 }
  0x53   : > { %1535 = vmatpush3.bf16.msra.mxu1 %v1654_v60  ;;  %1472 = vmatprep.subr.bf16.mxu0 %v1655_v61  ;;  %v358_v60 = vld [vmem:[#allocation2 + $0x10] sm:$0xff] }
  0x54   : > { %1536 = vmatprep.subr.bf16.mxu1 %v1656_v62 }
  0x56   : > { %1473 = vmatpush3.bf16.msra.mxu0 %v1657_v63 }
  0x57   : > { %1537 = vmatpush3.bf16.msra.mxu1 %v1658_v0 }
  0x59   : > { %853 = vmatmul.mubr.bf16.vlgmr.msra.gmra.mrb[0].mxu0 %v1659_v1  ;;  %v359_v1 = vld [vmem:[#allocation2 + $0x18] sm:$0xff] }
  0x5a   : > { %950 = vmatmul.mubr.bf16.vlgmr.msra.gmra.mrb[0].mxu1 %v1662_v3  ;;  %860 = vmatprep.mubr.bf16.mxu0 %v1665_v5 }
  0x5b   : > { %957 = vmatprep.mubr.bf16.mxu1 %v1667_v6 }
  0x61   : > { %861 = vmatmul.mubr.bf16.gmra.mrb[4].mxu0 %v1669_v7 }
  0x62   : > { %958 = vmatmul.mubr.bf16.gmra.mrb[4].mxu1 %v1670_v8  ;;  %868 = vmatprep.mubr.bf16.mxu0 %v1671_v9 }
  0x63   : > { %965 = vmatprep.mubr.bf16.mxu1 %v1673_v10 }
  0x69   : > { %869 = vmatmul.mubr.bf16.gmra.mrb[8].mxu0 %v1675_v11 }
  0x6a   : > { %966 = vmatmul.mubr.bf16.gmra.mrb[8].mxu1 %v1676_v12  ;;  %876 = vmatprep.mubr.bf16.mxu0 %v1677_v13 }
  0x6b   : > { %973 = vmatprep.mubr.bf16.mxu1 %v1679_v14  ;;  %v360_v14 = vld [vmem:[#allocation2 + $0x20] sm:$0xff] }
  0x71   : > { %877 = vmatmul.mubr.bf16.gmra.mrb[12].mxu0 %v1681_v15 }
  0x72   : > { %974 = vmatmul.mubr.bf16.gmra.mrb[12].mxu1 %v1682_v16  ;;  %884 = vmatprep.mubr.bf16.mxu0 %v1683_v17 }
  0x73   : > { %981 = vmatprep.mubr.bf16.mxu1 %v1685_v18 }
  0x79   : > { %885 = vmatmul.mubr.bf16.gmra.mrb[16].mxu0 %v1687_v19  ;;  %v361_v19 = vld [vmem:[#allocation2 + $0x28] sm:$0xff] }
  0x7a   : > { %982 = vmatmul.mubr.bf16.gmra.mrb[16].mxu1 %v1688_v20  ;;  %892 = vmatprep.mubr.bf16.mxu0 %v1689_v21 }
  0x7b   : > { %989 = vmatprep.mubr.bf16.mxu1 %v1691_v22 }
  0x81   : > { %893 = vmatmul.mubr.bf16.gmra.mrb[20].mxu0 %v1693_v23 }
  0x82   : > { %990 = vmatmul.mubr.bf16.gmra.mrb[20].mxu1 %v1694_v24  ;;  %900 = vmatprep.mubr.bf16.mxu0 %v1695_v25 }
  0x83   : > { %997 = vmatprep.mubr.bf16.mxu1 %v1697_v26 }
  0x89   : > { %901 = vmatmul.mubr.bf16.gmra.mrb[24].mxu0 %v1699_v27 }
  0x8a   : > { %998 = vmatmul.mubr.bf16.gmra.mrb[24].mxu1 %v1700_v28  ;;  %908 = vmatprep.mubr.bf16.mxu0 %v1701_v29 }
  0x8b   : > { %1005 = vmatprep.mubr.bf16.mxu1 %v1703_v30 }
  0x91   : > { %909 = vmatmul.mubr.bf16.gmra.mrb[28].mxu0 %v1705_v31 }
  0x92   : > { %1006 = vmatmul.mubr.bf16.gmra.mrb[28].mxu1 %v1706_v32  ;;  %v362_v32 = vld [vmem:[#allocation2 + $0x30] sm:$0xff] }
 0x12c   : > { %v1474_v33 = vpop.f32.mrb[0].mxu0 }
 0x12d   : > { %v1538_v34 = vpop.f32.mrb[0].mxu1  ;;  %v1475_v35 = vpop.f32.mrb[1].mxu0 }
 0x12e   : > { %v1476_v36 = vadd.f32 %v1475_v35, %v1474_v33  ;;  %v1539_v37 = vpop.f32.mrb[1].mxu1  ;;  %v1477_v38 = vpop.f32.mrb[2].mxu0 }
 0x12f   : > { %v1540_v39 = vadd.f32 %v1539_v37, %v1538_v34  ;;  %v1541_v40 = vpop.f32.mrb[2].mxu1  ;;  %v1478_v41 = vpop.f32.mrb[3].mxu0  ;;  %v363_v37 = vld [vmem:[#allocation2 + $0x38] sm:$0xff] }
 0x130   : > { %v1479_v43 = vadd.f32 %v1478_v41, %v1477_v38  ;;  %v1542_v44 = vpop.f32.mrb[3].mxu1 }
 0x131   : > { %v952_v45 = vadd.f32 %v1540_v39, %v1476_v36  ;;  %v1543_v46 = vadd.f32 %v1542_v44, %v1541_v40 }
 0x133   : > { %v1014_v48 = vadd.f32 %v952_v45, %v356_v42  ;;  %v955_v49 = vadd.f32 %v1543_v46, %v1479_v43 }
 0x134   : > { %v1480_v50 = vpop.f32.mrb[4].mxu0 }
 0x135   : > { %1030 = vst [vmem:[#allocation2] sm:$0xff] %v1014_v48  ;;  %v1015_v51 = vadd.f32 %v955_v49, %v357_v47  ;;  %v1544_v52 = vpop.f32.mrb[4].mxu1  ;;  %v1481_v53 = vpop.f32.mrb[5].mxu0 }
 0x136   : > { %v1482_v54 = vadd.f32 %v1481_v53, %v1480_v50  ;;  %v1545_v55 = vpop.f32.mrb[5].mxu1  ;;  %v1483_v56 = vpop.f32.mrb[6].mxu0  ;;  %v364_v50 = vld [vmem:[#allocation2 + $0x40] sm:$0xff] }
 0x137   : > { %1031 = vst [vmem:[#allocation2 + $0x8] sm:$0xff] %v1015_v51  ;;  %v1546_v57 = vadd.f32 %v1545_v55, %v1544_v52  ;;  %v1547_v58 = vpop.f32.mrb[6].mxu1  ;;  %v1484_v59 = vpop.f32.mrb[7].mxu0  ;;  %v365_v55 = vld [vmem:[#allocation2 + $0x48] sm:$0xff] }
 0x138   : > { %v1485_v61 = vadd.f32 %v1484_v59, %v1483_v56  ;;  %v1548_v62 = vpop.f32.mrb[7].mxu1 }
 0x139   : > { %v960_v63 = vadd.f32 %v1546_v57, %v1482_v54  ;;  %v1549_v0 = vadd.f32 %v1548_v62, %v1547_v58 }
 0x13b   : > { %v1016_v2 = vadd.f32 %v960_v63, %v358_v60  ;;  %v963_v3 = vadd.f32 %v1549_v0, %v1485_v61 }
 0x13c   : > { %v1486_v4 = vpop.f32.mrb[8].mxu0 }
 0x13d   : > { %1032 = vst [vmem:[#allocation2 + $0x10] sm:$0xff] %v1016_v2  ;;  %v1017_v5 = vadd.f32 %v963_v3, %v359_v1  ;;  %v1550_v6 = vpop.f32.mrb[8].mxu1  ;;  %v1487_v7 = vpop.f32.mrb[9].mxu0 }
 0x13e   : > { %v1488_v8 = vadd.f32 %v1487_v7, %v1486_v4  ;;  %v1551_v9 = vpop.f32.mrb[9].mxu1  ;;  %v1489_v10 = vpop.f32.mrb[10].mxu0  ;;  %v366_v4 = vld [vmem:[#allocation2 + $0x50] sm:$0xff] }
 0x13f   : > { %1033 = vst [vmem:[#allocation2 + $0x18] sm:$0xff] %v1017_v5  ;;  %v1552_v11 = vadd.f32 %v1551_v9, %v1550_v6  ;;  %v1553_v12 = vpop.f32.mrb[10].mxu1  ;;  %v1490_v13 = vpop.f32.mrb[11].mxu0  ;;  %v367_v9 = vld [vmem:[#allocation2 + $0x58] sm:$0xff] }
 0x140   : > { %v1491_v15 = vadd.f32 %v1490_v13, %v1489_v10  ;;  %v1554_v16 = vpop.f32.mrb[11].mxu1 }
 0x141   : > { %v968_v17 = vadd.f32 %v1552_v11, %v1488_v8  ;;  %v1555_v18 = vadd.f32 %v1554_v16, %v1553_v12 }
 0x143   : > { %v1018_v20 = vadd.f32 %v968_v17, %v360_v14  ;;  %v971_v21 = vadd.f32 %v1555_v18, %v1491_v15 }
 0x144   : > { %v1492_v22 = vpop.f32.mrb[12].mxu0 }
 0x145   : > { %1034 = vst [vmem:[#allocation2 + $0x20] sm:$0xff] %v1018_v20  ;;  %v1019_v23 = vadd.f32 %v971_v21, %v361_v19  ;;  %v1556_v24 = vpop.f32.mrb[12].mxu1  ;;  %v1493_v25 = vpop.f32.mrb[13].mxu0 }
 0x146   : > { %v1494_v26 = vadd.f32 %v1493_v25, %v1492_v22  ;;  %v1557_v27 = vpop.f32.mrb[13].mxu1  ;;  %v1495_v28 = vpop.f32.mrb[14].mxu0  ;;  %v368_v22 = vld [vmem:[#allocation2 + $0x60] sm:$0xff] }
 0x147   : > { %1035 = vst [vmem:[#allocation2 + $0x28] sm:$0xff] %v1019_v23  ;;  %v1558_v29 = vadd.f32 %v1557_v27, %v1556_v24  ;;  %v1559_v30 = vpop.f32.mrb[14].mxu1  ;;  %v1496_v31 = vpop.f32.mrb[15].mxu0  ;;  %v369_v27 = vld [vmem:[#allocation2 + $0x68] sm:$0xff] }
 0x148   : > { %v1497_v33 = vadd.f32 %v1496_v31, %v1495_v28  ;;  %v1560_v34 = vpop.f32.mrb[15].mxu1 }
 0x149   : > { %v976_v35 = vadd.f32 %v1558_v29, %v1494_v26  ;;  %v1561_v36 = vadd.f32 %v1560_v34, %v1559_v30 }
 0x14b   : > { %v1020_v38 = vadd.f32 %v976_v35, %v362_v32  ;;  %v979_v39 = vadd.f32 %v1561_v36, %v1497_v33 }
 0x14c   : > { %v1498_v40 = vpop.f32.mrb[16].mxu0 }
 0x14d   : > { %1036 = vst [vmem:[#allocation2 + $0x30] sm:$0xff] %v1020_v38  ;;  %v1021_v41 = vadd.f32 %v979_v39, %v363_v37  ;;  %v1562_v42 = vpop.f32.mrb[16].mxu1  ;;  %v1499_v43 = vpop.f32.mrb[17].mxu0 }
 0x14e   : > { %v1500_v44 = vadd.f32 %v1499_v43, %v1498_v40  ;;  %v1563_v45 = vpop.f32.mrb[17].mxu1  ;;  %v1501_v46 = vpop.f32.mrb[18].mxu0  ;;  %v370_v40 = vld [vmem:[#allocation2 + $0x70] sm:$0xff] }
 0x14f   : > { %1037 = vst [vmem:[#allocation2 + $0x38] sm:$0xff] %v1021_v41  ;;  %v1564_v47 = vadd.f32 %v1563_v45, %v1562_v42  ;;  %v1565_v48 = vpop.f32.mrb[18].mxu1  ;;  %v1502_v49 = vpop.f32.mrb[19].mxu0  ;;  %v371_v45 = vld [vmem:[#allocation2 + $0x78] sm:$0xff] }
 0x150   : > { %v1503_v51 = vadd.f32 %v1502_v49, %v1501_v46  ;;  %v1566_v52 = vpop.f32.mrb[19].mxu1  ;;  %v1050_v49 = vld [vmem:[#allocation2] sm:$0xff] (!%p1372_p11) }
 0x151   : > { %v984_v53 = vadd.f32 %v1564_v47, %v1500_v44  ;;  %v1567_v54 = vadd.f32 %v1566_v52, %v1565_v48 }
 0x153   : > { %v1022_v56 = vadd.f32 %v984_v53, %v364_v50  ;;  %v987_v57 = vadd.f32 %v1567_v54, %v1503_v51  ;;  %v1051_v50 = vld [vmem:[#allocation2 + $0x8] sm:$0xff] (!%p1372_p11)  ;;  %v1373_v51 = vld [vmem:[%s2000_s2] ss:$0 sm:$0xff] (!%p1372_p11)  ;;  %v1052_v54 = vld [vmem:[#allocation2 + $0x10] sm:$0xff] (!%p1372_p11) }
 0x154   : > { %v1504_v58 = vpop.f32.mrb[20].mxu0  ;;  %v1073_v52 = vadd.f32 (!%p1372_p11), %v1373_v51, %v1050_v49  ;;  %v1074_v53 = vadd.f32 (!%p1372_p11), %v1373_v51, %v1051_v50 }
 0x155   : > { %1038 = vst [vmem:[#allocation2 + $0x40] sm:$0xff] %v1022_v56  ;;  %v1023_v59 = vadd.f32 %v987_v57, %v365_v55  ;;  %v1568_v60 = vpop.f32.mrb[20].mxu1  ;;  %v1505_v61 = vpop.f32.mrb[21].mxu0  ;;  %v1053_v55 = vld [vmem:[#allocation2 + $0x18] sm:$0xff] (!%p1372_p11)  ;;  %v1054_v56 = vld [vmem:[#allocation2 + $0x20] sm:$0xff] (!%p1372_p11)  ;;  %v1075_v57 = vadd.f32 (!%p1372_p11), %v1373_v51, %v1052_v54 }
 0x156   : > { %v1506_v62 = vadd.f32 %v1505_v61, %v1504_v58  ;;  %v1569_v63 = vpop.f32.mrb[21].mxu1  ;;  %v1507_v0 = vpop.f32.mrb[22].mxu0  ;;  %v1076_v58 = vadd.f32 (!%p1372_p11), %v1373_v51, %v1053_v55  ;;  %v1056_v61 = vld [vmem:[#allocation2 + $0x30] sm:$0xff] (!%p1372_p11) }
 0x157   : > { %1039 = vst [vmem:[#allocation2 + $0x48] sm:$0xff] %v1023_v59  ;;  %v1570_v1 = vadd.f32 %v1569_v63, %v1568_v60  ;;  %v1571_v2 = vpop.f32.mrb[22].mxu1  ;;  %v1508_v3 = vpop.f32.mrb[23].mxu0  ;;  %v1055_v59 = vld [vmem:[#allocation2 + $0x28] sm:$0xff] (!%p1372_p11)  ;;  %v1077_v60 = vadd.f32 (!%p1372_p11), %v1373_v51, %v1054_v56  ;;  %v1089_v63 = vmax.f32 (!%p1372_p11), %v1073_v52, 0.0 }
 0x158   : > { %v1509_v5 = vadd.f32 %v1508_v3, %v1507_v0  ;;  %v1572_v6 = vpop.f32.mrb[23].mxu1  ;;  %v1090_v0 = vmax.f32 (!%p1372_p11), %v1074_v53, 0.0 }
 0x159   : > { %v992_v7 = vadd.f32 %v1570_v1, %v1506_v62  ;;  %v1573_v8 = vadd.f32 %v1572_v6, %v1571_v2  ;;  %v1057_v62 = vld [vmem:[#allocation2 + $0x38] sm:$0xff] (!%p1372_p11)  ;;  %v1078_v1 = vadd.f32 (!%p1372_p11), %v1373_v51, %v1055_v59  ;;  %v1079_v2 = vadd.f32 (!%p1372_p11), %v1373_v51, %v1056_v61 }
 0x15a   : > { %v1091_v6 = vmax.f32 (!%p1372_p11), %v1075_v57, 0.0 }
 0x15b   : > { %v1024_v10 = vadd.f32 %v992_v7, %v366_v4  ;;  %v995_v11 = vadd.f32 %v1573_v8, %v1509_v5  ;;  %v1092_v7 = vmax.f32 (!%p1372_p11), %v1076_v58, 0.0  ;;  %v1093_v8 = vmax.f32 (!%p1372_p11), %v1077_v60, 0.0 }
 0x15c   : > { %v1510_v12 = vpop.f32.mrb[24].mxu0  ;;  %v1058_v3 = vld [vmem:[#allocation2 + $0x40] sm:$0xff] (!%p1372_p11) }
 0x15d   : > { %1040 = vst [vmem:[#allocation2 + $0x50] sm:$0xff] %v1024_v10  ;;  %v1025_v13 = vadd.f32 %v995_v11, %v367_v9  ;;  %v1574_v14 = vpop.f32.mrb[24].mxu1  ;;  %v1511_v15 = vpop.f32.mrb[25].mxu0  ;;  %v1080_v9 = vadd.f32 (!%p1372_p11), %v1373_v51, %v1057_v62 }
 0x15e   : > { %v1512_v16 = vadd.f32 %v1511_v15, %v1510_v12  ;;  %v1575_v17 = vpop.f32.mrb[25].mxu1  ;;  %v1513_v18 = vpop.f32.mrb[26].mxu0  ;;  %v1059_v4 = vld [vmem:[#allocation2 + $0x48] sm:$0xff] (!%p1372_p11)  ;;  %v1414_v12 = vpack.c.bf16 (!%p1372_p11), %v1090_v0, %v1089_v63  ;;  %v1081_v15 = vadd.f32 (!%p1372_p11), %v1373_v51, %v1058_v3 }
 0x15f   : > { %1041 = vst [vmem:[#allocation2 + $0x58] sm:$0xff] %v1025_v13  ;;  %v1576_v19 = vadd.f32 %v1575_v17, %v1574_v14  ;;  %v1577_v20 = vpop.f32.mrb[26].mxu1  ;;  %v1514_v21 = vpop.f32.mrb[27].mxu0  ;;  %v1094_v13 = vmax.f32 (!%p1372_p11), %v1078_v1, 0.0  ;;  %v1095_v14 = vmax.f32 (!%p1372_p11), %v1079_v2, 0.0  ;;  %v1419_v17 = vpack.c.bf16 (!%p1372_p11), %v1092_v7, %v1091_v6 }
 0x160   : > { %v1515_v23 = vadd.f32 %v1514_v21, %v1513_v18  ;;  %v1578_v24 = vpop.f32.mrb[27].mxu1  ;;  %v1096_v18 = vmax.f32 (!%p1372_p11), %v1080_v9, 0.0  ;;  %1415 = vst [vmem:[%s2001_s3] sm:$0xff] (!%p1372_p11), %v1414_v12  }
 0x161   : > { %v1000_v25 = vadd.f32 %v1576_v19, %v1512_v16  ;;  %v1579_v26 = vadd.f32 %v1578_v24, %v1577_v20  ;;  %v1082_v19 = vadd.f32 (!%p1372_p11), %v1373_v51, %v1059_v4  ;;  %v1097_v24 = vmax.f32 (!%p1372_p11), %v1081_v15, 0.0  ;;  %1451 = vst [vmem:[%s2001_s3 + $0x8] sm:$0xff] (!%p1372_p11), %v1419_v17  }
 0x163   : > { %v1026_v28 = vadd.f32 %v1000_v25, %v368_v22  ;;  %v1003_v29 = vadd.f32 %v1579_v26, %v1515_v23  ;;  %v1424_v23 = vpack.c.bf16 (!%p1372_p11), %v1094_v13, %v1093_v8 }
 0x164   : > { %v1516_v30 = vpop.f32.mrb[28].mxu0  ;;  %v1060_v5 = vld [vmem:[#allocation2 + $0x50] sm:$0xff] (!%p1372_p11) }
 0x165   : > { %1042 = vst [vmem:[#allocation2 + $0x60] sm:$0xff] %v1026_v28  ;;  %v1027_v31 = vadd.f32 %v1003_v29, %v369_v27  ;;  %v1580_v32 = vpop.f32.mrb[28].mxu1  ;;  %v1517_v33 = vpop.f32.mrb[29].mxu0  ;;  %v1083_v20 = vadd.f32 (!%p1372_p11), %v1373_v51, %v1060_v5  ;;  %v1429_v27 = vpack.c.bf16 (!%p1372_p11), %v1096_v18, %v1095_v14  ;;  %v1098_v28 = vmax.f32 (!%p1372_p11), %v1082_v19, 0.0  ;;  %1452 = vst [vmem:[%s2001_s3 + $0x10] sm:$0xff] (!%p1372_p11), %v1424_v23  }
 0x166   : > { %v1518_v34 = vadd.f32 %v1517_v33, %v1516_v30  ;;  %v1581_v35 = vpop.f32.mrb[29].mxu1  ;;  %v1519_v36 = vpop.f32.mrb[30].mxu0  ;;  %v1061_v10 = vld [vmem:[#allocation2 + $0x58] sm:$0xff] (!%p1372_p11) }
 0x167   : > { %1043 = vst [vmem:[#allocation2 + $0x68] sm:$0xff] %v1027_v31  ;;  %v1582_v37 = vadd.f32 %v1581_v35, %v1580_v32  ;;  %v1583_v38 = vpop.f32.mrb[30].mxu1  ;;  %v1520_v39 = vpop.f32.mrb[31].mxu0  ;;  %v1084_v25 = vadd.f32 (!%p1372_p11), %v1373_v51, %v1061_v10  ;;  %v1099_v29 = vmax.f32 (!%p1372_p11), %v1083_v20, 0.0  ;;  %1453 = vst [vmem:[%s2001_s3 + $0x18] sm:$0xff] (!%p1372_p11), %v1429_v27   ;;  %v1434_v35 = vpack.c.bf16 (!%p1372_p11), %v1098_v28, %v1097_v24 }
 0x168   : > { %v1521_v41 = vadd.f32 %v1520_v39, %v1519_v36  ;;  %v1584_v42 = vpop.f32.mrb[31].mxu1 }
 0x169   : > { %v1008_v43 = vadd.f32 %v1582_v37, %v1518_v34  ;;  %v1585_v44 = vadd.f32 %v1584_v42, %v1583_v38  ;;  %1049 = sbr.rel (%p1372_p11) target bundleno = 382 (0x17e), region = 63  ;;  %v1100_v31 = vmax.f32 (!%p1372_p11), %v1084_v25, 0.0  ;;  %1454 = vst [vmem:[%s2001_s3 + $0x20] sm:$0xff] (!%p1372_p11), %v1434_v35  }
 0x16b   : > { %v1028_v46 = vadd.f32 %v1008_v43, %v370_v40  ;;  %v1011_v47 = vadd.f32 %v1585_v44, %v1521_v41  ;;  %v1439_v37 = vpack.c.bf16 (!%p1372_p11), %v1100_v31, %v1099_v29 }
 0x16c   : > { %v1062_v11 = vld [vmem:[#allocation2 + $0x60] sm:$0xff] (!%p1372_p11) }
 0x16d   : > { %1044 = vst [vmem:[#allocation2 + $0x70] sm:$0xff] %v1028_v46  ;;  %v1029_v48 = vadd.f32 %v1011_v47, %v371_v45  ;;  %v1085_v26 = vadd.f32 (!%p1372_p11), %v1373_v51, %v1062_v11  ;;  %1455 = vst [vmem:[%s2001_s3 + $0x28] sm:$0xff] (!%p1372_p11), %v1439_v37  }
 0x16e   : > { %v1063_v16 = vld [vmem:[#allocation2 + $0x68] sm:$0xff] (!%p1372_p11) }
 0x16f   : > { %1045 = vst [vmem:[#allocation2 + $0x78] sm:$0xff] %v1029_v48  ;;  %v1086_v30 = vadd.f32 (!%p1372_p11), %v1373_v51, %v1063_v16  ;;  %v1101_v32 = vmax.f32 (!%p1372_p11), %v1085_v26, 0.0 }
 0x171   : > { %v1102_v36 = vmax.f32 %v1086_v30, 0.0 }
 0x173   : > { %v1444_v40 = vpack.c.bf16 %v1102_v36, %v1101_v32 }
 0x174   : > { %v1064_v21 = vld [vmem:[#allocation2 + $0x70] sm:$0xff] }
 0x175   : > { %v1087_v33 = vadd.f32 %v1373_v51, %v1064_v21  ;;  %1456 = vst [vmem:[%s2001_s3 + $0x30] sm:$0xff] %v1444_v40  }
 0x176   : > { %v1065_v22 = vld [vmem:[#allocation2 + $0x78] sm:$0xff] }
 0x177   : > { %v1088_v34 = vadd.f32 %v1373_v51, %v1065_v22  ;;  %v1103_v38 = vmax.f32 %v1087_v33, 0.0 }
 0x179   : > { %v1104_v39 = vmax.f32 %v1088_v34, 0.0 }
 0x17b   : > { %v1449_v41 = vpack.c.bf16 %v1104_v39, %v1103_v38 }
 0x17d   : > { %1457 = vst [vmem:[%s2001_s3 + $0x38] sm:$0xff] %v1449_v41  }
 0x17e PF: > { %s13_s16 = sadd.s32 1, %s1745_s16   ;;  %s2002_s12 = smov %s1733_s13 }
 0x17f   : > { %p10_p12 = scmp.ge.s32.totalorder %s13_s16, 7   ;;  %s2003_s13 = smov %s1803_s20 }
 0x180   : > { %s2004_s14 = smov %s1741_s15  ;;  %s2005_s15 = smov %s2007_s17 }
 0x181   :  { %12 = sbr.rel (!%p10_p12) target bundleno = 3 (0x3), region = 104 }

// kernel: yowo_forward.11
= control target key start
LH: loop header
LB: loop body
LE: loop exit
PB: predicated region body
PF: predicated region fallthrough
CT: control target
= control target key end

     0   :  { %s897_s11 = smov 0   ;;  %s1057_s0 = inlined_call_operand.vmem [shape: bf16[2,64,128], index: 0, kind: input, shape index: {}]   ;;  %s1058_s1 = inlined_call_operand.<no memory space> [shape: f32[1], index: 1, kind: input, shape index: {}]   ;;  %s1059_s2 = inlined_call_operand.vmem [shape: bf16[2,64,128], index: 2, kind: output, shape index: {}]  }
   0x1   :  { %7 = sst [smem:[#allocation2]] %s1058_s1 }
   0x2 LB: > { %s654_s12 = sadd.s32 4294967295, %s877_s11   ;;  %p658_p0 = scmp.ge.s32.totalorder %s877_s11, 1  ;;  %s877_s11 = sphi %s897_s11, %s13_s11  }
   0x3   : > { %p113_p1 = scmp.lt.s32.totalorder %s877_s11, 3 }
   0x5   : > { %p114_p2 = pnand %p658_p0, %p113_p1 }
   0x6   : > { %p135_p3 = scmp.lt.s32.totalorder (!%p114_p2), %s654_s12, 1  ;;  %vm194_vm0 = vcmask (!%p114_p2), 523264   ;;  %s533_s16 = sld [smem:[#allocation2]] (!%p114_p2) }
   0x7   : > { %117 = sbr.rel (%p114_p2) target bundleno = 950 (0x3b6), region = 28 }
   0xe   : > { %s1061_s12 = smov (!%p135_p3, %s654_s12), 1 }
   0xf   : > { %s685_s1 = sshll.u32 %s1061_s12, 5 }
  0x10   : > { %s139_s15 = scalar_lea.vmem %s1057_s0, %s685_s1  ;;  %s144_s19 = scalar_lea.vmem %s1059_s2, %s685_s1 }
  0x11   : > { %v913_v0 = vld [vmem:[%s139_s15] sm:$0xff]   ;;  %v915_v1 = vld [vmem:[%s139_s15 + $0x8] sm:$0xff]   ;;  %v919_v2 = vld [vmem:[%s139_s15 + $0x10] sm:$0xff]  }
  0x12   : > { %178 = vxpose.xlu0.c.b16.start [1/4] (short) %v913_v0, 128  ;;  %742 = vmatprep.subr.bf16.mxu0 %v913_v0  ;;  %v925_v3 = vld [vmem:[%s139_s15 + $0x18] sm:$0xff]  }
  0x13   : > { %743 = vmatpush3.bf16.msra.mxu0 %v913_v0  ;;  %782 = vmatprep.mubr.bf16.mxu1 %v913_v0 }
  0x14   : > { %744 = vmatprep.subr.bf16.mxu0 %v915_v1 }
  0x16   : > { %179 = vxpose.xlu0.c.b16.cont [2/4] (short) %v915_v1, 128 }
  0x17   : > { %745 = vmatpush3.bf16.msra.mxu0 %v915_v1 }
  0x18   : > { %746 = vmatprep.subr.bf16.mxu0 %v919_v2 }
  0x1a   : > { %180 = vxpose.xlu0.c.b16.cont [3/4] (short) %v919_v2, 128 }
  0x1b   : > { %747 = vmatpush3.bf16.msra.mxu0 %v919_v2 }
  0x1c   : > { %748 = vmatprep.subr.bf16.mxu0 %v925_v3 }
  0x1e   : > { %181 = vxpose.xlu0.c.b16.end [4/4] (short) %v925_v3, 128 }
  0x1f   : > { %749 = vmatpush3.bf16.msra.mxu0 %v925_v3 }
  0x78   : > { %v186_v4 = vpop.trf.xlu0 }
  0x79   : > { %750 = vmatprep.mubr.msk.bf16.mxu0 %vm194_vm0, %v186_v4 }
  0x7c   : > { %v187_v5 = vpop.trf.xlu0 }
  0x7d   : > { %751 = vmatmul.mubr.msk.bf16.vlgmr.msra.gmra.mrb[0].mxu0 %vm194_vm0, %v187_v5 }
  0x80   : > { %v188_v6 = vpop.trf.xlu0 }
  0x81   : > { %754 = vmatprep.mubr.msk.bf16.mxu0 %vm194_vm0, %v188_v6 }
  0x84   : > { %v189_v7 = vpop.trf.xlu0 }
  0x85   : > { %755 = vmatmul.mubr.msk.bf16.gmra.mrb[4].mxu0 %vm194_vm0, %v189_v7 }
  0x88   : > { %v190_v8 = vpop.trf.xlu0 }
  0x89   : > { %758 = vmatprep.mubr.msk.bf16.mxu0 %vm194_vm0, %v190_v8 }
  0x8c   : > { %v191_v9 = vpop.trf.xlu0 }
  0x8d   : > { %759 = vmatmul.mubr.msk.bf16.gmra.mrb[8].mxu0 %vm194_vm0, %v191_v9 }
  0x90   : > { %v192_v10 = vpop.trf.xlu0 }
  0x91   : > { %762 = vmatprep.mubr.msk.bf16.mxu0 %vm194_vm0, %v192_v10 }
  0x94   : > { %v193_v11 = vpop.trf.xlu0 }
  0x95   : > { %763 = vmatmul.mubr.msk.bf16.gmra.mrb[12].mxu0 %vm194_vm0, %v193_v11 }
 0x150   : > { %v752_v12 = vpop.f32.mrb[0].mxu0 }
 0x151   : > { %v253_v13 = vpop.f32.mrb[1].mxu0 }
 0x152   : > { %316 = vmin.xlane.f32.xlu1 %v253_v13  ;;  %v753_v14 = vpop.f32.mrb[2].mxu0 }
 0x153   : > { %v256_v15 = vpop.f32.mrb[3].mxu0 }
 0x156   : > { %318 = vmin.xlane.f32.xlu1 %v256_v15 }
 0x158   : > { %v756_v16 = vpop.f32.mrb[4].mxu0 }
 0x159   : > { %v269_v17 = vpop.f32.mrb[5].mxu0 }
 0x15a   : > { %320 = vmin.xlane.f32.xlu1 %v752_v12  ;;  %324 = vmin.xlane.f32.xlu0 %v269_v17  ;;  %v757_v18 = vpop.f32.mrb[6].mxu0 }
 0x15b   : > { %v272_v19 = vpop.f32.mrb[7].mxu0 }
 0x15e   : > { %322 = vmin.xlane.f32.xlu1 %v753_v14 }
 0x160   : > { %v942_v20 = vpop.f32.mrb[8].mxu0 }
 0x161   : > { %v944_v21 = vpop.f32.mrb[9].mxu0 }
 0x162   : > { %326 = vmin.xlane.f32.xlu1 %v272_v19  ;;  %v946_v22 = vpop.f32.mrb[10].mxu0 }
 0x163   : > { %v948_v23 = vpop.f32.mrb[11].mxu0 }
 0x166   : > { %328 = vmin.xlane.f32.xlu1 %v756_v16 }
 0x168   : > { %v950_v24 = vpop.f32.mrb[12].mxu0 }
 0x169   : > { %v952_v25 = vpop.f32.mrb[13].mxu0 }
 0x16a   : > { %330 = vmin.xlane.f32.xlu1 %v757_v18  ;;  %v954_v26 = vpop.f32.mrb[14].mxu0 }
 0x16b   : > { %v956_v27 = vpop.f32.mrb[15].mxu0 }
 0x16c   : > { %342 = vmin.xlane.f32.xlu0 %v956_v27 }
 0x16e   : > { %332 = vmin.xlane.f32.xlu1 %v944_v21 }
 0x170   : > { %346 = vmin.xlane.f32.xlu0 %v954_v26 }
 0x172   : > { %334 = vmin.xlane.f32.xlu1 %v948_v23 }
 0x176   : > { %336 = vmin.xlane.f32.xlu1 %v942_v20 }
 0x17a   : > { %338 = vmin.xlane.f32.xlu1 %v946_v22 }
 0x17e   : > { %340 = vmin.xlane.f32.xlu1 %v952_v25 }
 0x182   : > { %344 = vmin.xlane.f32.xlu1 %v950_v24 }
 0x1df   : > { %v317_v28 = vpop.xlane.xlu1 %316 }
 0x1e0   : > { %v348_v29 = vsub.f32 %v317_v28, %v253_v13 }
 0x1e2   : > { %v364_v30 = vmul.f32 1.442695, %v348_v29 }
 0x1e3   : > { %v319_v31 = vpop.xlane.xlu1 %318 }
 0x1e4   : > { %807 = vpow2.f32 %v364_v30  ;;  %v349_v32 = vsub.f32 %v319_v31, %v256_v15 }
 0x1e6   : > { %v366_v33 = vmul.f32 1.442695, %v349_v32 }
 0x1e7   : > { %v321_v34 = vpop.xlane.xlu1 %320  ;;  %v325_v35 = vpop.xlane.xlu0 %324 }
 0x1e8   : > { %809 = vpow2.f32 %v366_v33  ;;  %v350_v36 = vsub.f32 %v321_v34, %v752_v12  ;;  %v352_v37 = vsub.f32 %v325_v35, %v269_v17 }
 0x1ea   : > { %v368_v38 = vmul.f32 1.442695, %v350_v36  ;;  %v372_v39 = vmul.f32 1.442695, %v352_v37 }
 0x1eb   : > { %v323_v40 = vpop.xlane.xlu1 %322 }
 0x1ec   : > { %811 = vpow2.f32 %v368_v38  ;;  %v351_v41 = vsub.f32 %v323_v40, %v753_v14 }
 0x1ed   : > { %813 = vpow2.f32 %v372_v39 }
 0x1ee   : > { %v966_v42 = vpop.eup %807  ;;  %v370_v43 = vmul.f32 1.442695, %v351_v41 }
 0x1ef   : > { %v327_v44 = vpop.xlane.xlu1 %326  ;;  %396 = vadd.xlane.f32.xlu1 %v966_v42 }
 0x1f0   : > { %815 = vpow2.f32 %v370_v43  ;;  %v353_v45 = vsub.f32 %v327_v44, %v272_v19 }
 0x1f2   : > { %v969_v46 = vpop.eup %809  ;;  %v374_v47 = vmul.f32 1.442695, %v353_v45 }
 0x1f3   : > { %v329_v48 = vpop.xlane.xlu1 %328  ;;  %398 = vadd.xlane.f32.xlu0 %v969_v46 }
 0x1f4   : > { %817 = vpow2.f32 %v374_v47  ;;  %v354_v49 = vsub.f32 %v329_v48, %v756_v16 }
 0x1f6   : > { %v972_v50 = vpop.eup %811  ;;  %v376_v51 = vmul.f32 1.442695, %v354_v49 }
 0x1f7   : > { %v331_v52 = vpop.xlane.xlu1 %330  ;;  %400 = vadd.xlane.f32.xlu1 %v972_v50  ;;  %v975_v54 = vpop.eup %813 }
 0x1f8   : > { %819 = vpow2.f32 %v376_v51  ;;  %v355_v53 = vsub.f32 %v331_v52, %v757_v18 }
 0x1f9   : > { %v343_v4 = vpop.xlane.xlu0 %342 }
 0x1fa   : > { %v977_v55 = vpop.eup %815  ;;  %v378_v56 = vmul.f32 1.442695, %v355_v53  ;;  %v361_v10 = vsub.f32 %v343_v4, %v956_v27 }
 0x1fb   : > { %v333_v57 = vpop.xlane.xlu1 %332  ;;  %404 = vadd.xlane.f32.xlu1 %v975_v54  ;;  %402 = vadd.xlane.f32.xlu0 %v977_v55 }
 0x1fc   : > { %821 = vpow2.f32 %v378_v56  ;;  %v356_v58 = vsub.f32 %v333_v57, %v944_v21  ;;  %v390_v16 = vmul.f32 1.442695, %v361_v10 }
 0x1fd   : > { %v347_v12 = vpop.xlane.xlu0 %346 }
 0x1fe   : > { %v982_v59 = vpop.eup %817  ;;  %v380_v60 = vmul.f32 1.442695, %v356_v58  ;;  %v363_v17 = vsub.f32 %v347_v12, %v954_v26 }
 0x1ff   : > { %v335_v61 = vpop.xlane.xlu1 %334  ;;  %406 = vadd.xlane.f32.xlu0 %v982_v59 }
 0x200   : > { %823 = vpow2.f32 %v380_v60  ;;  %v357_v62 = vsub.f32 %v335_v61, %v948_v23  ;;  %v394_v23 = vmul.f32 1.442695, %v363_v17 }
 0x202   : > { %v986_v63 = vpop.eup %819  ;;  %v382_v5 = vmul.f32 1.442695, %v357_v62 }
 0x203   : > { %v337_v6 = vpop.xlane.xlu1 %336  ;;  %408 = vadd.xlane.f32.xlu1 %v986_v63 }
 0x204   : > { %825 = vpow2.f32 %v382_v5  ;;  %v358_v7 = vsub.f32 %v337_v6, %v942_v20 }
 0x206   : > { %v990_v8 = vpop.eup %821  ;;  %v384_v9 = vmul.f32 1.442695, %v358_v7 }
 0x207   : > { %v339_v11 = vpop.xlane.xlu1 %338  ;;  %410 = vadd.xlane.f32.xlu0 %v990_v8 }
 0x208   : > { %827 = vpow2.f32 %v384_v9  ;;  %v359_v13 = vsub.f32 %v339_v11, %v946_v22 }
 0x20a   : > { %v995_v14 = vpop.eup %823  ;;  %v386_v15 = vmul.f32 1.442695, %v359_v13 }
 0x20b   : > { %412 = vadd.xlane.f32.xlu1 %v995_v14  ;;  %v341_v18 = vpop.xlane.xlu1 %340 }
 0x20c   : > { %829 = vpow2.f32 %v386_v15  ;;  %v360_v19 = vsub.f32 %v341_v18, %v952_v25 }
 0x20d   : > { %831 = vpow2.f32 %v390_v16 }
 0x20e   : > { %v1000_v20 = vpop.eup %825  ;;  %v388_v21 = vmul.f32 1.442695, %v360_v19 }
 0x20f   : > { %v345_v27 = vpop.xlane.xlu1 %344  ;;  %414 = vadd.xlane.f32.xlu0 %v1000_v20 }
 0x210   : > { %833 = vpow2.f32 %v388_v21  ;;  %v362_v22 = vsub.f32 %v345_v27, %v950_v24 }
 0x211   : > { %835 = vpow2.f32 %v394_v23 }
 0x212   : > { %v1004_v28 = vpop.eup %827  ;;  %v392_v26 = vmul.f32 1.442695, %v362_v22 }
 0x213   : > { %416 = vadd.xlane.f32.xlu1 %v1004_v28 }
 0x214   : > { %837 = vpow2.f32 %v392_v26 }
 0x216   : > { %v1007_v29 = vpop.eup %829 }
 0x217   : > { %418 = vadd.xlane.f32.xlu0 %v1007_v29  ;;  %v1010_v25 = vpop.eup %831 }
 0x21a   : > { %v1012_v30 = vpop.eup %833 }
 0x21b   : > { %420 = vadd.xlane.f32.xlu1 %v1012_v30  ;;  %422 = vadd.xlane.f32.xlu0 %v1010_v25  ;;  %v1016_v24 = vpop.eup %835 }
 0x21e   : > { %v1018_v31 = vpop.eup %837 }
 0x21f   : > { %424 = vadd.xlane.f32.xlu1 %v1018_v31  ;;  %426 = vadd.xlane.f32.xlu0 %v1016_v24 }
 0x27c   : > { %v397_v32 = vpop.xlane.xlu1 %396 }
 0x27d   : > { %839 = vrcp.f32 %v397_v32 }
 0x280   : > { %v399_v33 = vpop.xlane.xlu0 %398 }
 0x281   : > { %841 = vrcp.f32 %v399_v33  ;;  %v545_v33 = vunpack.c.l.bf16 %v915_v1 }
 0x284   : > { %v401_v34 = vpop.xlane.xlu1 %400 }
 0x285   : > { %843 = vrcp.f32 %v401_v34 }
 0x287   : > { %v840_v37 = vpop.eup %839 }
 0x288   : > { %v405_v35 = vpop.xlane.xlu1 %404  ;;  %v403_v36 = vpop.xlane.xlu0 %402  ;;  %v444_v40 = vmul.f32 %v840_v37, %v966_v42  ;;  %v544_v37 = vunpack.c.h.bf16 %v913_v0 }
 0x289   : > { %845 = vrcp.f32 %v403_v36 }
 0x28a   : > { %847 = vrcp.f32 %v405_v35  ;;  %v543_v35 = vunpack.c.l.bf16 %v913_v0 }
 0x28b   : > { %v842_v38 = vpop.eup %841 }
 0x28c   : > { %v407_v39 = vpop.xlane.xlu0 %406  ;;  %v445_v41 = vmul.f32 %v842_v38, %v969_v46 }
 0x28d   : > { %849 = vrcp.f32 %v407_v39 }
 0x28e   : > { %v460_v43 = vpack.c.bf16 %v445_v41, %v444_v40 }
 0x28f   : > { %v844_v45 = vpop.eup %843 }
 0x290   : > { %v409_v44 = vpop.xlane.xlu1 %408  ;;  %766 = vmatprep.subr.bf16.mxu1 %v460_v43  ;;  %v446_v51 = vmul.f32 %v844_v45, %v972_v50 }
 0x291   : > { %767 = vmatpush3.bf16.xpose.msra.mxu1 %v460_v43  ;;  %851 = vrcp.f32 %v409_v44 }
 0x293   : > { %v846_v47 = vpop.eup %845 }
 0x294   : > { %v411_v48 = vpop.xlane.xlu0 %410  ;;  %v848_v49 = vpop.eup %847  ;;  %v447_v52 = vmul.f32 %v846_v47, %v977_v55 }
 0x295   : > { %853 = vrcp.f32 %v411_v48  ;;  %v448_v46 = vmul.f32 %v848_v49, %v975_v54 }
 0x296   : > { %v461_v56 = vpack.c.bf16 %v447_v52, %v446_v51  ;;  %v549_v51 = vunpack.c.l.bf16 %v925_v3  ;;  %v550_v52 = vunpack.c.h.bf16 %v925_v3 }
 0x297   : > { %v850_v53 = vpop.eup %849 }
 0x298   : > { %v413_v42 = vpop.xlane.xlu1 %412  ;;  %v449_v57 = vmul.f32 %v850_v53, %v982_v59  ;;  %768 = vmatprep.subr.bf16.mxu1 %v461_v56 }
 0x299   : > { %769 = vmatpush3.bf16.xpose.msra.mxu1 %v461_v56  ;;  %855 = vrcp.f32 %v413_v42  ;;  %v547_v56 = vunpack.c.l.bf16 %v919_v2 }
 0x29a   : > { %v462_v58 = vpack.c.bf16 %v449_v57, %v448_v46  ;;  %v548_v46 = vunpack.c.h.bf16 %v919_v2 }
 0x29b   : > { %v852_v61 = vpop.eup %851 }
 0x29c   : > { %770 = vmatprep.subr.bf16.mxu1 %v462_v58  ;;  %v415_v60 = vpop.xlane.xlu0 %414  ;;  %v450_v50 = vmul.f32 %v852_v61, %v986_v63 }
 0x29d   : > { %857 = vrcp.f32 %v415_v60 }
 0x29f   : > { %v854_v62 = vpop.eup %853 }
 0x2a0   : > { %v417_v4 = vpop.xlane.xlu1 %416  ;;  %v451_v55 = vmul.f32 %v854_v62, %v990_v8 }
 0x2a1   : > { %771 = vmatpush3.bf16.xpose.msra.mxu1 %v462_v58  ;;  %859 = vrcp.f32 %v417_v4 }
 0x2a2   : > { %v463_v5 = vpack.c.bf16 %v451_v55, %v450_v50 }
 0x2a3   : > { %v856_v59 = vpop.eup %855 }
 0x2a4   : > { %772 = vmatprep.subr.bf16.mxu1 %v463_v5  ;;  %v419_v54 = vpop.xlane.xlu0 %418  ;;  %v452_v10 = vmul.f32 %v856_v59, %v995_v14 }
 0x2a5   : > { %861 = vrcp.f32 %v419_v54 }
 0x2a7   : > { %v858_v6 = vpop.eup %857 }
 0x2a8   : > { %v421_v7 = vpop.xlane.xlu1 %420  ;;  %v423_v9 = vpop.xlane.xlu0 %422  ;;  %v453_v11 = vmul.f32 %v858_v6, %v1000_v20 }
 0x2a9   : > { %863 = vrcp.f32 %v421_v7  ;;  %773 = vmatpush3.bf16.xpose.msra.mxu1 %v463_v5 }
 0x2aa   : > { %865 = vrcp.f32 %v423_v9  ;;  %v464_v63 = vpack.c.bf16 %v453_v11, %v452_v10 }
 0x2ab   : > { %v860_v8 = vpop.eup %859 }
 0x2ac   : > { %v425_v12 = vpop.xlane.xlu1 %424  ;;  %774 = vmatprep.subr.bf16.mxu1 %v464_v63  ;;  %v427_v13 = vpop.xlane.xlu0 %426  ;;  %v454_v16 = vmul.f32 %v860_v8, %v1004_v28 }
 0x2ad   : > { %867 = vrcp.f32 %v425_v12 }
 0x2ae   : > { %869 = vrcp.f32 %v427_v13 }
 0x2af   : > { %v862_v15 = vpop.eup %861 }
 0x2b0   : > { %v455_v17 = vmul.f32 %v862_v15, %v1007_v29  ;;  %v534_v29 = vstv %s533_s16 }
 0x2b1   : > { %775 = vmatpush3.bf16.xpose.msra.mxu1 %v464_v63 }
 0x2b2   : > { %v465_v18 = vpack.c.bf16 %v455_v17, %v454_v16 }
 0x2b3   : > { %v864_v14 = vpop.eup %863 }
 0x2b4   : > { %v866_v19 = vpop.eup %865  ;;  %776 = vmatprep.subr.bf16.mxu1 %v465_v18  ;;  %v456_v20 = vmul.f32 %v864_v14, %v1012_v30 }
 0x2b5   : > { %v457_v21 = vmul.f32 %v866_v19, %v1010_v25 }
 0x2b7   : > { %v868_v23 = vpop.eup %867  ;;  %v466_v27 = vpack.c.bf16 %v457_v21, %v456_v20 }
 0x2b8   : > { %v870_v22 = vpop.eup %869  ;;  %v458_v26 = vmul.f32 %v868_v23, %v1018_v31 }
 0x2b9   : > { %777 = vmatpush3.bf16.xpose.msra.mxu1 %v465_v18  ;;  %v459_v28 = vmul.f32 %v870_v22, %v1016_v24  ;;  %v546_v24 = vunpack.c.h.bf16 %v915_v1 }
 0x2ba   : > { %778 = vmatprep.subr.bf16.mxu1 %v466_v27 }
 0x2bb   : > { %v467_v32 = vpack.c.bf16 %v459_v28, %v458_v26 }
 0x2c1   : > { %779 = vmatpush3.bf16.xpose.msra.mxu1 %v466_v27 }
 0x2c2   : > { %780 = vmatprep.subr.bf16.mxu1 %v467_v32 }
 0x2c9   : > { %781 = vmatpush3.bf16.xpose.msra.mxu1 %v467_v32 }
 0x2d0   : > { %783 = vmatmul.mubr.bf16.vlgmr.msra.gmra.mrb[0].mxu1 %v915_v1 }
 0x2d1   : > { %786 = vmatprep.mubr.bf16.mxu1 %v919_v2 }
 0x2d8   : > { %787 = vmatmul.mubr.bf16.gmra.mrb[4].mxu1 %v925_v3 }
 0x3a3   : > { %v784_v25 = vpop.f32.mrb[0].mxu1 }
 0x3a4   : > { %v537_v30 = vmul.f32 %v784_v25, %v534_v29  ;;  %v502_v31 = vpop.f32.mrb[1].mxu1 }
 0x3a5   : > { %v535_v34 = vmul.f32 %v534_v29, %v502_v31  ;;  %v785_v36 = vpop.f32.mrb[2].mxu1 }
 0x3a6   : > { %v538_v38 = vmul.f32 %v785_v36, %v534_v29  ;;  %v505_v39 = vpop.f32.mrb[3].mxu1  ;;  %v553_v41 = vadd.f32 %v545_v33, %v537_v30 }
 0x3a7   : > { %v536_v40 = vmul.f32 %v534_v29, %v505_v39  ;;  %v551_v44 = vadd.f32 %v543_v35, %v535_v34 }
 0x3a8   : > { %v554_v43 = vadd.f32 %v546_v24, %v538_v38 }
 0x3a9   : > { %v552_v45 = vadd.f32 %v544_v37, %v536_v40 }
 0x3aa   : > { %v703_v47 = vpack.c.bf16 %v554_v43, %v553_v41 }
 0x3ab   : > { %v698_v1 = vpack.c.bf16 %v552_v45, %v551_v44  ;;  %v788_v48 = vpop.f32.mrb[4].mxu1 }
 0x3ac   : > { %715 = vst [vmem:[%s144_s19 + $0x8] sm:$0xff] %v703_v47   ;;  %v541_v49 = vmul.f32 %v788_v48, %v534_v29  ;;  %v518_v0 = vpop.f32.mrb[5].mxu1 }
 0x3ad   : > { %699 = vst [vmem:[%s144_s19] sm:$0xff] %v698_v1   ;;  %v539_v53 = vmul.f32 %v534_v29, %v518_v0  ;;  %v789_v42 = vpop.f32.mrb[6].mxu1 }
 0x3ae   : > { %v542_v57 = vmul.f32 %v789_v42, %v534_v29  ;;  %v521_v58 = vpop.f32.mrb[7].mxu1  ;;  %v557_v61 = vadd.f32 %v549_v51, %v541_v49 }
 0x3af   : > { %v540_v60 = vmul.f32 %v534_v29, %v521_v58  ;;  %v555_v4 = vadd.f32 %v547_v56, %v539_v53 }
 0x3b0   : > { %v558_v62 = vadd.f32 %v550_v52, %v542_v57 }
 0x3b1   : > { %v556_v50 = vadd.f32 %v548_v46, %v540_v60 }
 0x3b2   : > { %v713_v55 = vpack.c.bf16 %v558_v62, %v557_v61 }
 0x3b3   : > { %v708_v5 = vpack.c.bf16 %v556_v50, %v555_v4 }
 0x3b4   : > { %717 = vst [vmem:[%s144_s19 + $0x18] sm:$0xff] %v713_v55  }
 0x3b5   : > { %716 = vst [vmem:[%s144_s19 + $0x10] sm:$0xff] %v708_v5  }
 0x3b6 PF: > { %s13_s11 = sadd.s32 1, %s877_s11  }
 0x3b7   : > { %p10_p4 = scmp.ge.s32.totalorder %s13_s11, 4  }
 0x3b9   :  { %12 = sbr.rel (!%p10_p4) target bundleno = 2 (0x2), region = 58 }

// kernel: yowo_forward.10
= control target key start
LH: loop header
LB: loop body
LE: loop exit
PB: predicated region body
PF: predicated region fallthrough
CT: control target
= control target key end

     0   :  { %s1340_s12 = smov 0   ;;  %s1342_s13 = smov 0   ;;  %s1488_s0 = inlined_call_operand.vmem [shape: bf16[128,1280], index: 0, kind: input, shape index: {}]   ;;  %s1489_s1 = inlined_call_operand.vmem [shape: bf16[1280,128], index: 1, kind: input, shape index: {}]   ;;  %s1490_s2 = inlined_call_operand.vmem [shape: f32[1,128], index: 2, kind: input, shape index: {}]   ;;  %s1491_s3 = inlined_call_operand.vmem [shape: bf16[128,128], index: 3, kind: output, shape index: {}]  }
   0x1   :  { %s1344_s14 = smov 0   ;;  %s1346_s15 = smov 0  }
   0x2   :  { %s1348_s16 = smov 0  }
   0x3 LB: > { %s25_s17 = sadd.s32 1, %s1313_s15  ;;  %p48_p1 = scmp.ne.s32.totalorder %s1305_s13, %s1301_s12  ;;  %s1317_s16 = sphi %s1348_s16, %s13_s16   ;;  %s1313_s15 = sphi %s1346_s15, %s1495_s15   ;;  %s1309_s14 = sphi %s1344_s14, %s1494_s14   ;;  %s1305_s13 = sphi %s1342_s13, %s1493_s13   ;;  %s1301_s12 = sphi %s1340_s12, %s1492_s12  }
   0x4   : > { %p26_p0 = scmp.ge.s32.totalorder %s25_s17, 5  ;;  %p49_p2 = scmp.eq.s32.totalorder %s1317_s16, 0 }
   0x5   : > { %s41_s19 = sadd.s32 1, %s1305_s13  ;;  %p991_p5 = scmp.ge.s32.totalorder %s1317_s16, 5 }
   0x6   : > { %s1497_s17 = smov (%p26_p0, %s25_s17), 0  ;;  %p50_p3 = por %p49_p2, %p48_p1 }
   0x7   : > { %s37_s18 = ssub.s32 %s1313_s15, %s1497_s17  ;;  %162 = sbr.rel (%p991_p5) target bundleno = 26 (0x1a), region = 20 }
   0x8   : > { %p39_p4 = scmp.eq.s32.totalorder %s37_s18, 0 }
   0xa   : > { %s1375_s20 = scalar_select %p39_p4, %s1305_s13, %s41_s19  }
   0xe   : > { %165 = sbr.rel (!%p50_p3) target bundleno = 26 (0x1a), region = 24  ;;  %s167_s21 = sand.u32 (%p50_p3), 1, %s1305_s13  }
   0xf   : > { %s1054_s22 = sshll.u32 (%p50_p3), %s1313_s15, 3  ;;  %s992_s23 = sshll.u32 (%p50_p3), %s167_s21, 7 }
  0x10   : > { %s1383_s26 = scalar_lea.vmem (%p50_p3), %s1488_s0, %s1054_s22  ;;  %s169_s27 = scalar_lea.vmem (%p50_p3), [#allocation3], %s992_s23 }
  0x11   : > { %v233_v0 = vld [vmem:[%s1383_s26] sm:$0xff] (%p50_p3)  ;;  %v235_v1 = vld [vmem:[%s1383_s26 + $0x28] sm:$0xff] (%p50_p3)  ;;  %v237_v2 = vld [vmem:[%s1383_s26 + $0x50] sm:$0xff] (%p50_p3) }
  0x12   : > { %234 = vst [vmem:[%s169_s27] sm:$0xff] (%p50_p3), %v233_v0  ;;  %236 = vst [vmem:[%s169_s27 + $0x8] sm:$0xff] (%p50_p3), %v235_v1  ;;  %v239_v3 = vld [vmem:[%s1383_s26 + $0x78] sm:$0xff] (%p50_p3)  ;;  %v241_v4 = vld [vmem:[%s1383_s26 + $0xa0] sm:$0xff] (%p50_p3) }
  0x13   : > { %238 = vst [vmem:[%s169_s27 + $0x10] sm:$0xff] (%p50_p3), %v237_v2  ;;  %v243_v5 = vld [vmem:[%s1383_s26 + $0xc8] sm:$0xff] (%p50_p3)  ;;  %240 = vst [vmem:[%s169_s27 + $0x18] sm:$0xff] (%p50_p3), %v239_v3  ;;  %v245_v6 = vld [vmem:[%s1383_s26 + $0xf0] sm:$0xff] (%p50_p3) }
  0x14   : > { %242 = vst [vmem:[%s169_s27 + $0x20] sm:$0xff] (%p50_p3), %v241_v4  ;;  %244 = vst [vmem:[%s169_s27 + $0x28] sm:$0xff] (%p50_p3), %v243_v5  ;;  %v247_v7 = vld [vmem:[%s1383_s26 + $0x118] sm:$0xff] (%p50_p3)  ;;  %v249_v8 = vld [vmem:[%s1383_s26 + $0x140] sm:$0xff] (%p50_p3) }
  0x15   : > { %246 = vst [vmem:[%s169_s27 + $0x30] sm:$0xff] %v245_v6  ;;  %248 = vst [vmem:[%s169_s27 + $0x38] sm:$0xff] %v247_v7  ;;  %v251_v9 = vld [vmem:[%s1383_s26 + $0x168] sm:$0xff]  ;;  %v253_v10 = vld [vmem:[%s1383_s26 + $0x190] sm:$0xff] }
  0x16   : > { %250 = vst [vmem:[%s169_s27 + $0x40] sm:$0xff] %v249_v8  ;;  %v255_v11 = vld [vmem:[%s1383_s26 + $0x1b8] sm:$0xff]  ;;  %252 = vst [vmem:[%s169_s27 + $0x48] sm:$0xff] %v251_v9  ;;  %v257_v12 = vld [vmem:[%s1383_s26 + $0x1e0] sm:$0xff] }
  0x17   : > { %254 = vst [vmem:[%s169_s27 + $0x50] sm:$0xff] %v253_v10  ;;  %256 = vst [vmem:[%s169_s27 + $0x58] sm:$0xff] %v255_v11  ;;  %v259_v13 = vld [vmem:[%s1383_s26 + $0x208] sm:$0xff]  ;;  %v261_v14 = vld [vmem:[%s1383_s26 + $0x230] sm:$0xff] }
  0x18   : > { %258 = vst [vmem:[%s169_s27 + $0x60] sm:$0xff] %v257_v12  ;;  %260 = vst [vmem:[%s169_s27 + $0x68] sm:$0xff] %v259_v13  ;;  %v263_v15 = vld [vmem:[%s1383_s26 + $0x258] sm:$0xff] }
  0x19   : > { %262 = vst [vmem:[%s169_s27 + $0x70] sm:$0xff] %v261_v14  ;;  %264 = vst [vmem:[%s169_s27 + $0x78] sm:$0xff] %v263_v15 }
  0x1a PF: > { %p995_p6 = scmp.ge.s32.totalorder %s1317_s16, 1  ;;  %p281_p7 = scmp.lt.s32.totalorder %s1317_s16, 6 }
  0x1c   : > { %p282_p8 = pnand %p995_p6, %p281_p7 }
  0x1d   : > { %s288_s28 = sand.u32 (!%p282_p8), 1, %s1301_s12   ;;  %s997_s29 = sshll.u32 (!%p282_p8), %s1309_s14, 5 }
  0x1e   : > { %285 = sbr.rel (%p282_p8) target bundleno = 339 (0x153), region = 66  ;;  %s996_s30 = sshll.u32 (!%p282_p8), %s288_s28, 7 }
  0x1f   : > { %p328_p9 = scmp.lt.s32.totalorder (!%p282_p8), %s997_s29, 159  ;;  %s1410_s8 = scalar_lea.vmem (!%p282_p8), [#allocation3], %s996_s30 }
  0x20   : > { %p999_p10 = scmp.ne.s32.totalorder (!%p282_p8), %s1309_s14, 0 }
  0x25   : > { %s1499_s29 = smov (!%p328_p9, %s997_s29), 159  ;;  %352 = sbr.rel (%p999_p10) target bundleno = 47 (0x2f), region = 74 }
  0x26   : > { %s998_s4 = sshll.u32 %s1499_s29, 2  ;;  %v1319_v16 = vmov (!%p999_p10), 0.0  }
  0x27   : > { %s1408_s7 = scalar_lea.vmem %s1489_s1, %s998_s4  ;;  %353 = vst [vmem:[#allocation2] sm:$0xff] (!%p999_p10), %v1319_v16  ;;  %354 = vst [vmem:[#allocation2 + $0x8] sm:$0xff] (!%p999_p10), %v1319_v16 }
  0x28   : > { %355 = vst [vmem:[#allocation2 + $0x10] sm:$0xff] (!%p999_p10), %v1319_v16  ;;  %356 = vst [vmem:[#allocation2 + $0x18] sm:$0xff] (!%p999_p10), %v1319_v16 }
  0x29   : > { %357 = vst [vmem:[#allocation2 + $0x20] sm:$0xff] (!%p999_p10), %v1319_v16  ;;  %358 = vst [vmem:[#allocation2 + $0x28] sm:$0xff] (!%p999_p10), %v1319_v16 }
  0x2a   : > { %359 = vst [vmem:[#allocation2 + $0x30] sm:$0xff] (!%p999_p10), %v1319_v16  ;;  %360 = vst [vmem:[#allocation2 + $0x38] sm:$0xff] (!%p999_p10), %v1319_v16 }
  0x2b   : > { %361 = vst [vmem:[#allocation2 + $0x40] sm:$0xff] (!%p999_p10), %v1319_v16  ;;  %362 = vst [vmem:[#allocation2 + $0x48] sm:$0xff] (!%p999_p10), %v1319_v16 }
  0x2c   : > { %363 = vst [vmem:[#allocation2 + $0x50] sm:$0xff] %v1319_v16  ;;  %364 = vst [vmem:[#allocation2 + $0x58] sm:$0xff] %v1319_v16 }
  0x2d   : > { %365 = vst [vmem:[#allocation2 + $0x60] sm:$0xff] %v1319_v16  ;;  %366 = vst [vmem:[#allocation2 + $0x68] sm:$0xff] %v1319_v16 }
  0x2e   : > { %367 = vst [vmem:[#allocation2 + $0x70] sm:$0xff] %v1319_v16  ;;  %368 = vst [vmem:[#allocation2 + $0x78] sm:$0xff] %v1319_v16 }
  0x2f PF: > { %v1239_v17 = vld [vmem:[%s1408_s7 + $0x40] sm:$0xff]   ;;  %v1241_v19 = vld [vmem:[%s1408_s7 + $0x48] sm:$0xff]   ;;  %v1243_v21 = vld [vmem:[%s1408_s7 + $0x50] sm:$0xff]   ;;  %p1032_p11 = scmp.ne.s32.totalorder %s1309_s14, 4 }
  0x30   : > { %v1240_v18 = vld [vmem:[%s1408_s7] sm:$0xff]   ;;  %1118 = vmatprep.subr.bf16.mxu0 %v1239_v17  ;;  %1182 = vmatprep.subr.bf16.mxu1 %v1239_v17  ;;  %v1242_v20 = vld [vmem:[%s1408_s7 + $0x8] sm:$0xff]   ;;  %v1244_v22 = vld [vmem:[%s1408_s7 + $0x10] sm:$0xff]  }
  0x31   : > { %1119 = vmatpush3.bf16.msra.mxu0 %v1240_v18  ;;  %1190 = vmatpush3.bf16.msra.mxu1 %v1240_v18  ;;  %v1245_v23 = vld [vmem:[%s1408_s7 + $0x58] sm:$0xff]   ;;  %v1247_v25 = vld [vmem:[%s1408_s7 + $0x60] sm:$0xff]   ;;  %v1249_v27 = vld [vmem:[%s1408_s7 + $0x68] sm:$0xff]  }
  0x32   : > { %1120 = vmatprep.subr.bf16.mxu0 %v1241_v19  ;;  %1183 = vmatprep.subr.bf16.mxu1 %v1241_v19  ;;  %v1246_v24 = vld [vmem:[%s1408_s7 + $0x18] sm:$0xff]   ;;  %v1248_v26 = vld [vmem:[%s1408_s7 + $0x20] sm:$0xff]   ;;  %v1250_v30 = vld [vmem:[%s1408_s7 + $0x28] sm:$0xff]  }
  0x33   : > { %v1257_v28 = vld [vmem:[%s1410_s8 + $0x4] ss:$8 sps:$4 sm:$0xff]   ;;  %v1251_v31 = vld [vmem:[%s1408_s7 + $0x70] sm:$0xff]   ;;  %v1253_v33 = vld [vmem:[%s1408_s7 + $0x78] sm:$0xff]  }
  0x34   : > { %v1260_v29 = vld [vmem:[%s1410_s8 + $0x44] ss:$8 sps:$4 sm:$0xff]   ;;  %641 = vmatprep.mubr.bf16.mxu0 %v1257_v28  ;;  %v1252_v32 = vld [vmem:[%s1408_s7 + $0x30] sm:$0xff]   ;;  %v1254_v34 = vld [vmem:[%s1408_s7 + $0x38] sm:$0xff]  }
  0x35   : > { %1121 = vmatpush3.bf16.msra.mxu0 %v1242_v20  ;;  %1191 = vmatpush3.bf16.msra.mxu1 %v1242_v20  ;;  %v1255_v35 = vld [vmem:[%s1410_s8] ss:$8 sps:$4 sm:$0xff]   ;;  %v1261_v37 = vld [vmem:[%s1410_s8 + $0x14] ss:$8 sps:$4 sm:$0xff]   ;;  %v1265_v39 = vld [vmem:[%s1410_s8 + $0x10] ss:$8 sps:$4 sm:$0xff]  }
  0x36   : > { %1122 = vmatprep.subr.bf16.mxu0 %v1243_v21  ;;  %1184 = vmatprep.subr.bf16.mxu1 %v1243_v21  ;;  %v1258_v36 = vld [vmem:[%s1410_s8 + $0x40] ss:$8 sps:$4 sm:$0xff]   ;;  %v1263_v38 = vld [vmem:[%s1410_s8 + $0x54] ss:$8 sps:$4 sm:$0xff]   ;;  %v1266_v40 = vld [vmem:[%s1410_s8 + $0x50] ss:$8 sps:$4 sm:$0xff]  }
  0x37   : > { %673 = vmatprep.mubr.bf16.mxu1 %v1260_v29  ;;  %v1267_v41 = vld [vmem:[%s1410_s8 + $0x24] ss:$8 sps:$4 sm:$0xff]   ;;  %v1271_v43 = vld [vmem:[%s1410_s8 + $0x20] ss:$8 sps:$4 sm:$0xff]   ;;  %v1273_v45 = vld [vmem:[%s1410_s8 + $0x34] ss:$8 sps:$4 sm:$0xff]  }
  0x38   : > { %v1269_v42 = vld [vmem:[%s1410_s8 + $0x64] ss:$8 sps:$4 sm:$0xff]   ;;  %v1272_v44 = vld [vmem:[%s1410_s8 + $0x60] ss:$8 sps:$4 sm:$0xff]   ;;  %v1275_v46 = vld [vmem:[%s1410_s8 + $0x74] ss:$8 sps:$4 sm:$0xff]  }
  0x39   : > { %1123 = vmatpush3.bf16.msra.mxu0 %v1244_v22  ;;  %1192 = vmatpush3.bf16.msra.mxu1 %v1244_v22  ;;  %v1277_v47 = vld [vmem:[%s1410_s8 + $0x30] ss:$8 sps:$4 sm:$0xff]   ;;  %v369_v51 = vld [vmem:[#allocation2] sm:$0xff]  ;;  %v370_v59 = vld [vmem:[#allocation2 + $0x8] sm:$0xff] }
  0x3a   : > { %1124 = vmatprep.subr.bf16.mxu0 %v1245_v23  ;;  %1185 = vmatprep.subr.bf16.mxu1 %v1245_v23  ;;  %v1278_v48 = vld [vmem:[%s1410_s8 + $0x70] ss:$8 sps:$4 sm:$0xff]   ;;  %v377_v53 = vld [vmem:[#allocation2 + $0x40] sm:$0xff]  ;;  %v378_v61 = vld [vmem:[#allocation2 + $0x48] sm:$0xff] }
  0x3b   : > { %v371_v7 = vld [vmem:[#allocation2 + $0x10] sm:$0xff]  ;;  %v372_v15 = vld [vmem:[#allocation2 + $0x18] sm:$0xff]  ;;  %v381_v29 = vld [vmem:[#allocation2 + $0x60] sm:$0xff] }
  0x3c   : > { %v379_v9 = vld [vmem:[#allocation2 + $0x50] sm:$0xff]  ;;  %v380_v17 = vld [vmem:[#allocation2 + $0x58] sm:$0xff] }
  0x3d   : > { %1125 = vmatpush3.bf16.msra.mxu0 %v1246_v24  ;;  %1193 = vmatpush3.bf16.msra.mxu1 %v1246_v24 }
  0x3e   : > { %1126 = vmatprep.subr.bf16.mxu0 %v1247_v25  ;;  %1186 = vmatprep.subr.bf16.mxu1 %v1247_v25 }
  0x41   : > { %1127 = vmatpush3.bf16.msra.mxu0 %v1248_v26  ;;  %1194 = vmatpush3.bf16.msra.mxu1 %v1248_v26 }
  0x42   : > { %1128 = vmatprep.subr.bf16.mxu0 %v1249_v27  ;;  %1187 = vmatprep.subr.bf16.mxu1 %v1249_v27  ;;  %v373_v27 = vld [vmem:[#allocation2 + $0x20] sm:$0xff] }
  0x45   : > { %1129 = vmatpush3.bf16.msra.mxu0 %v1250_v30  ;;  %1195 = vmatpush3.bf16.msra.mxu1 %v1250_v30 }
  0x46   : > { %1130 = vmatprep.subr.bf16.mxu0 %v1251_v31  ;;  %1188 = vmatprep.subr.bf16.mxu1 %v1251_v31 }
  0x49   : > { %1131 = vmatpush3.bf16.msra.mxu0 %v1252_v32  ;;  %1196 = vmatpush3.bf16.msra.mxu1 %v1252_v32 }
  0x4a   : > { %1132 = vmatprep.subr.bf16.mxu0 %v1253_v33  ;;  %1189 = vmatprep.subr.bf16.mxu1 %v1253_v33 }
  0x4d   : > { %1133 = vmatpush3.bf16.msra.mxu0 %v1254_v34  ;;  %1197 = vmatpush3.bf16.msra.mxu1 %v1254_v34 }
  0x50   : > { %642 = vmatmul.mubr.bf16.vlgmr.msra.gmra.mrb[0].mxu0 %v1255_v35  ;;  %674 = vmatmul.mubr.bf16.vlgmr.msra.gmra.mrb[0].mxu1 %v1258_v36  ;;  %v374_v35 = vld [vmem:[#allocation2 + $0x28] sm:$0xff] }
  0x51   : > { %649 = vmatprep.mubr.bf16.mxu0 %v1261_v37  ;;  %681 = vmatprep.mubr.bf16.mxu1 %v1263_v38  ;;  %v382_v37 = vld [vmem:[#allocation2 + $0x68] sm:$0xff] }
  0x58   : > { %650 = vmatmul.mubr.bf16.gmra.mrb[4].mxu0 %v1265_v39  ;;  %682 = vmatmul.mubr.bf16.gmra.mrb[4].mxu1 %v1266_v40 }
  0x59   : > { %657 = vmatprep.mubr.bf16.mxu0 %v1267_v41  ;;  %689 = vmatprep.mubr.bf16.mxu1 %v1269_v42 }
  0x60   : > { %658 = vmatmul.mubr.bf16.gmra.mrb[8].mxu0 %v1271_v43  ;;  %690 = vmatmul.mubr.bf16.gmra.mrb[8].mxu1 %v1272_v44 }
  0x61   : > { %665 = vmatprep.mubr.bf16.mxu0 %v1273_v45  ;;  %697 = vmatprep.mubr.bf16.mxu1 %v1275_v46 }
  0x68   : > { %666 = vmatmul.mubr.bf16.gmra.mrb[12].mxu0 %v1277_v47  ;;  %698 = vmatmul.mubr.bf16.gmra.mrb[12].mxu1 %v1278_v48  ;;  %v375_v47 = vld [vmem:[#allocation2 + $0x30] sm:$0xff] }
 0x123   : > { %v1134_v49 = vpop.f32.mrb[0].mxu0  ;;  %v1158_v50 = vpop.f32.mrb[0].mxu1 }
 0x124   : > { %v1135_v52 = vpop.f32.mrb[1].mxu0  ;;  %v1159_v54 = vpop.f32.mrb[1].mxu1 }
 0x125   : > { %v1136_v55 = vadd.f32 %v1135_v52, %v1134_v49  ;;  %v1160_v56 = vadd.f32 %v1159_v54, %v1158_v50  ;;  %v1137_v57 = vpop.f32.mrb[2].mxu0  ;;  %v1161_v58 = vpop.f32.mrb[2].mxu1  ;;  %v383_v49 = vld [vmem:[#allocation2 + $0x70] sm:$0xff] }
 0x126   : > { %v1138_v60 = vpop.f32.mrb[3].mxu0  ;;  %v1162_v62 = vpop.f32.mrb[3].mxu1 }
 0x127   : > { %v706_v63 = vadd.f32 %v1136_v55, %v369_v51  ;;  %v714_v0 = vadd.f32 %v1160_v56, %v377_v53  ;;  %v1139_v1 = vadd.f32 %v1138_v60, %v1137_v57  ;;  %v1163_v2 = vadd.f32 %v1162_v62, %v1161_v58  ;;  %v376_v55 = vld [vmem:[#allocation2 + $0x38] sm:$0xff] }
 0x128   : > { %v384_v57 = vld [vmem:[#allocation2 + $0x78] sm:$0xff] }
 0x129   : > { %722 = vst [vmem:[#allocation2] sm:$0xff] %v706_v63  ;;  %730 = vst [vmem:[#allocation2 + $0x40] sm:$0xff] %v714_v0  ;;  %v707_v3 = vadd.f32 %v1139_v1, %v370_v59  ;;  %v715_v4 = vadd.f32 %v1163_v2, %v378_v61 }
 0x12b   : > { %723 = vst [vmem:[#allocation2 + $0x8] sm:$0xff] %v707_v3  ;;  %731 = vst [vmem:[#allocation2 + $0x48] sm:$0xff] %v715_v4  ;;  %v1140_v5 = vpop.f32.mrb[4].mxu0  ;;  %v1164_v6 = vpop.f32.mrb[4].mxu1  ;;  %v1033_v3 = vld [vmem:[%s1490_s2] ss:$0 sm:$0xff] (!%p1032_p11) }
 0x12c   : > { %v1141_v8 = vpop.f32.mrb[5].mxu0  ;;  %v1165_v10 = vpop.f32.mrb[5].mxu1 }
 0x12d   : > { %v1142_v11 = vadd.f32 %v1141_v8, %v1140_v5  ;;  %v1166_v12 = vadd.f32 %v1165_v10, %v1164_v6  ;;  %v1143_v13 = vpop.f32.mrb[6].mxu0  ;;  %v1167_v14 = vpop.f32.mrb[6].mxu1 }
 0x12e   : > { %v1144_v16 = vpop.f32.mrb[7].mxu0  ;;  %v1168_v18 = vpop.f32.mrb[7].mxu1 }
 0x12f   : > { %v708_v19 = vadd.f32 %v1142_v11, %v371_v7  ;;  %v716_v20 = vadd.f32 %v1166_v12, %v379_v9  ;;  %v1145_v21 = vadd.f32 %v1144_v16, %v1143_v13  ;;  %v1169_v22 = vadd.f32 %v1168_v18, %v1167_v14 }
 0x130   : > { %v742_v1 = vld [vmem:[#allocation2] sm:$0xff] (!%p1032_p11) }
 0x131   : > { %724 = vst [vmem:[#allocation2 + $0x10] sm:$0xff] %v708_v19  ;;  %732 = vst [vmem:[#allocation2 + $0x50] sm:$0xff] %v716_v20  ;;  %v709_v23 = vadd.f32 %v1145_v21, %v372_v15  ;;  %v717_v24 = vadd.f32 %v1169_v22, %v380_v17  ;;  %v765_v4 = vadd.f32 (!%p1032_p11), %v1033_v3, %v742_v1  ;;  %v750_v19 = vld [vmem:[#allocation2 + $0x40] sm:$0xff] (!%p1032_p11) }
 0x132   : > { %v743_v2 = vld [vmem:[#allocation2 + $0x8] sm:$0xff] (!%p1032_p11) }
 0x133   : > { %725 = vst [vmem:[#allocation2 + $0x18] sm:$0xff] %v709_v23  ;;  %733 = vst [vmem:[#allocation2 + $0x58] sm:$0xff] %v717_v24  ;;  %v1146_v25 = vpop.f32.mrb[8].mxu0  ;;  %v1170_v26 = vpop.f32.mrb[8].mxu1  ;;  %v766_v5 = vadd.f32 (!%p1032_p11), %v1033_v3, %v743_v2  ;;  %v781_v15 = vmax.f32 (!%p1032_p11), %v765_v4, 0.0  ;;  %v751_v20 = vld [vmem:[#allocation2 + $0x48] sm:$0xff] (!%p1032_p11) }
 0x134   : > { %v1147_v28 = vpop.f32.mrb[9].mxu0  ;;  %v1171_v30 = vpop.f32.mrb[9].mxu1 }
 0x135   : > { %v1148_v31 = vadd.f32 %v1147_v28, %v1146_v25  ;;  %v1172_v32 = vadd.f32 %v1171_v30, %v1170_v26  ;;  %v1149_v33 = vpop.f32.mrb[10].mxu0  ;;  %v1173_v34 = vpop.f32.mrb[10].mxu1  ;;  %v782_v16 = vmax.f32 (!%p1032_p11), %v766_v5, 0.0 }
 0x136   : > { %v1150_v36 = vpop.f32.mrb[11].mxu0  ;;  %v1174_v38 = vpop.f32.mrb[11].mxu1 }
 0x137   : > { %v710_v39 = vadd.f32 %v1148_v31, %v373_v27  ;;  %v718_v40 = vadd.f32 %v1172_v32, %v381_v29  ;;  %v1151_v41 = vadd.f32 %v1150_v36, %v1149_v33  ;;  %v1175_v42 = vadd.f32 %v1174_v38, %v1173_v34 }
 0x138   : > { %v744_v6 = vld [vmem:[#allocation2 + $0x10] sm:$0xff] (!%p1032_p11)  ;;  %v1074_v28 = vpack.c.bf16 (!%p1032_p11), %v782_v16, %v781_v15  ;;  %v773_v31 = vadd.f32 (!%p1032_p11), %v1033_v3, %v750_v19 }
 0x139   : > { %726 = vst [vmem:[#allocation2 + $0x20] sm:$0xff] %v710_v39  ;;  %734 = vst [vmem:[#allocation2 + $0x60] sm:$0xff] %v718_v40  ;;  %v711_v43 = vadd.f32 %v1151_v41, %v374_v35  ;;  %v719_v44 = vadd.f32 %v1175_v42, %v382_v37  ;;  %v767_v9 = vadd.f32 (!%p1032_p11), %v1033_v3, %v744_v6  ;;  %v752_v21 = vld [vmem:[#allocation2 + $0x50] sm:$0xff] (!%p1032_p11) }
 0x13a   : > { %v745_v7 = vld [vmem:[#allocation2 + $0x18] sm:$0xff] (!%p1032_p11)  ;;  %v774_v35 = vadd.f32 (!%p1032_p11), %v1033_v3, %v751_v20  ;;  %v775_v36 = vadd.f32 (!%p1032_p11), %v1033_v3, %v752_v21  ;;  %1075 = vst [vmem:[%s1491_s3] sm:$0xff] (!%p1032_p11), %v1074_v28   ;;  %v789_v40 = vmax.f32 (!%p1032_p11), %v773_v31, 0.0 }
 0x13b   : > { %727 = vst [vmem:[#allocation2 + $0x28] sm:$0xff] %v711_v43  ;;  %735 = vst [vmem:[#allocation2 + $0x68] sm:$0xff] %v719_v44  ;;  %v1152_v45 = vpop.f32.mrb[12].mxu0  ;;  %v1176_v46 = vpop.f32.mrb[12].mxu1  ;;  %v768_v10 = vadd.f32 (!%p1032_p11), %v1033_v3, %v745_v7  ;;  %v783_v22 = vmax.f32 (!%p1032_p11), %v767_v9, 0.0  ;;  %v753_v26 = vld [vmem:[#allocation2 + $0x58] sm:$0xff] (!%p1032_p11) }
 0x13c   : > { %v1153_v48 = vpop.f32.mrb[13].mxu0  ;;  %v1177_v50 = vpop.f32.mrb[13].mxu1  ;;  %v776_v41 = vadd.f32 (!%p1032_p11), %v1033_v3, %v753_v26  ;;  %v790_v44 = vmax.f32 (!%p1032_p11), %v774_v35, 0.0 }
 0x13d   : > { %v1154_v51 = vadd.f32 %v1153_v48, %v1152_v45  ;;  %v1178_v52 = vadd.f32 %v1177_v50, %v1176_v46  ;;  %v1155_v53 = vpop.f32.mrb[14].mxu0  ;;  %v1179_v54 = vpop.f32.mrb[14].mxu1  ;;  %741 = sbr.rel (%p1032_p11) target bundleno = 339 (0x153), region = 78  ;;  %v784_v23 = vmax.f32 (!%p1032_p11), %v768_v10, 0.0  ;;  %v791_v45 = vmax.f32 (!%p1032_p11), %v775_v36, 0.0 }
 0x13e   : > { %v1156_v56 = vpop.f32.mrb[15].mxu0  ;;  %v1180_v58 = vpop.f32.mrb[15].mxu1 }
 0x13f   : > { %v712_v59 = vadd.f32 %v1154_v51, %v375_v47  ;;  %v720_v60 = vadd.f32 %v1178_v52, %v383_v49  ;;  %v1157_v61 = vadd.f32 %v1156_v56, %v1155_v53  ;;  %v1181_v62 = vadd.f32 %v1180_v58, %v1179_v54 }
 0x140   : > { %v746_v8 = vld [vmem:[#allocation2 + $0x20] sm:$0xff] (!%p1032_p11)  ;;  %v1079_v33 = vpack.c.bf16 (!%p1032_p11), %v784_v23, %v783_v22  ;;  %v792_v47 = vmax.f32 (!%p1032_p11), %v776_v41, 0.0  ;;  %v1094_v51 = vpack.c.bf16 (!%p1032_p11), %v790_v44, %v789_v40 }
 0x141   : > { %728 = vst [vmem:[#allocation2 + $0x30] sm:$0xff] %v712_v59  ;;  %736 = vst [vmem:[#allocation2 + $0x70] sm:$0xff] %v720_v60  ;;  %v713_v63 = vadd.f32 %v1157_v61, %v376_v55  ;;  %v721_v0 = vadd.f32 %v1181_v62, %v384_v57  ;;  %v769_v12 = vadd.f32 (!%p1032_p11), %v1033_v3, %v746_v8  ;;  %v754_v27 = vld [vmem:[#allocation2 + $0x60] sm:$0xff] (!%p1032_p11) }
 0x142   : > { %v747_v11 = vld [vmem:[#allocation2 + $0x28] sm:$0xff] (!%p1032_p11)  ;;  %v777_v42 = vadd.f32 (!%p1032_p11), %v1033_v3, %v754_v27  ;;  %1111 = vst [vmem:[%s1491_s3 + $0x8] sm:$0xff] (!%p1032_p11), %v1079_v33   ;;  %v1099_v53 = vpack.c.bf16 (!%p1032_p11), %v792_v47, %v791_v45  ;;  %1114 = vst [vmem:[%s1491_s3 + $0x20] sm:$0xff] (!%p1032_p11), %v1094_v51  }
 0x143   : > { %729 = vst [vmem:[#allocation2 + $0x38] sm:$0xff] %v713_v63  ;;  %737 = vst [vmem:[#allocation2 + $0x78] sm:$0xff] %v721_v0  ;;  %v770_v17 = vadd.f32 (!%p1032_p11), %v1033_v3, %v747_v11  ;;  %v785_v24 = vmax.f32 (!%p1032_p11), %v769_v12, 0.0  ;;  %v755_v32 = vld [vmem:[#allocation2 + $0x68] sm:$0xff] (!%p1032_p11) }
 0x144   : > { %v778_v46 = vadd.f32 %v1033_v3, %v755_v32  ;;  %v793_v48 = vmax.f32 %v777_v42, 0.0  ;;  %1115 = vst [vmem:[%s1491_s3 + $0x28] sm:$0xff] %v1099_v53  }
 0x145   : > { %v786_v29 = vmax.f32 %v770_v17, 0.0 }
 0x146   : > { %v794_v52 = vmax.f32 %v778_v46, 0.0 }
 0x147   : > { %v1084_v39 = vpack.c.bf16 %v786_v29, %v785_v24 }
 0x148   : > { %v748_v13 = vld [vmem:[#allocation2 + $0x30] sm:$0xff]  ;;  %v1104_v56 = vpack.c.bf16 %v794_v52, %v793_v48 }
 0x149   : > { %v771_v18 = vadd.f32 %v1033_v3, %v748_v13  ;;  %v756_v37 = vld [vmem:[#allocation2 + $0x70] sm:$0xff]  ;;  %1112 = vst [vmem:[%s1491_s3 + $0x10] sm:$0xff] %v1084_v39  }
 0x14a   : > { %v749_v14 = vld [vmem:[#allocation2 + $0x38] sm:$0xff]  ;;  %v779_v49 = vadd.f32 %v1033_v3, %v756_v37  ;;  %1116 = vst [vmem:[%s1491_s3 + $0x30] sm:$0xff] %v1104_v56  }
 0x14b   : > { %v772_v25 = vadd.f32 %v1033_v3, %v749_v14  ;;  %v787_v30 = vmax.f32 %v771_v18, 0.0  ;;  %v757_v38 = vld [vmem:[#allocation2 + $0x78] sm:$0xff] }
 0x14c   : > { %v780_v50 = vadd.f32 %v1033_v3, %v757_v38  ;;  %v795_v54 = vmax.f32 %v779_v49, 0.0 }
 0x14d   : > { %v788_v34 = vmax.f32 %v772_v25, 0.0 }
 0x14e   : > { %v796_v55 = vmax.f32 %v780_v50, 0.0 }
 0x14f   : > { %v1089_v43 = vpack.c.bf16 %v788_v34, %v787_v30 }
 0x150   : > { %v1109_v57 = vpack.c.bf16 %v796_v55, %v795_v54 }
 0x151   : > { %1113 = vst [vmem:[%s1491_s3 + $0x18] sm:$0xff] %v1089_v43  }
 0x152   : > { %1117 = vst [vmem:[%s1491_s3 + $0x38] sm:$0xff] %v1109_v57  }
 0x153 PF: > { %s13_s16 = sadd.s32 1, %s1317_s16   ;;  %s1492_s12 = smov %s1305_s13 }
 0x154   : > { %p10_p12 = scmp.ge.s32.totalorder %s13_s16, 7   ;;  %s1493_s13 = smov %s1375_s20 }
 0x155   : > { %s1494_s14 = smov %s1313_s15  ;;  %s1495_s15 = smov %s1497_s17 }
 0x156   :  { %12 = sbr.rel (!%p10_p12) target bundleno = 3 (0x3), region = 119 }

// kernel: yowo_forward.13
= control target key start
LH: loop header
LB: loop body
LE: loop exit
PB: predicated region body
PF: predicated region fallthrough
CT: control target
= control target key end

     0   :  { %s593_s0 = inlined_call_operand.vmem [shape: bf16[128,128], index: 0, kind: input, shape index: {}]   ;;  %s594_s1 = inlined_call_operand.vmem [shape: bf16[128,128], index: 1, kind: input, shape index: {}]   ;;  %s595_s2 = inlined_call_operand.vmem [shape: f32[1,128], index: 2, kind: input, shape index: {}]   ;;  %s596_s3 = inlined_call_operand.hbm [shape: f32[128,128], index: 3, kind: output, shape index: {}]  }
   0x1   :  { %v467_v0 = vld [vmem:[%s594_s1] sm:$0xff]   ;;  %v468_v1 = vld [vmem:[%s594_s1 + $0x8] sm:$0xff]   ;;  %v469_v2 = vld [vmem:[%s594_s1 + $0x10] sm:$0xff]  }
   0x2   :  { %416 = vmatprep.subr.bf16.mxu0 %v467_v0  ;;  %448 = vmatprep.subr.bf16.mxu1 %v467_v0  ;;  %v470_v3 = vld [vmem:[%s594_s1 + $0x18] sm:$0xff]   ;;  %v475_v4 = vld [vmem:[%s593_s0] sm:$0xff]   ;;  %v472_v7 = vld [vmem:[%s594_s1 + $0x28] sm:$0xff]  }
   0x3   :  { %417 = vmatpush3.bf16.msra.mxu0 %v467_v0  ;;  %456 = vmatpush3.bf16.msra.mxu1 %v467_v0  ;;  %v476_v5 = vld [vmem:[%s593_s0 + $0x20] sm:$0xff]  }
   0x4   :  { %418 = vmatprep.subr.bf16.mxu0 %v468_v1  ;;  %449 = vmatprep.subr.bf16.mxu1 %v468_v1  ;;  %v471_v6 = vld [vmem:[%s594_s1 + $0x20] sm:$0xff]  }
   0x5   :  { %432 = vmatprep.mubr.bf16.mxu0 %v475_v4  ;;  %440 = vmatprep.mubr.bf16.mxu1 %v476_v5 }
   0x7   :  { %419 = vmatpush3.bf16.msra.mxu0 %v468_v1  ;;  %457 = vmatpush3.bf16.msra.mxu1 %v468_v1 }
   0x8   :  { %420 = vmatprep.subr.bf16.mxu0 %v469_v2  ;;  %450 = vmatprep.subr.bf16.mxu1 %v469_v2 }
   0xb   :  { %421 = vmatpush3.bf16.msra.mxu0 %v469_v2  ;;  %458 = vmatpush3.bf16.msra.mxu1 %v469_v2 }
   0xc   :  { %422 = vmatprep.subr.bf16.mxu0 %v470_v3  ;;  %451 = vmatprep.subr.bf16.mxu1 %v470_v3 }
   0xf   :  { %423 = vmatpush3.bf16.msra.mxu0 %v470_v3  ;;  %459 = vmatpush3.bf16.msra.mxu1 %v470_v3 }
  0x10   :  { %424 = vmatprep.subr.bf16.mxu0 %v471_v6  ;;  %452 = vmatprep.subr.bf16.mxu1 %v471_v6 }
  0x11   :  { %8 = vsyncpa [#allocation4], 0  ;;  %v473_v8 = vld [vmem:[%s594_s1 + $0x30] sm:$0xff]   ;;  %v474_v9 = vld [vmem:[%s594_s1 + $0x38] sm:$0xff]  }
  0x12   :  { %v477_v10 = vld [vmem:[%s593_s0 + $0x8] sm:$0xff]   ;;  %v479_v12 = vld [vmem:[%s593_s0 + $0x10] sm:$0xff]   ;;  %v481_v14 = vld [vmem:[%s593_s0 + $0x18] sm:$0xff]  }
  0x13   :  { %425 = vmatpush3.bf16.msra.mxu0 %v471_v6  ;;  %460 = vmatpush3.bf16.msra.mxu1 %v471_v6  ;;  %v478_v11 = vld [vmem:[%s593_s0 + $0x28] sm:$0xff]   ;;  %v480_v13 = vld [vmem:[%s593_s0 + $0x30] sm:$0xff]   ;;  %v482_v15 = vld [vmem:[%s593_s0 + $0x38] sm:$0xff]   ;;  %s507_s0 = smov [#allocation3]  }
  0x14   :  { %426 = vmatprep.subr.bf16.mxu0 %v472_v7  ;;  %453 = vmatprep.subr.bf16.mxu1 %v472_v7  ;;  %v399_v16 = vld [vmem:[%s595_s2] ss:$0 sm:$0xff]  ;;  %s372_s2 = sshll.u32 %s507_s0, 4  ;;  %s373_s2 = int_to_ptr.vmem [resolvable:$true] %s372_s2 }
  0x15   :  { %s483_s18 = scalar_lea.vmem %s373_s2, 2048  ;;  %p488_p1 = scmp.lt.s32.totalorder %s373_s2, %s373_s2 }
  0x16   :  { %p484_p0 = scmp.ne.s32.totalorder %s373_s2, %s483_s18  ;;  %p489_p2 = scmp.lt.s32.totalorder %s483_s18, %s483_s18 }
  0x17   :  { %427 = vmatpush3.bf16.msra.mxu0 %v472_v7  ;;  %461 = vmatpush3.bf16.msra.mxu1 %v472_v7 }
  0x18   :  { %428 = vmatprep.subr.bf16.mxu0 %v473_v8  ;;  %454 = vmatprep.subr.bf16.mxu1 %v473_v8  ;;  %p490_p3 = por %p489_p2, %p488_p1 }
  0x1a   :  { %p491_p4 = pnand %p490_p3, %p484_p0 }
  0x1b   :  { %429 = vmatpush3.bf16.msra.mxu0 %v473_v8  ;;  %462 = vmatpush3.bf16.msra.mxu1 %v473_v8 }
  0x1c   :  { %430 = vmatprep.subr.bf16.mxu0 %v474_v9  ;;  %455 = vmatprep.subr.bf16.mxu1 %v474_v9 }
  0x1f   :  { %431 = vmatpush3.bf16.msra.mxu0 %v474_v9  ;;  %463 = vmatpush3.bf16.msra.mxu1 %v474_v9 }
  0x22   :  { %433 = vmatmul.mubr.bf16.vlgmr.msra.gmra.mrb[0].mxu0 %v477_v10  ;;  %441 = vmatmul.mubr.bf16.vlgmr.msra.gmra.mrb[0].mxu1 %v478_v11 }
  0x23   :  { %436 = vmatprep.mubr.bf16.mxu0 %v479_v12  ;;  %444 = vmatprep.mubr.bf16.mxu1 %v480_v13 }
  0x2a   :  { %437 = vmatmul.mubr.bf16.gmra.mrb[4].mxu0 %v481_v14  ;;  %445 = vmatmul.mubr.bf16.gmra.mrb[4].mxu1 %v482_v15 }
  0xf5   :  { %v434_v17 = vpop.f32.mrb[0].mxu0  ;;  %v442_v18 = vpop.f32.mrb[0].mxu1 }
  0xf6   :  { %v337_v19 = vadd.f32 %v434_v17, %v399_v16  ;;  %v345_v20 = vadd.f32 %v442_v18, %v399_v16  ;;  %v214_v21 = vpop.f32.mrb[1].mxu0  ;;  %v246_v22 = vpop.f32.mrb[1].mxu1 }
  0xf7   :  { %v335_v23 = vadd.f32 %v399_v16, %v214_v21  ;;  %v343_v24 = vadd.f32 %v399_v16, %v246_v22  ;;  %v435_v25 = vpop.f32.mrb[2].mxu0  ;;  %v443_v26 = vpop.f32.mrb[2].mxu1 }
  0xf8   :  { %353 = vst [vmem:[#allocation3 + $0x10] sm:$0xff] %v337_v19  ;;  %361 = vst [vmem:[#allocation3 + $0x50] sm:$0xff] %v345_v20  ;;  %v338_v27 = vadd.f32 %v435_v25, %v399_v16  ;;  %v346_v28 = vadd.f32 %v443_v26, %v399_v16  ;;  %v217_v29 = vpop.f32.mrb[3].mxu0  ;;  %v249_v30 = vpop.f32.mrb[3].mxu1 }
  0xf9   :  { %351 = vst [vmem:[#allocation3] sm:$0xff] %v335_v23  ;;  %359 = vst [vmem:[#allocation3 + $0x40] sm:$0xff] %v343_v24  ;;  %v336_v31 = vadd.f32 %v399_v16, %v217_v29  ;;  %v344_v32 = vadd.f32 %v399_v16, %v249_v30 }
  0xfa   :  { %354 = vst [vmem:[#allocation3 + $0x18] sm:$0xff] %v338_v27  ;;  %362 = vst [vmem:[#allocation3 + $0x58] sm:$0xff] %v346_v28 }
  0xfb   :  { %352 = vst [vmem:[#allocation3 + $0x8] sm:$0xff] %v336_v31  ;;  %360 = vst [vmem:[#allocation3 + $0x48] sm:$0xff] %v344_v32 }
  0xfd   :  { %v438_v33 = vpop.f32.mrb[4].mxu0  ;;  %v446_v34 = vpop.f32.mrb[4].mxu1 }
  0xfe   :  { %v341_v35 = vadd.f32 %v438_v33, %v399_v16  ;;  %v349_v36 = vadd.f32 %v446_v34, %v399_v16  ;;  %v230_v37 = vpop.f32.mrb[5].mxu0  ;;  %v262_v38 = vpop.f32.mrb[5].mxu1 }
  0xff   :  { %v339_v39 = vadd.f32 %v399_v16, %v230_v37  ;;  %v347_v40 = vadd.f32 %v399_v16, %v262_v38  ;;  %v439_v41 = vpop.f32.mrb[6].mxu0  ;;  %v447_v42 = vpop.f32.mrb[6].mxu1 }
 0x100   :  { %357 = vst [vmem:[#allocation3 + $0x30] sm:$0xff] %v341_v35  ;;  %365 = vst [vmem:[#allocation3 + $0x70] sm:$0xff] %v349_v36  ;;  %v342_v43 = vadd.f32 %v439_v41, %v399_v16  ;;  %v350_v44 = vadd.f32 %v447_v42, %v399_v16  ;;  %v233_v45 = vpop.f32.mrb[7].mxu0  ;;  %v265_v46 = vpop.f32.mrb[7].mxu1 }
 0x101   :  { %355 = vst [vmem:[#allocation3 + $0x20] sm:$0xff] %v339_v39  ;;  %363 = vst [vmem:[#allocation3 + $0x60] sm:$0xff] %v347_v40  ;;  %v340_v47 = vadd.f32 %v399_v16, %v233_v45  ;;  %v348_v48 = vadd.f32 %v399_v16, %v265_v46 }
 0x102   :  { %358 = vst [vmem:[#allocation3 + $0x38] sm:$0xff] %v342_v43  ;;  %366 = vst [vmem:[#allocation3 + $0x78] sm:$0xff] %v350_v44 }
 0x103   :  { %356 = vst [vmem:[#allocation3 + $0x28] sm:$0xff] %v340_v47  ;;  %364 = vst [vmem:[#allocation3 + $0x68] sm:$0xff] %v348_v48 }
 0x104   :  { %494 = shalt.err (!%p491_p4)
}
 0x105   :  { %s495_s21 = scalar_lea.hbm %s596_s3, 2048 }
 0x106   :  { %p496_p5 = scmp.ne.s32.totalorder %s596_s3, %s495_s21  ;;  %p499_p6 = scmp.lt.u32.totalorder %s495_s21, %s596_s3 }
 0x108   :  { %p501_p7 = pnand %p499_p6, %p496_p5 }
 0x10a   :  { %504 = shalt.err (!%p501_p7)
}
 0x10b   :  { %s508_s26 = smov 128   ;;  %s509_s27 = smov 8  }
 0x10c   :  { %378 = dma.vmem_to_hbm [thread:$0]  %s373_s2, 2048, %s596_s3, [#allocation4], %s508_s26, %s508_s26, %s509_s27  }
 0x10d   :  { %505 = dma.done.wait [#allocation4], 2048  }
 0x10e   :  { %506 = vsyncadd [#allocation4], 4294965248 }
 0x10f   :  { %382 = vsyncpa [#allocation4], 1 }

</bundles_post_ra>
